<compile_context>
chip_gen: v7x
topology: tpu7x:2x2x1
jax: 0.10.0
libtpu: 0.0.40
codegen_flags: <defaults>
</compile_context>

<pallas_src>
import functools

import jax
import jax.numpy as jnp
from jax.experimental import pallas as pl
from jax.experimental.pallas import tpu as pltpu

IN_DIM = 4096
HID_DIM = 1024
OUT_DIM = 1


def _mlp_kernel(x_ref, w1_ref, b1_ref, w2_ref, b2_ref, o_ref, h_acc):
    """Fused fc1 + ReLU + (eval) dropout + fc2 over a (hidden-split, K-tile) grid.

    Grid axis 0 ("parallel") splits the 1024 hidden units across TensorCores
    (n_h=1 on single-TC chips); grid axis 1 ("arbitrary") iterates chunks of
    the 4096-wide contraction.  The partial hidden activation accumulates in a
    VMEM f32 scratch; the epilogue (bias + ReLU + fc2 lane-reduce + fc2 bias)
    runs on the last K step.
    """
    h = pl.program_id(0)
    k = pl.program_id(1)

    @pl.when(k == 0)
    def _():
        h_acc[...] = jnp.zeros_like(h_acc)

    # Partial fc1: (B, tk) bf16 @ (tk, hs) bf16, accumulated in f32 on the MXU.
    h_acc[...] += jnp.dot(
        x_ref[...], w1_ref[...], preferred_element_type=jnp.float32
    )

    @pl.when(k == pl.num_programs(1) - 1)
    def _():
        hid = jnp.maximum(h_acc[...] + b1_ref[...], 0.0)  # bias + ReLU (f32)
        # Dropout(0.5): identity in eval mode.
        # fc2 as a lane-reduce: w2 slice is (1, hs) -> partial (B, 1).
        partial = jnp.sum(hid * w2_ref[...], axis=-1, keepdims=True)
        # fc2 bias added exactly once (on the h == 0 slice), from SMEM.
        partial = partial + jnp.where(h == 0, b2_ref[0, 0], 0.0)
        o_ref[...] = partial.astype(o_ref.dtype)


@functools.partial(jax.jit, static_argnames=("tk",))
def score_classification_forward(x, w1_bf, b1, w2, b2, *, tk=2048):
    """x: (B, 4096).  Params MUST come from prepare_params() (done once):
    w1_bf (n_h, K, hs) bf16, b1/w2 (n_h, 1, hs) f32, b2 (1, 1) f32."""
    B, K = x.shape
    n_h, K2, hs = w1_bf.shape
    assert K == IN_DIM and K2 == IN_DIM and n_h * hs == HID_DIM
    assert K % tk == 0, "K must be a multiple of tk"
    n_k = K // tk
    H = n_h * hs

    # Tiny (B*K*2 bytes) relative to the weight stream; no-op if already bf16.
    x_bf = x.astype(jnp.bfloat16)

    cost = pl.CostEstimate(
        flops=2 * B * K * H + 4 * B * H,
        transcendentals=0,
        bytes_accessed=(w1_bf.size * 2 + x_bf.size * 2 * n_h
                        + (b1.size + w2.size + b2.size) * 4
                        + n_h * B * OUT_DIM * 4),
    )

    partials = pl.pallas_call(
        _mlp_kernel,
        out_shape=jax.ShapeDtypeStruct((n_h, B, OUT_DIM), jnp.float32),
        grid_spec=pltpu.PrefetchScalarGridSpec(
            num_scalar_prefetch=0,
            grid=(n_h, n_k),
            in_specs=[
                pl.BlockSpec((B, tk), lambda h, k: (0, k)),            # x (bf16)
                pl.BlockSpec((None, tk, hs), lambda h, k: (h, k, 0)),  # w1 slab (bf16, contiguous per h)
                pl.BlockSpec((None, 1, hs), lambda h, k: (h, 0, 0)),   # b1 slice (f32)
                pl.BlockSpec((None, 1, hs), lambda h, k: (h, 0, 0)),   # w2 slice (f32)
                pl.BlockSpec(memory_space=pltpu.MemorySpace.SMEM),     # b2 scalar (f32)
            ],
            out_specs=pl.BlockSpec((None, B, OUT_DIM), lambda h, k: (h, 0, 0)),
            scratch_shapes=[pltpu.VMEM((B, hs), jnp.float32)],
        ),
        compiler_params=pltpu.CompilerParams(
            dimension_semantics=("parallel", "arbitrary"),
            vmem_limit_bytes=32 << 20,
        ),
        cost_estimate=cost,
    )(x_bf, w1_bf, b1, w2, b2)

    if n_h == 1:
        # b2 already folded in-kernel; just drop the leading singleton axis.
        return partials.reshape(B, OUT_DIM)
    # v7x two-TC path: combine per-hidden-slice partial fc2 sums.
    return partials.sum(axis=0)


def prepare_params(w1, b1, w2, b2, *, n_h=1):
    """One-time dtype + layout conversion (call once at init, reuse every call).

    w1 (4096, 1024) f32 -> (n_h, 4096, 1024//n_h) bf16 so each hidden split's
    weight slab is fully contiguous in HBM (one contiguous DMA stream per
    TensorCore instead of strided row reads)."""
    K, H = w1.shape
    assert K == IN_DIM and H == HID_DIM and H % n_h == 0
    hs = H // n_h
    w1_p = jnp.transpose(w1.reshape(K, n_h, hs), (1, 0, 2)).astype(jnp.bfloat16)
    b1_p = b1.reshape(n_h, 1, hs).astype(jnp.float32)
    w2_p = w2.reshape(n_h, 1, hs).astype(jnp.float32)
    b2_p = b2.reshape(1, 1).astype(jnp.float32)
    return w1_p, b1_p, w2_p, b2_p


def default_hidden_splits():
    """2 on v7x (two TensorCores/chip), 1 on single-TC v5e/v6e (and fallback)."""
    try:
        kind = jax.devices()[0].device_kind.lower()
    except Exception:
        return 1
    return 2 if ("v7" in kind or "7x" in kind) else 1


def init_params(key):
    """Deterministic init mirroring _initialize_weights:
    kaiming_uniform_(fan_in, relu) for weights, zeros for biases."""
    k1, k2 = jax.random.split(key)

    def kaiming_uniform(k, fan_in, shape):
        bound = jnp.sqrt(6.0 / fan_in)  # gain(relu)*sqrt(3/fan_in)
        return jax.random.uniform(k, shape, jnp.float32, -bound, bound)

    # Stored as (in, out) so the kernel does plain x @ w (torch stores (out, in)).
    w1 = kaiming_uniform(k1, IN_DIM, (IN_DIM, HID_DIM))
    b1 = jnp.zeros((1, HID_DIM), jnp.float32)
    w2 = kaiming_uniform(k2, HID_DIM, (HID_DIM, OUT_DIM))
    b2 = jnp.zeros((1, OUT_DIM), jnp.float32)
    return w1, b1, w2, b2


def reference_forward(x, w1, b1, w2, b2):
    h = jnp.maximum(x @ w1 + b1, 0.0)
    return h @ w2 + b2


if __name__ == "__main__":
    key = jax.random.PRNGKey(0)
    k_params, k_x = jax.random.split(key)

    w1, b1, w2, b2 = init_params(k_params)

    # One-time weight prep (bf16 + per-core-contiguous layout) OUTSIDE the
    # jitted forward; never repeated per call.
    n_h = default_hidden_splits()
    w1_p, b1_p, w2_p, b2_p = jax.block_until_ready(
        prepare_params(w1, b1, w2, b2, n_h=n_h)
    )

    B = 8  # small batch
    x = jax.random.normal(k_x, (B, IN_DIM), jnp.float32)

    out = score_classification_forward(x, w1_p, b1_p, w2_p, b2_p)
    out = jax.block_until_ready(out)
    assert out.shape == (B, OUT_DIM)

    # Reference on bf16-rounded x / w1 (the kernel streams them in bf16, so
    # outputs match the f32 PyTorch model only to ~1e-2 — acceptable for a
    # score head).
    x_r = x.astype(jnp.bfloat16).astype(jnp.float32)
    w1_r = w1.astype(jnp.bfloat16).astype(jnp.float32)
    ref = reference_forward(x_r, w1_r, b1, w2, b2)
    max_err = jnp.max(jnp.abs(out - ref))
    assert jnp.allclose(out, ref, atol=1e-2, rtol=1e-2), f"mismatch: max abs err {max_err}"

    print("KERNEL_OK")
</pallas_src>

<mosaic_0001>
module attributes {stable_mosaic.version = 11 : i64} {
  func.func @_mlp_kernel(%arg0: i32, %arg1: i32, %arg2: memref<8x2048xbf16, #tpu.memory_space<vmem>>, %arg3: memref<1x2048x1024xbf16, #tpu.memory_space<vmem>>, %arg4: memref<1x1x1024xf32, #tpu.memory_space<vmem>>, %arg5: memref<1x1x1024xf32, #tpu.memory_space<vmem>>, %arg6: memref<1x1xf32, #tpu.memory_space<smem>>, %arg7: memref<1x8x1xf32, #tpu.memory_space<vmem>>, %arg8: memref<8x1024xf32, #tpu.memory_space<vmem>>) attributes {dimension_semantics = [#tpu.dimension_semantics<parallel>, #tpu.dimension_semantics<arbitrary>], iteration_bounds = array<i64: 1, 2>, scalar_prefetch = 0 : i64, scratch_operands = 1 : i64, tpu.core_type = #tpu.core_type<tc>, window_params = [{transform_indices = @transform_0, window_bounds = array<i64: 8, 2048>}, {transform_indices = @transform_1, window_bounds = array<i64: 1, 2048, 1024>}, {transform_indices = @transform_2, window_bounds = array<i64: 1, 1, 1024>}, {transform_indices = @transform_3, window_bounds = array<i64: 1, 1, 1024>}, {transform_indices = @transform_4, window_bounds = array<i64: 1, 1>}, {transform_indices = @transform_5, window_bounds = array<i64: 1, 8, 1>}]} {
    %c0_i32 = arith.constant 0 : i32
    %0 = arith.cmpi eq, %arg1, %c0_i32 : i32
    %1 = arith.extui %0 : i1 to i32
    %c0_i32_0 = arith.constant 0 : i32
    %2 = arith.cmpi ne, %1, %c0_i32_0 : i32
    scf.if %2 {
      %cst_10 = arith.constant 0.000000e+00 : f32
      %13 = vector.broadcast %cst_10 : f32 to vector<8x1024xf32>
      %c0_11 = arith.constant 0 : index
      %c0_12 = arith.constant 0 : index
      %14 = vector.load %arg8[%c0_11, %c0_12] : memref<8x1024xf32, #tpu.memory_space<vmem>>, vector<8x1024xf32>
      tpu.vector_store %arg8[%c0_11, %c0_12], %13 {strides = array<i32>} : memref<8x1024xf32, #tpu.memory_space<vmem>>, vector<8x1024xf32>,
    } else {
    }
    %c0 = arith.constant 0 : index
    %c0_1 = arith.constant 0 : index
    %3 = vector.load %arg8[%c0, %c0_1] : memref<8x1024xf32, #tpu.memory_space<vmem>>, vector<8x1024xf32>
    %c0_2 = arith.constant 0 : index
    %c0_3 = arith.constant 0 : index
    %4 = vector.load %arg2[%c0_2, %c0_3] : memref<8x2048xbf16, #tpu.memory_space<vmem>>, vector<8x2048xbf16>
    %c0_4 = arith.constant 0 : index
    %c0_5 = arith.constant 0 : index
    %c0_6 = arith.constant 0 : index
    %5 = vector.load %arg3[%c0_4, %c0_5, %c0_6] : memref<1x2048x1024xbf16, #tpu.memory_space<vmem>>, vector<1x2048x1024xbf16>
    %6 = vector.shape_cast %5 : vector<1x2048x1024xbf16> to vector<2048x1024xbf16>
    %cst = arith.constant dense<0.000000e+00> : vector<8x1024xf32>
    %7 = tpu.matmul %4, %6, %cst {dimension_numbers = #tpu.dot_dimension_numbers<[1], [0], [0], [1], [0, 0, 1, 1], [], []>} : vector<8x2048xbf16>, vector<2048x1024xbf16>, vector<8x1024xf32> -> vector<8x1024xf32>
    %8 = arith.addf %3, %7 : vector<8x1024xf32>
    %c0_7 = arith.constant 0 : index
    %c0_8 = arith.constant 0 : index
    %9 = vector.load %arg8[%c0_7, %c0_8] : memref<8x1024xf32, #tpu.memory_space<vmem>>, vector<8x1024xf32>
    tpu.vector_store %arg8[%c0_7, %c0_8], %8 {strides = array<i32>} : memref<8x1024xf32, #tpu.memory_space<vmem>>, vector<8x1024xf32>,
    %c1_i32 = arith.constant 1 : i32
    %10 = arith.cmpi eq, %arg1, %c1_i32 : i32
    %11 = arith.extui %10 : i1 to i32
    %c0_i32_9 = arith.constant 0 : i32
    %12 = arith.cmpi ne, %11, %c0_i32_9 : i32
    scf.if %12 {
      %c0_10 = arith.constant 0 : index
      %c0_11 = arith.constant 0 : index
      %13 = vector.load %arg8[%c0_10, %c0_11] : memref<8x1024xf32, #tpu.memory_space<vmem>>, vector<8x1024xf32>
      %c0_12 = arith.constant 0 : index
      %c0_13 = arith.constant 0 : index
      %c0_14 = arith.constant 0 : index
      %14 = vector.load %arg4[%c0_12, %c0_13, %c0_14] : memref<1x1x1024xf32, #tpu.memory_space<vmem>>, vector<1x1x1024xf32>
      %15 = vector.shape_cast %14 : vector<1x1x1024xf32> to vector<1x1024xf32>
      %16 = vector.broadcast %15 : vector<1x1024xf32> to vector<8x1024xf32>
      %17 = arith.addf %13, %16 : vector<8x1024xf32>
      %cst_15 = arith.constant 0.000000e+00 : f32
      %18 = vector.broadcast %cst_15 : f32 to vector<8x1024xf32>
      %19 = arith.maximumf %17, %18 : vector<8x1024xf32>
      %c0_16 = arith.constant 0 : index
      %c0_17 = arith.constant 0 : index
      %c0_18 = arith.constant 0 : index
      %20 = vector.load %arg5[%c0_16, %c0_17, %c0_18] : memref<1x1x1024xf32, #tpu.memory_space<vmem>>, vector<1x1x1024xf32>
      %21 = vector.shape_cast %20 : vector<1x1x1024xf32> to vector<1x1024xf32>
      %22 = vector.broadcast %21 : vector<1x1024xf32> to vector<8x1024xf32>
      %23 = arith.mulf %19, %22 : vector<8x1024xf32>
      %cst_19 = arith.constant dense<0.000000e+00> : vector<8xf32>
      %24 = vector.multi_reduction <add>, %23, %cst_19 [1] : vector<8x1024xf32> to vector<8xf32>
      %25 = vector.shape_cast %24 : vector<8xf32> to vector<8x1xf32>
      %c0_i32_20 = arith.constant 0 : i32
      %26 = arith.cmpi eq, %arg0, %c0_i32_20 : i32
      %c0_21 = arith.constant 0 : index
      %c0_22 = arith.constant 0 : index
      %27 = memref.load %arg6[%c0_21, %c0_22] : memref<1x1xf32, #tpu.memory_space<smem>>
      %cst_23 = arith.constant 0.000000e+00 : f32
      %28 = arith.select %26, %27, %cst_23 : f32
      %29 = vector.broadcast %28 : f32 to vector<8x1xf32>
      %30 = arith.addf %25, %29 : vector<8x1xf32>
      %c0_24 = arith.constant 0 : index
      %c0_25 = arith.constant 0 : index
      %c0_26 = arith.constant 0 : index
      %31 = vector.load %arg7[%c0_24, %c0_25, %c0_26] : memref<1x8x1xf32, #tpu.memory_space<vmem>>, vector<1x8x1xf32>
      %32 = vector.shape_cast %31 : vector<1x8x1xf32> to vector<8x1xf32>
      %33 = vector.shape_cast %30 : vector<8x1xf32> to vector<1x8x1xf32>
      tpu.vector_store %arg7[%c0_24, %c0_25, %c0_26], %33 {strides = array<i32>} : memref<1x8x1xf32, #tpu.memory_space<vmem>>, vector<1x8x1xf32>,
    } else {
    }
    return
  }
  func.func @transform_0(%arg0: i32, %arg1: i32) -> (i32, i32) {
    %c0_i32 = arith.constant 0 : i32
    %c0_i32_0 = arith.constant 0 : i32
    return %c0_i32, %arg1 : i32, i32
  }
  func.func @transform_1(%arg0: i32, %arg1: i32) -> (i32, i32, i32) {
    %c0_i32 = arith.constant 0 : i32
    %c0_i32_0 = arith.constant 0 : i32
    return %arg0, %arg1, %c0_i32 : i32, i32, i32
  }
  func.func @transform_2(%arg0: i32, %arg1: i32) -> (i32, i32, i32) {
    %c0_i32 = arith.constant 0 : i32
    %c0_i32_0 = arith.constant 0 : i32
    %c0_i32_1 = arith.constant 0 : i32
    return %arg0, %c0_i32, %c0_i32_0 : i32, i32, i32
  }
  func.func @transform_3(%arg0: i32, %arg1: i32) -> (i32, i32, i32) {
    %c0_i32 = arith.constant 0 : i32
    %c0_i32_0 = arith.constant 0 : i32
    %c0_i32_1 = arith.constant 0 : i32
    return %arg0, %c0_i32, %c0_i32_0 : i32, i32, i32
  }
  func.func @transform_4(%arg0: i32, %arg1: i32) -> (i32, i32) {
    %c0_i32 = arith.constant 0 : i32
    %c0_i32_0 = arith.constant 0 : i32
    %c0_i32_1 = arith.constant 0 : i32
    return %c0_i32, %c0_i32_0 : i32, i32
  }
  func.func @transform_5(%arg0: i32, %arg1: i32) -> (i32, i32, i32) {
    %c0_i32 = arith.constant 0 : i32
    %c0_i32_0 = arith.constant 0 : i32
    %c0_i32_1 = arith.constant 0 : i32
    return %arg0, %c0_i32, %c0_i32_0 : i32, i32, i32
  }
}

</mosaic_0001>

<bundles_post_ra>
// kernel: score_classification_forward.1
= control target key start
LH: loop header
LB: loop body
LE: loop exit
PB: predicated region body
PF: predicated region fallthrough
CT: control target
= control target key end

     0   :  { %s10887_s0 = inlined_call_operand.vmem [shape: bf16[8,4096], index: 0, kind: input, shape index: {}]   ;;  %s10888_s1 = inlined_call_operand.hbm [shape: bf16[1,4096,1024], index: 1, kind: input, shape index: {}]   ;;  %s10889_s2 = inlined_call_operand.hbm [shape: f32[1,1,1024], index: 2, kind: input, shape index: {}]   ;;  %s10890_s3 = inlined_call_operand.hbm [shape: f32[1,1,1024], index: 3, kind: input, shape index: {}]   ;;  %s10891_s4 = inlined_call_operand.<no memory space> [shape: f32[1,1], index: 4, kind: input, shape index: {}]   ;;  %s10892_s5 = inlined_call_operand.vmem [shape: f32[1,8,1], index: 5, kind: output, shape index: {}]  }
   0x1   :  { %10 = sst [smem:[#allocation3]] %s10891_s4 }
   0x2   :  { %11 = vsyncpa [#allocation5], 0 }
   0x3   :  { %13 = vsyncpa [#allocation5 + $0x1], 0 }
   0x4   :  { %14 = vsyncpa [#allocation7], 0  ;;  %s9463_s20 = smov 0   ;;  %s9465_s21 = smov 0  }
   0x5   :  { %s9467_s22 = smov 0   ;;  %s9469_s23 = smov 0  }
   0x6   :  { %s9471_s24 = smov 0   ;;  %s9473_s25 = smov 0  }
   0x7 LB: > { %s8125_s4 = sadd.s32 4294967295, %s9422_s25   ;;  %s67_s26 = sadd.s32 1, %s9410_s22  ;;  %s9422_s25 = sphi %s9473_s25, %s20_s25   ;;  %s9418_s24 = sphi %s9471_s24, %s10911_s24   ;;  %s9414_s23 = sphi %s9469_s23, %s10910_s23   ;;  %s9410_s22 = sphi %s9467_s22, %s10909_s22   ;;  %s9406_s21 = sphi %s9465_s21, %s10908_s21   ;;  %s9402_s20 = sphi %s9463_s20, %s10907_s20  }
   0x8   : > { %p74_p0 = scmp.ne.s32.totalorder %s9410_s22, %s9406_s21  ;;  %p75_p1 = scmp.eq.s32.totalorder %s9422_s25, 0 }
   0x9   : > { %p80_p2 = scmp.ne.s32.totalorder %s9406_s21, %s9402_s20  ;;  %p9497_p3 = scmp.eq.s32.totalorder %s8125_s4, 0 }
   0xa   : > { %p76_p4 = por %p75_p1, %p74_p0  ;;  %p8126_p5 = scmp.ge.s32.totalorder %s9422_s25, 1 }
   0xb   : > { %s10898_s27 = scalar_select %p9497_p3, 1, 0 }
   0xc   : > { %p9504_p6 = por %p9497_p3, %p80_p2  ;;  %p190_p7 = scmp.lt.s32.totalorder %s9422_s25, 3 }
   0xd   : > { %s9424_s30 = smov [#allocation6]   ;;  %p9210_p10 = scmp.lt.s32.totalorder %s9422_s25, 2 }
   0xe   : > { %s10899_s28 = scalar_select %p9504_p6, 1, 0 }
   0xf   : > { %p9509_p8 = pnand %p8126_p5, %p190_p7  ;;  %s206_s6 = sshll.u32 %s9424_s30, 4  ;;  %s207_s6 = int_to_ptr.vmem [resolvable:$true] %s206_s6 }
  0x10   : > { %p9522_p12 = pnand %p9210_p10, %p76_p4  ;;  %s9425_s9 = smov [#allocation8]  }
  0x11   : > { %s10900_s29 = scalar_select %p9509_p8, 1, 0 }
  0x12   : > { %p9197_p9 = pneg %p9509_p8  ;;  %s220_s10 = sshll.u32 %s9425_s9, 4  ;;  %s221_s10 = int_to_ptr.vmem [resolvable:$true] %s220_s10 }
  0x13   : > { %s10902_s8 = scalar_select %p9522_p12, 1, 0 }
  0x14   : > { %p9518_p11 = pnand %p9197_p9, %p9497_p3  ;;  %s9282_s13 = scalar_lea.hbm %s10889_s2, 128 }
  0x15   : > { %p9283_p13 = scmp.ne.s32.totalorder %s10889_s2, %s9282_s13  ;;  %p9289_p4 = scmp.lt.u32.totalorder %s9282_s13, %s10889_s2 }
  0x16   : > { %p9284_p0 = pneg %p9518_p11 }
  0x18   : > { %p9285_p1 = pnand %p9284_p0, %p9283_p13 }
  0x1a   : > { %p9286_p2 = pneg %p9285_p1 }
  0x1c   : > { %p9291_p5 = pnand %p9289_p4, %p9286_p2 }
  0x1e   : > { %9294 = shalt.err (!%p9291_p5)
}
  0x1f   : > { %s9295_s18 = scalar_lea.vmem %s207_s6, 128  ;;  %p9303_p3 = scmp.lt.s32.totalorder %s207_s6, %s207_s6 }
  0x20   : > { %p9296_p7 = scmp.ne.s32.totalorder %s207_s6, %s9295_s18  ;;  %p9304_p6 = scmp.lt.s32.totalorder %s9295_s18, %s9295_s18 }
  0x22   : > { %p9298_p9 = pnand %p9296_p7, %p9284_p0  ;;  %p9305_p8 = por %p9304_p6, %p9303_p3 }
  0x24   : > { %p9299_p10 = pneg %p9298_p9 }
  0x26   : > { %p9306_p12 = pnand %p9305_p8, %p9299_p10 }
  0x28   : > { %9309 = shalt.err (!%p9306_p12)
}
  0x29   : > { %9200 = dma.hbm_to_vmem [thread:$0]  (!%p9518_p11), %s10889_s2, 128, %s207_s6, [#allocation7]  }
  0x2a   : > { %s29_s4 = sadd.s32 1, %s9418_s24  ;;  %s9310_s11 = scalar_lea.hbm %s10890_s3, 128 }
  0x2b   : > { %p9311_p3 = scmp.ne.s32.totalorder %s10890_s3, %s9310_s11  ;;  %p9317_p12 = scmp.lt.u32.totalorder %s9310_s11, %s10890_s3 }
  0x2d   : > { %p9313_p6 = pnand %p9311_p3, %p9284_p0 }
  0x2f   : > { %p9314_p8 = pneg %p9313_p6 }
  0x31   : > { %p9319_p13 = pnand %p9317_p12, %p9314_p8 }
  0x33   : > { %9322 = shalt.err (!%p9319_p13)
}
  0x34   : > { %s9323_s6 = scalar_lea.vmem %s221_s10, 128  ;;  %p9331_p5 = scmp.lt.s32.totalorder %s221_s10, %s221_s10 }
  0x35   : > { %p9324_p1 = scmp.ne.s32.totalorder %s221_s10, %s9323_s6  ;;  %p9332_p7 = scmp.lt.s32.totalorder %s9323_s6, %s9323_s6 }
  0x37   : > { %p9326_p2 = pnand %p9324_p1, %p9284_p0  ;;  %p9333_p9 = por %p9332_p7, %p9331_p5 }
  0x39   : > { %p9327_p4 = pneg %p9326_p2 }
  0x3b   : > { %p9334_p10 = pnand %p9333_p9, %p9327_p4 }
  0x3d   : > { %9337 = shalt.err (!%p9334_p10)
}
  0x3e   : > { %9203 = dma.hbm_to_vmem [thread:$0]  (!%p9518_p11), %s10890_s3, 128, %s221_s10, [#allocation7]  }
  0x3f   : > { %p30_p3 = scmp.ge.s32.totalorder %s29_s4, 2  ;;  %s243_s18 = sand.u32 1, %s9410_s22  }
  0x40   : > { %s8130_s19 = sshll.u32 %s243_s18, 13  ;;  %s9186_s20 = sshll.u32 %s9418_s24, 17 }
  0x41   : > { %s10913_s4 = smov (%p30_p3, %s29_s4), 0  ;;  %s9578_s11 = scalar_lea.hbm %s10888_s1, %s9186_s20 }
  0x42   : > { %s63_s30 = ssub.s32 %s9418_s24, %s10913_s4  ;;  %s247_s10 = scalar_lea.vmem [#allocation4], %s8130_s19 }
  0x43   : > { %p65_p11 = scmp.eq.s32.totalorder %s63_s30, 0  ;;  %s257_s12 = sshll.u32 %s247_s10, 4  ;;  %s9580_s12 = int_to_ptr.vmem [resolvable:$true] %s257_s12 }
  0x44   : > { %s9587_s14 = scalar_lea.sflag [#allocation5], %s243_s18  ;;  %s9338_s15 = scalar_lea.hbm %s9578_s11, 131072 }
  0x45   : > { %s9585_s13 = scalar_select %p65_p11, %s9410_s22, %s67_s26  }
  0x46   : > { %p9339_p0 = scmp.ne.s32.totalorder %s9578_s11, %s9338_s15  ;;  %p10903_p6 = scmp.ne.s32.totalorder %s10902_s8, 0 }
  0x47   : > { %s9343_s17 = scalar_lea.hbm %s10888_s1, 262144  ;;  %p9344_p1 = scmp.lt.u32.totalorder %s9578_s11, %s10888_s1 }
  0x48   : > { %p9340_p8 = pneg %p10903_p6  ;;  %p9345_p2 = scmp.lt.u32.totalorder %s9343_s17, %s9338_s15 }
  0x49   : > { %p9347_p5 = scmp.lt.u32.totalorder %s9338_s15, %s9578_s11 }
  0x4a   : > { %p9341_p12 = pnand %p9340_p8, %p9339_p0  ;;  %p9346_p4 = por %p9345_p2, %p9344_p1 }
  0x4c   : > { %p9342_p13 = pneg %p9341_p12  ;;  %p9348_p7 = por %p9347_p5, %p9346_p4 }
  0x4e   : > { %p9349_p9 = pnand %p9348_p7, %p9342_p13 }
  0x50   : > { %9352 = shalt.err (!%p9349_p9)
}
  0x51   : > { %s9353_s26 = scalar_lea.vmem %s9580_s12, 131072  ;;  %s9426_s18 = smov [#allocation4]  }
  0x52   : > { %p9354_p10 = scmp.ne.s32.totalorder %s9580_s12, %s9353_s26  ;;  %s9358_s30 = sshll.u32 %s9426_s18, 4  ;;  %s9359_s30 = int_to_ptr.vmem [resolvable:$false] %s9358_s30 }
  0x53   : > { %s9360_s7 = scalar_lea.vmem %s9359_s30, 262144  ;;  %p9361_p0 = scmp.lt.s32.totalorder %s9580_s12, %s9359_s30 }
  0x54   : > { %p9356_p3 = pnand %p9354_p10, %p9340_p8  ;;  %p9362_p12 = scmp.lt.s32.totalorder %s9360_s7, %s9353_s26 }
  0x56   : > { %p9357_p11 = pneg %p9356_p3  ;;  %p9363_p1 = por %p9362_p12, %p9361_p0 }
  0x58   : > { %p9364_p2 = pnand %p9363_p1, %p9357_p11 }
  0x5a   : > { %9367 = shalt.err (!%p9364_p2)
}
  0x5b   : > { %s9427_s9 = smov 512   ;;  %s9428_s10 = smov 32  }
  0x5c   : > { %9207 = dma.hbm_to_vmem [thread:$0]  (!%p10903_p6), %s9578_s11, 131072, %s9580_s12, %s9587_s14, %s9427_s9, %s9427_s9, %s9428_s10  }
  0x5d   : > { %p10904_p8 = scmp.ne.s32.totalorder %s10900_s29, 0 }
  0x5e   : > { %s271_s15 = sand.u32 (!%p10904_p8), 1, %s9406_s21   ;;  %p10905_p13 = scmp.ne.s32.totalorder (!%p10904_p8), %s10899_s28, 0 }
  0x5f   : > { %269 = sbr.rel (%p10904_p8) target bundleno = 1526 (0x5f6), region = 40  ;;  %s8135_s6 = sshll.u32 (!%p10904_p8), %s271_s15, 13 }
  0x60   : > { %s272_s16 = scalar_lea.sflag (!%p10904_p8), [#allocation5], %s271_s15  ;;  %s9618_s17 = scalar_lea.vmem (!%p10904_p8), [#allocation4], %s8135_s6 }
  0x66   : > { %9393 = dma.done.wait (%p10905_p13), %s272_s16, 131072  }
  0x67   : > { %9395 = vsyncadd (%p10905_p13), %s272_s16, 4294836224  ;;  %p10906_p4 = scmp.ne.s32.totalorder %s10898_s27, 0 }
  0x69   : > { %9397 = dma.done.wait (%p10906_p4), [#allocation7], 256  }
  0x6a   : > { %9399 = vsyncadd (%p10906_p4), [#allocation7], 4294967040  ;;  %s8138_s29 = sshll.u32 %s9414_s23, 4  ;;  %p8140_p5 = scmp.ne.s32.totalorder %s9414_s23, 0 }
  0x6b   : > { %p315_p6 = scmp.lt.s32.totalorder %s8138_s29, 31  ;;  %v9429_v0 = vmov (!%p8140_p5), 0.0  }
  0x6c   : > { %328 = sbr.rel (%p8140_p5) target bundleno = 115 (0x73), region = 56  ;;  %329 = vst [vmem:[#allocation2] sm:$0xff] (!%p8140_p5), %v9429_v0  ;;  %330 = vst [vmem:[#allocation2 + $0x8] sm:$0xff] (!%p8140_p5), %v9429_v0 }
  0x6d   : > { %s10915_s29 = smov (!%p315_p6, %s8138_s29), 31  ;;  %331 = vst [vmem:[#allocation2 + $0x10] sm:$0xff] (!%p8140_p5), %v9429_v0  ;;  %332 = vst [vmem:[#allocation2 + $0x18] sm:$0xff] (!%p8140_p5), %v9429_v0 }
  0x6e   : > { %s8139_s8 = sshll.u32 %s10915_s29, 2  ;;  %333 = vst [vmem:[#allocation2 + $0x20] sm:$0xff] (!%p8140_p5), %v9429_v0  ;;  %334 = vst [vmem:[#allocation2 + $0x28] sm:$0xff] (!%p8140_p5), %v9429_v0 }
  0x6f   : > { %s9632_s14 = scalar_lea.vmem %s10887_s0, %s8139_s8  ;;  %335 = vst [vmem:[#allocation2 + $0x30] sm:$0xff] (!%p8140_p5), %v9429_v0  ;;  %336 = vst [vmem:[#allocation2 + $0x38] sm:$0xff] (!%p8140_p5), %v9429_v0 }
  0x73 PF: > { %v353_v1 = vld [vmem:[%s9618_s17] sm:$0xff]  ;;  %v9667_v55 = vld [vmem:[%s9632_s14 + $0x8] sm:$0xff]  ;;  %p9181_p7 = scmp.ne.s32.totalorder %s9414_s23, 1 }
  0x74   : > { %v357_v2 = vld [vmem:[%s9618_s17 + $0x20] sm:$0xff]  ;;  %v9677_v60 = vcombine.high %v9667_v55, %v9667_v55  ;;  %s8011_s23 = sld [smem:[#allocation3]] (!%p9181_p7)  ;;  %vm8015_vm0 = vcmask (!%p9181_p7), 7168  }
  0x75   : > { %v481_v3 = vld [vmem:[%s9618_s17 + $0x400] sm:$0xff]  ;;  %v8158_v4 = vcombine.high %v353_v1, %v357_v2  ;;  %v8157_v6 = vcombine.low %v353_v1, %v357_v2 }
  0x76   : > { %v485_v5 = vld [vmem:[%s9618_s17 + $0x420] sm:$0xff]  ;;  %6626 = vmatprep.mubr.bf16.mxu1 %v9677_v60 }
  0x77   : > { %v361_v7 = vld [vmem:[%s9618_s17 + $0x40] sm:$0xff]  ;;  %v8286_v9 = vcombine.high %v481_v3, %v485_v5  ;;  %v8285_v10 = vcombine.low %v481_v3, %v485_v5  ;;  %6553 = vmatprep.subr.bf16.mxu0 %v8158_v4 }
  0x78   : > { %v365_v8 = vld [vmem:[%s9618_s17 + $0x60] sm:$0xff]  ;;  %6554 = vmatpush1.bf16.msra.mxu0 %v8157_v6 }
  0x79   : > { %v8166_v11 = vcombine.high %v361_v7, %v365_v8  ;;  %v489_v12 = vld [vmem:[%s9618_s17 + $0x440] sm:$0xff]  ;;  %6594 = vmatprep.subr.bf16.mxu1 %v8286_v9  ;;  %v8165_v19 = vcombine.low %v361_v7, %v365_v8 }
  0x7a   : > { %v493_v13 = vld [vmem:[%s9618_s17 + $0x460] sm:$0xff]  ;;  %6595 = vmatpush1.bf16.msra.mxu1 %v8285_v10 }
  0x7b   : > { %v369_v14 = vld [vmem:[%s9618_s17 + $0x80] sm:$0xff]  ;;  %v8294_v15 = vcombine.high %v489_v12, %v493_v13  ;;  %6555 = vmatprep.subr.bf16.mxu0 %v8166_v11  ;;  %v8293_v20 = vcombine.low %v489_v12, %v493_v13 }
  0x7c   : > { %v373_v16 = vld [vmem:[%s9618_s17 + $0xa0] sm:$0xff]  ;;  %6556 = vmatpush1.bf16.msra.mxu0 %v8165_v19 }
  0x7d   : > { %v497_v17 = vld [vmem:[%s9618_s17 + $0x480] sm:$0xff]  ;;  %v8174_v21 = vcombine.high %v369_v14, %v373_v16  ;;  %6596 = vmatprep.subr.bf16.mxu1 %v8294_v15  ;;  %v8173_v27 = vcombine.low %v369_v14, %v373_v16 }
  0x7e   : > { %v501_v18 = vld [vmem:[%s9618_s17 + $0x4a0] sm:$0xff]  ;;  %6597 = vmatpush1.bf16.msra.mxu1 %v8293_v20 }
  0x7f   : > { %v8302_v22 = vcombine.high %v497_v17, %v501_v18  ;;  %v377_v23 = vld [vmem:[%s9618_s17 + $0xc0] sm:$0xff]  ;;  %6557 = vmatprep.subr.bf16.mxu0 %v8174_v21  ;;  %v8301_v28 = vcombine.low %v497_v17, %v501_v18 }
  0x80   : > { %v381_v24 = vld [vmem:[%s9618_s17 + $0xe0] sm:$0xff]  ;;  %6558 = vmatpush1.bf16.msra.mxu0 %v8173_v27 }
  0x81   : > { %v505_v25 = vld [vmem:[%s9618_s17 + $0x4c0] sm:$0xff]  ;;  %v8182_v29 = vcombine.high %v377_v23, %v381_v24  ;;  %6598 = vmatprep.subr.bf16.mxu1 %v8302_v22  ;;  %v8181_v35 = vcombine.low %v377_v23, %v381_v24 }
  0x82   : > { %v509_v26 = vld [vmem:[%s9618_s17 + $0x4e0] sm:$0xff]  ;;  %6599 = vmatpush1.bf16.msra.mxu1 %v8301_v28 }
  0x83   : > { %v8310_v30 = vcombine.high %v505_v25, %v509_v26  ;;  %v385_v31 = vld [vmem:[%s9618_s17 + $0x100] sm:$0xff]  ;;  %6559 = vmatprep.subr.bf16.mxu0 %v8182_v29  ;;  %v8309_v36 = vcombine.low %v505_v25, %v509_v26 }
  0x84   : > { %v389_v32 = vld [vmem:[%s9618_s17 + $0x120] sm:$0xff]  ;;  %6560 = vmatpush1.bf16.msra.mxu0 %v8181_v35 }
  0x85   : > { %v513_v33 = vld [vmem:[%s9618_s17 + $0x500] sm:$0xff]  ;;  %v8190_v37 = vcombine.high %v385_v31, %v389_v32  ;;  %6600 = vmatprep.subr.bf16.mxu1 %v8310_v30  ;;  %v8189_v43 = vcombine.low %v385_v31, %v389_v32 }
  0x86   : > { %v517_v34 = vld [vmem:[%s9618_s17 + $0x520] sm:$0xff]  ;;  %6601 = vmatpush1.bf16.msra.mxu1 %v8309_v36 }
  0x87   : > { %v8318_v38 = vcombine.high %v513_v33, %v517_v34  ;;  %v393_v39 = vld [vmem:[%s9618_s17 + $0x140] sm:$0xff]  ;;  %6561 = vmatprep.subr.bf16.mxu0 %v8190_v37  ;;  %v8317_v44 = vcombine.low %v513_v33, %v517_v34 }
  0x88   : > { %v397_v40 = vld [vmem:[%s9618_s17 + $0x160] sm:$0xff]  ;;  %6562 = vmatpush1.bf16.msra.mxu0 %v8189_v43 }
  0x89   : > { %v521_v41 = vld [vmem:[%s9618_s17 + $0x540] sm:$0xff]  ;;  %v8198_v45 = vcombine.high %v393_v39, %v397_v40  ;;  %6602 = vmatprep.subr.bf16.mxu1 %v8318_v38  ;;  %v8197_v51 = vcombine.low %v393_v39, %v397_v40 }
  0x8a   : > { %v525_v42 = vld [vmem:[%s9618_s17 + $0x560] sm:$0xff]  ;;  %6603 = vmatpush1.bf16.msra.mxu1 %v8317_v44 }
  0x8b   : > { %v8326_v46 = vcombine.high %v521_v41, %v525_v42  ;;  %v401_v47 = vld [vmem:[%s9618_s17 + $0x180] sm:$0xff]  ;;  %6563 = vmatprep.subr.bf16.mxu0 %v8198_v45  ;;  %v8325_v52 = vcombine.low %v521_v41, %v525_v42 }
  0x8c   : > { %v405_v48 = vld [vmem:[%s9618_s17 + $0x1a0] sm:$0xff]  ;;  %6564 = vmatpush1.bf16.msra.mxu0 %v8197_v51 }
  0x8d   : > { %v529_v49 = vld [vmem:[%s9618_s17 + $0x580] sm:$0xff]  ;;  %v8206_v53 = vcombine.high %v401_v47, %v405_v48  ;;  %6604 = vmatprep.subr.bf16.mxu1 %v8326_v46  ;;  %v8205_v63 = vcombine.low %v401_v47, %v405_v48 }
  0x8e   : > { %v533_v50 = vld [vmem:[%s9618_s17 + $0x5a0] sm:$0xff]  ;;  %6605 = vmatpush1.bf16.msra.mxu1 %v8325_v52 }
  0x8f   : > { %v9664_v54 = vld [vmem:[%s9632_s14] sm:$0xff]  ;;  %v8334_v56 = vcombine.high %v529_v49, %v533_v50  ;;  %6565 = vmatprep.subr.bf16.mxu0 %v8206_v53  ;;  %v8333_v0 = vcombine.low %v529_v49, %v533_v50 }
  0x90   : > { %v409_v57 = vld [vmem:[%s9618_s17 + $0x1c0] sm:$0xff]  ;;  %v9673_v59 = vcombine.high %v9664_v54, %v9664_v54  ;;  %6566 = vmatpush1.bf16.msra.mxu0 %v8205_v63 }
  0x91   : > { %v413_v58 = vld [vmem:[%s9618_s17 + $0x1e0] sm:$0xff]  ;;  %6606 = vmatprep.subr.bf16.mxu1 %v8334_v56 }
  0x92   : > { %v537_v61 = vld [vmem:[%s9618_s17 + $0x5c0] sm:$0xff]  ;;  %6585 = vmatprep.mubr.bf16.mxu0 %v9673_v59  ;;  %v8214_v1 = vcombine.high %v409_v57, %v413_v58  ;;  %v8213_v7 = vcombine.low %v409_v57, %v413_v58  ;;  %6607 = vmatpush1.bf16.msra.mxu1 %v8333_v0 }
  0x93   : > { %v541_v62 = vld [vmem:[%s9618_s17 + $0x5e0] sm:$0xff] }
  0x94   : > { %v8342_v2 = vcombine.high %v537_v61, %v541_v62  ;;  %v417_v3 = vld [vmem:[%s9618_s17 + $0x200] sm:$0xff]  ;;  %6567 = vmatprep.subr.bf16.mxu0 %v8214_v1  ;;  %v8341_v8 = vcombine.low %v537_v61, %v541_v62 }
  0x95   : > { %v421_v4 = vld [vmem:[%s9618_s17 + $0x220] sm:$0xff]  ;;  %6568 = vmatpush1.bf16.msra.mxu0 %v8213_v7 }
  0x96   : > { %v545_v5 = vld [vmem:[%s9618_s17 + $0x600] sm:$0xff]  ;;  %v8222_v9 = vcombine.high %v417_v3, %v421_v4  ;;  %6608 = vmatprep.subr.bf16.mxu1 %v8342_v2  ;;  %v8221_v15 = vcombine.low %v417_v3, %v421_v4 }
  0x97   : > { %v549_v6 = vld [vmem:[%s9618_s17 + $0x620] sm:$0xff]  ;;  %6609 = vmatpush1.bf16.msra.mxu1 %v8341_v8 }
  0x98   : > { %v8350_v10 = vcombine.high %v545_v5, %v549_v6  ;;  %v425_v11 = vld [vmem:[%s9618_s17 + $0x240] sm:$0xff]  ;;  %6569 = vmatprep.subr.bf16.mxu0 %v8222_v9  ;;  %v8349_v16 = vcombine.low %v545_v5, %v549_v6 }
  0x99   : > { %v429_v12 = vld [vmem:[%s9618_s17 + $0x260] sm:$0xff]  ;;  %6570 = vmatpush1.bf16.msra.mxu0 %v8221_v15 }
  0x9a   : > { %v553_v13 = vld [vmem:[%s9618_s17 + $0x640] sm:$0xff]  ;;  %v8230_v17 = vcombine.high %v425_v11, %v429_v12  ;;  %6610 = vmatprep.subr.bf16.mxu1 %v8350_v10  ;;  %v8229_v23 = vcombine.low %v425_v11, %v429_v12 }
  0x9b   : > { %v557_v14 = vld [vmem:[%s9618_s17 + $0x660] sm:$0xff]  ;;  %6611 = vmatpush1.bf16.msra.mxu1 %v8349_v16 }
  0x9c   : > { %v8358_v18 = vcombine.high %v553_v13, %v557_v14  ;;  %v433_v19 = vld [vmem:[%s9618_s17 + $0x280] sm:$0xff]  ;;  %6571 = vmatprep.subr.bf16.mxu0 %v8230_v17  ;;  %v8357_v24 = vcombine.low %v553_v13, %v557_v14  ;;  %v9723_v17 = vcombine.low %v9664_v54, %v9664_v54 }
  0x9d   : > { %v437_v20 = vld [vmem:[%s9618_s17 + $0x2a0] sm:$0xff]  ;;  %6572 = vmatpush1.bf16.msra.mxu0 %v8229_v23  ;;  %v9735_v23 = vld [vmem:[%s9632_s14 + $0x18] sm:$0xff] }
  0x9e   : > { %v561_v21 = vld [vmem:[%s9618_s17 + $0x680] sm:$0xff]  ;;  %v8238_v25 = vcombine.high %v433_v19, %v437_v20  ;;  %6612 = vmatprep.subr.bf16.mxu1 %v8358_v18  ;;  %v8237_v31 = vcombine.low %v433_v19, %v437_v20  ;;  %v9728_v20 = vld [vmem:[%s9632_s14 + $0x10] sm:$0xff] }
  0x9f   : > { %v565_v22 = vld [vmem:[%s9618_s17 + $0x6a0] sm:$0xff]  ;;  %6613 = vmatpush1.bf16.msra.mxu1 %v8357_v24 }
  0xa0   : > { %v8366_v26 = vcombine.high %v561_v21, %v565_v22  ;;  %v441_v27 = vld [vmem:[%s9618_s17 + $0x2c0] sm:$0xff]  ;;  %6573 = vmatprep.subr.bf16.mxu0 %v8238_v25  ;;  %v8365_v32 = vcombine.low %v561_v21, %v565_v22  ;;  %v9732_v21 = vcombine.low %v9667_v55, %v9667_v55 }
  0xa1   : > { %v445_v28 = vld [vmem:[%s9618_s17 + $0x2e0] sm:$0xff]  ;;  %6574 = vmatpush1.bf16.msra.mxu0 %v8237_v31 }
  0xa2   : > { %v569_v29 = vld [vmem:[%s9618_s17 + $0x6c0] sm:$0xff]  ;;  %v8246_v33 = vcombine.high %v441_v27, %v445_v28  ;;  %6614 = vmatprep.subr.bf16.mxu1 %v8366_v26  ;;  %v8245_v39 = vcombine.low %v441_v27, %v445_v28  ;;  %v9741_v28 = vcombine.high %v9728_v20, %v9728_v20 }
  0xa3   : > { %v573_v30 = vld [vmem:[%s9618_s17 + $0x6e0] sm:$0xff]  ;;  %6615 = vmatpush1.bf16.msra.mxu1 %v8365_v32 }
  0xa4   : > { %v8374_v34 = vcombine.high %v569_v29, %v573_v30  ;;  %v449_v35 = vld [vmem:[%s9618_s17 + $0x300] sm:$0xff]  ;;  %6575 = vmatprep.subr.bf16.mxu0 %v8246_v33  ;;  %v8373_v40 = vcombine.low %v569_v29, %v573_v30  ;;  %v9748_v30 = vcombine.high %v9735_v23, %v9735_v23 }
  0xa5   : > { %v453_v36 = vld [vmem:[%s9618_s17 + $0x320] sm:$0xff]  ;;  %6576 = vmatpush1.bf16.msra.mxu0 %v8245_v39 }
  0xa6   : > { %v577_v37 = vld [vmem:[%s9618_s17 + $0x700] sm:$0xff]  ;;  %v8254_v41 = vcombine.high %v449_v35, %v453_v36  ;;  %6616 = vmatprep.subr.bf16.mxu1 %v8374_v34  ;;  %v8253_v47 = vcombine.low %v449_v35, %v453_v36 }
  0xa7   : > { %v581_v38 = vld [vmem:[%s9618_s17 + $0x720] sm:$0xff]  ;;  %6617 = vmatpush1.bf16.msra.mxu1 %v8373_v40 }
  0xa8   : > { %v8382_v42 = vcombine.high %v577_v37, %v581_v38  ;;  %v457_v43 = vld [vmem:[%s9618_s17 + $0x340] sm:$0xff]  ;;  %6577 = vmatprep.subr.bf16.mxu0 %v8254_v41  ;;  %v8381_v48 = vcombine.low %v577_v37, %v581_v38 }
  0xa9   : > { %v461_v44 = vld [vmem:[%s9618_s17 + $0x360] sm:$0xff]  ;;  %6578 = vmatpush1.bf16.msra.mxu0 %v8253_v47 }
  0xaa   : > { %v585_v45 = vld [vmem:[%s9618_s17 + $0x740] sm:$0xff]  ;;  %v8262_v49 = vcombine.high %v457_v43, %v461_v44  ;;  %6618 = vmatprep.subr.bf16.mxu1 %v8382_v42  ;;  %v8261_v57 = vcombine.low %v457_v43, %v461_v44 }
  0xab   : > { %v589_v46 = vld [vmem:[%s9618_s17 + $0x760] sm:$0xff]  ;;  %6619 = vmatpush1.bf16.msra.mxu1 %v8381_v48 }
  0xac   : > { %v8390_v50 = vcombine.high %v585_v45, %v589_v46  ;;  %v465_v51 = vld [vmem:[%s9618_s17 + $0x380] sm:$0xff]  ;;  %6579 = vmatprep.subr.bf16.mxu0 %v8262_v49  ;;  %v8389_v58 = vcombine.low %v585_v45, %v589_v46 }
  0xad   : > { %v469_v52 = vld [vmem:[%s9618_s17 + $0x3a0] sm:$0xff]  ;;  %6580 = vmatpush1.bf16.msra.mxu0 %v8261_v57 }
  0xae   : > { %v593_v53 = vld [vmem:[%s9618_s17 + $0x780] sm:$0xff]  ;;  %v8270_v61 = vcombine.high %v465_v51, %v469_v52  ;;  %6620 = vmatprep.subr.bf16.mxu1 %v8390_v50  ;;  %v8269_v3 = vcombine.low %v465_v51, %v469_v52 }
  0xaf   : > { %v597_v56 = vld [vmem:[%s9618_s17 + $0x7a0] sm:$0xff]  ;;  %6621 = vmatpush1.bf16.msra.mxu1 %v8389_v58 }
  0xb0   : > { %v8398_v62 = vcombine.high %v593_v53, %v597_v56  ;;  %v473_v63 = vld [vmem:[%s9618_s17 + $0x3c0] sm:$0xff]  ;;  %6581 = vmatprep.subr.bf16.mxu0 %v8270_v61  ;;  %v8397_v4 = vcombine.low %v593_v53, %v597_v56 }
  0xb1   : > { %v477_v0 = vld [vmem:[%s9618_s17 + $0x3e0] sm:$0xff]  ;;  %6582 = vmatpush1.bf16.msra.mxu0 %v8269_v3 }
  0xb2   : > { %v601_v1 = vld [vmem:[%s9618_s17 + $0x7c0] sm:$0xff]  ;;  %v8278_v5 = vcombine.high %v473_v63, %v477_v0  ;;  %6622 = vmatprep.subr.bf16.mxu1 %v8398_v62  ;;  %v8277_v11 = vcombine.low %v473_v63, %v477_v0 }
  0xb3   : > { %v605_v2 = vld [vmem:[%s9618_s17 + $0x7e0] sm:$0xff]  ;;  %6623 = vmatpush1.bf16.msra.mxu1 %v8397_v4 }
  0xb4   : > { %v8406_v6 = vcombine.high %v601_v1, %v605_v2  ;;  %v609_v7 = vld [vmem:[%s9618_s17 + $0x800] sm:$0xff]  ;;  %6583 = vmatprep.subr.bf16.mxu0 %v8278_v5  ;;  %v8405_v12 = vcombine.low %v601_v1, %v605_v2 }
  0xb5   : > { %v613_v8 = vld [vmem:[%s9618_s17 + $0x820] sm:$0xff]  ;;  %6584 = vmatpush1.bf16.msra.mxu0 %v8277_v11 }
  0xb6   : > { %v737_v9 = vld [vmem:[%s9618_s17 + $0xc00] sm:$0xff]  ;;  %v8414_v13 = vcombine.high %v609_v7, %v613_v8  ;;  %6624 = vmatprep.subr.bf16.mxu1 %v8406_v6  ;;  %v8413_v22 = vcombine.low %v609_v7, %v613_v8 }
  0xb7   : > { %v741_v10 = vld [vmem:[%s9618_s17 + $0xc20] sm:$0xff]  ;;  %6625 = vmatpush1.bf16.msra.mxu1 %v8405_v12 }
  0xb8   : > { %v8542_v14 = vcombine.high %v737_v9, %v741_v10  ;;  %v617_v15 = vld [vmem:[%s9618_s17 + $0x840] sm:$0xff]  ;;  %6635 = vmatprep.subr.bf16.mxu0 %v8414_v13  ;;  %v8541_v24 = vcombine.low %v737_v9, %v741_v10  ;;  %6586 = vmatmul.mubr.bf16.vlgmr.msra.gmra.mrb[0].mxu0 %v9723_v17 }
  0xb9   : > { %v621_v16 = vld [vmem:[%s9618_s17 + $0x860] sm:$0xff]  ;;  %6636 = vmatpush1.bf16.msra.mxu0 %v8413_v22  ;;  %6667 = vmatprep.mubr.bf16.mxu0 %v9741_v28 }
  0xba   : > { %v745_v18 = vld [vmem:[%s9618_s17 + $0xc40] sm:$0xff]  ;;  %v8422_v25 = vcombine.high %v617_v15, %v621_v16  ;;  %6676 = vmatprep.subr.bf16.mxu1 %v8542_v14  ;;  %6627 = vmatmul.mubr.bf16.vlgmr.msra.gmra.mrb[0].mxu1 %v9732_v21  ;;  %v8421_v31 = vcombine.low %v617_v15, %v621_v16 }
  0xbb   : > { %v749_v19 = vld [vmem:[%s9618_s17 + $0xc60] sm:$0xff]  ;;  %6677 = vmatpush1.bf16.msra.mxu1 %v8541_v24  ;;  %6708 = vmatprep.mubr.bf16.mxu1 %v9748_v30 }
  0xbc   : > { %v8550_v54 = vcombine.high %v745_v18, %v749_v19  ;;  %v625_v26 = vld [vmem:[%s9618_s17 + $0x880] sm:$0xff]  ;;  %6637 = vmatprep.subr.bf16.mxu0 %v8422_v25  ;;  %v8549_v32 = vcombine.low %v745_v18, %v749_v19 }
  0xbd   : > { %v629_v27 = vld [vmem:[%s9618_s17 + $0x8a0] sm:$0xff]  ;;  %6638 = vmatpush1.bf16.msra.mxu0 %v8421_v31 }
  0xbe   : > { %v753_v55 = vld [vmem:[%s9618_s17 + $0xc80] sm:$0xff]  ;;  %v8430_v33 = vcombine.high %v625_v26, %v629_v27  ;;  %6678 = vmatprep.subr.bf16.mxu1 %v8550_v54  ;;  %v8429_v39 = vcombine.low %v625_v26, %v629_v27 }
  0xbf   : > { %v757_v29 = vld [vmem:[%s9618_s17 + $0xca0] sm:$0xff]  ;;  %6679 = vmatpush1.bf16.msra.mxu1 %v8549_v32 }
  0xc0   : > { %v8558_v34 = vcombine.high %v753_v55, %v757_v29  ;;  %v633_v35 = vld [vmem:[%s9618_s17 + $0x8c0] sm:$0xff]  ;;  %6639 = vmatprep.subr.bf16.mxu0 %v8430_v33  ;;  %v8557_v40 = vcombine.low %v753_v55, %v757_v29 }
  0xc1   : > { %v637_v36 = vld [vmem:[%s9618_s17 + $0x8e0] sm:$0xff]  ;;  %6640 = vmatpush1.bf16.msra.mxu0 %v8429_v39 }
  0xc2   : > { %v761_v37 = vld [vmem:[%s9618_s17 + $0xcc0] sm:$0xff]  ;;  %v8438_v41 = vcombine.high %v633_v35, %v637_v36  ;;  %6680 = vmatprep.subr.bf16.mxu1 %v8558_v34  ;;  %v8437_v47 = vcombine.low %v633_v35, %v637_v36 }
  0xc3   : > { %v765_v38 = vld [vmem:[%s9618_s17 + $0xce0] sm:$0xff]  ;;  %6681 = vmatpush1.bf16.msra.mxu1 %v8557_v40 }
  0xc4   : > { %v8566_v42 = vcombine.high %v761_v37, %v765_v38  ;;  %v641_v43 = vld [vmem:[%s9618_s17 + $0x900] sm:$0xff]  ;;  %6641 = vmatprep.subr.bf16.mxu0 %v8438_v41  ;;  %v8565_v48 = vcombine.low %v761_v37, %v765_v38 }
  0xc5   : > { %v645_v44 = vld [vmem:[%s9618_s17 + $0x920] sm:$0xff]  ;;  %6642 = vmatpush1.bf16.msra.mxu0 %v8437_v47 }
  0xc6   : > { %v769_v45 = vld [vmem:[%s9618_s17 + $0xd00] sm:$0xff]  ;;  %v8446_v49 = vcombine.high %v641_v43, %v645_v44  ;;  %6682 = vmatprep.subr.bf16.mxu1 %v8566_v42  ;;  %v8445_v57 = vcombine.low %v641_v43, %v645_v44 }
  0xc7   : > { %v773_v46 = vld [vmem:[%s9618_s17 + $0xd20] sm:$0xff]  ;;  %6683 = vmatpush1.bf16.msra.mxu1 %v8565_v48 }
  0xc8   : > { %v8574_v50 = vcombine.high %v769_v45, %v773_v46  ;;  %v649_v51 = vld [vmem:[%s9618_s17 + $0x940] sm:$0xff]  ;;  %6643 = vmatprep.subr.bf16.mxu0 %v8446_v49  ;;  %v8573_v58 = vcombine.low %v769_v45, %v773_v46 }
  0xc9   : > { %v653_v52 = vld [vmem:[%s9618_s17 + $0x960] sm:$0xff]  ;;  %6644 = vmatpush1.bf16.msra.mxu0 %v8445_v57 }
  0xca   : > { %v777_v53 = vld [vmem:[%s9618_s17 + $0xd40] sm:$0xff]  ;;  %v8454_v61 = vcombine.high %v649_v51, %v653_v52  ;;  %6684 = vmatprep.subr.bf16.mxu1 %v8574_v50  ;;  %v8453_v3 = vcombine.low %v649_v51, %v653_v52 }
  0xcb   : > { %v781_v56 = vld [vmem:[%s9618_s17 + $0xd60] sm:$0xff]  ;;  %6685 = vmatpush1.bf16.msra.mxu1 %v8573_v58 }
  0xcc   : > { %v8582_v62 = vcombine.high %v777_v53, %v781_v56  ;;  %v657_v63 = vld [vmem:[%s9618_s17 + $0x980] sm:$0xff]  ;;  %6645 = vmatprep.subr.bf16.mxu0 %v8454_v61  ;;  %v8581_v4 = vcombine.low %v777_v53, %v781_v56 }
  0xcd   : > { %v661_v0 = vld [vmem:[%s9618_s17 + $0x9a0] sm:$0xff]  ;;  %6646 = vmatpush1.bf16.msra.mxu0 %v8453_v3 }
  0xce   : > { %v785_v1 = vld [vmem:[%s9618_s17 + $0xd80] sm:$0xff]  ;;  %v8462_v5 = vcombine.high %v657_v63, %v661_v0  ;;  %6686 = vmatprep.subr.bf16.mxu1 %v8582_v62  ;;  %v8461_v11 = vcombine.low %v657_v63, %v661_v0 }
  0xcf   : > { %v789_v2 = vld [vmem:[%s9618_s17 + $0xda0] sm:$0xff]  ;;  %6687 = vmatpush1.bf16.msra.mxu1 %v8581_v4 }
  0xd0   : > { %v8590_v6 = vcombine.high %v785_v1, %v789_v2  ;;  %v665_v7 = vld [vmem:[%s9618_s17 + $0x9c0] sm:$0xff]  ;;  %6647 = vmatprep.subr.bf16.mxu0 %v8462_v5  ;;  %v8589_v12 = vcombine.low %v785_v1, %v789_v2 }
  0xd1   : > { %v669_v8 = vld [vmem:[%s9618_s17 + $0x9e0] sm:$0xff]  ;;  %6648 = vmatpush1.bf16.msra.mxu0 %v8461_v11 }
  0xd2   : > { %v793_v9 = vld [vmem:[%s9618_s17 + $0xdc0] sm:$0xff]  ;;  %v8470_v13 = vcombine.high %v665_v7, %v669_v8  ;;  %6688 = vmatprep.subr.bf16.mxu1 %v8590_v6  ;;  %v8469_v22 = vcombine.low %v665_v7, %v669_v8 }
  0xd3   : > { %v797_v10 = vld [vmem:[%s9618_s17 + $0xde0] sm:$0xff]  ;;  %6689 = vmatpush1.bf16.msra.mxu1 %v8589_v12 }
  0xd4   : > { %v8598_v14 = vcombine.high %v793_v9, %v797_v10  ;;  %v673_v15 = vld [vmem:[%s9618_s17 + $0xa00] sm:$0xff]  ;;  %6649 = vmatprep.subr.bf16.mxu0 %v8470_v13  ;;  %v8597_v24 = vcombine.low %v793_v9, %v797_v10 }
  0xd5   : > { %v677_v16 = vld [vmem:[%s9618_s17 + $0xa20] sm:$0xff]  ;;  %6650 = vmatpush1.bf16.msra.mxu0 %v8469_v22 }
  0xd6   : > { %v801_v18 = vld [vmem:[%s9618_s17 + $0xe00] sm:$0xff]  ;;  %v8478_v25 = vcombine.high %v673_v15, %v677_v16  ;;  %6690 = vmatprep.subr.bf16.mxu1 %v8598_v14  ;;  %v8477_v31 = vcombine.low %v673_v15, %v677_v16 }
  0xd7   : > { %v805_v19 = vld [vmem:[%s9618_s17 + $0xe20] sm:$0xff]  ;;  %6691 = vmatpush1.bf16.msra.mxu1 %v8597_v24 }
  0xd8   : > { %v8606_v54 = vcombine.high %v801_v18, %v805_v19  ;;  %v681_v26 = vld [vmem:[%s9618_s17 + $0xa40] sm:$0xff]  ;;  %6651 = vmatprep.subr.bf16.mxu0 %v8478_v25  ;;  %v8605_v32 = vcombine.low %v801_v18, %v805_v19 }
  0xd9   : > { %v685_v27 = vld [vmem:[%s9618_s17 + $0xa60] sm:$0xff]  ;;  %6652 = vmatpush1.bf16.msra.mxu0 %v8477_v31 }
  0xda   : > { %v809_v55 = vld [vmem:[%s9618_s17 + $0xe40] sm:$0xff]  ;;  %v8486_v33 = vcombine.high %v681_v26, %v685_v27  ;;  %6692 = vmatprep.subr.bf16.mxu1 %v8606_v54  ;;  %v8485_v39 = vcombine.low %v681_v26, %v685_v27 }
  0xdb   : > { %v813_v29 = vld [vmem:[%s9618_s17 + $0xe60] sm:$0xff]  ;;  %6693 = vmatpush1.bf16.msra.mxu1 %v8605_v32 }
  0xdc   : > { %v8614_v34 = vcombine.high %v809_v55, %v813_v29  ;;  %v689_v35 = vld [vmem:[%s9618_s17 + $0xa80] sm:$0xff]  ;;  %6653 = vmatprep.subr.bf16.mxu0 %v8486_v33  ;;  %v8613_v40 = vcombine.low %v809_v55, %v813_v29 }
  0xdd   : > { %v693_v36 = vld [vmem:[%s9618_s17 + $0xaa0] sm:$0xff]  ;;  %6654 = vmatpush1.bf16.msra.mxu0 %v8485_v39 }
  0xde   : > { %v817_v37 = vld [vmem:[%s9618_s17 + $0xe80] sm:$0xff]  ;;  %v8494_v41 = vcombine.high %v689_v35, %v693_v36  ;;  %6694 = vmatprep.subr.bf16.mxu1 %v8614_v34  ;;  %v8493_v47 = vcombine.low %v689_v35, %v693_v36 }
  0xdf   : > { %v821_v38 = vld [vmem:[%s9618_s17 + $0xea0] sm:$0xff]  ;;  %6695 = vmatpush1.bf16.msra.mxu1 %v8613_v40 }
  0xe0   : > { %v8622_v42 = vcombine.high %v817_v37, %v821_v38  ;;  %v697_v43 = vld [vmem:[%s9618_s17 + $0xac0] sm:$0xff]  ;;  %6655 = vmatprep.subr.bf16.mxu0 %v8494_v41  ;;  %v8621_v48 = vcombine.low %v817_v37, %v821_v38  ;;  %v9813_v37 = vcombine.low %v9728_v20, %v9728_v20  ;;  %v9822_v41 = vcombine.low %v9735_v23, %v9735_v23 }
  0xe1   : > { %v701_v44 = vld [vmem:[%s9618_s17 + $0xae0] sm:$0xff]  ;;  %6656 = vmatpush1.bf16.msra.mxu0 %v8493_v47 }
  0xe2   : > { %v825_v45 = vld [vmem:[%s9618_s17 + $0xec0] sm:$0xff]  ;;  %v8502_v49 = vcombine.high %v697_v43, %v701_v44  ;;  %6696 = vmatprep.subr.bf16.mxu1 %v8622_v42  ;;  %v8501_v57 = vcombine.low %v697_v43, %v701_v44  ;;  %v9825_v43 = vld [vmem:[%s9632_s14 + $0x28] sm:$0xff] }
  0xe3   : > { %v829_v46 = vld [vmem:[%s9618_s17 + $0xee0] sm:$0xff]  ;;  %6697 = vmatpush1.bf16.msra.mxu1 %v8621_v48 }
  0xe4   : > { %v8630_v50 = vcombine.high %v825_v45, %v829_v46  ;;  %v705_v51 = vld [vmem:[%s9618_s17 + $0xb00] sm:$0xff]  ;;  %6657 = vmatprep.subr.bf16.mxu0 %v8502_v49  ;;  %v8629_v58 = vcombine.low %v825_v45, %v829_v46 }
  0xe5   : > { %v709_v52 = vld [vmem:[%s9618_s17 + $0xb20] sm:$0xff]  ;;  %6658 = vmatpush1.bf16.msra.mxu0 %v8501_v57 }
  0xe6   : > { %v833_v53 = vld [vmem:[%s9618_s17 + $0xf00] sm:$0xff]  ;;  %v8510_v61 = vcombine.high %v705_v51, %v709_v52  ;;  %6698 = vmatprep.subr.bf16.mxu1 %v8630_v50  ;;  %v8509_v3 = vcombine.low %v705_v51, %v709_v52  ;;  %v9838_v50 = vcombine.high %v9825_v43, %v9825_v43 }
  0xe7   : > { %v837_v56 = vld [vmem:[%s9618_s17 + $0xf20] sm:$0xff]  ;;  %6699 = vmatpush1.bf16.msra.mxu1 %v8629_v58 }
  0xe8   : > { %v8638_v62 = vcombine.high %v833_v53, %v837_v56  ;;  %v713_v63 = vld [vmem:[%s9618_s17 + $0xb40] sm:$0xff]  ;;  %6659 = vmatprep.subr.bf16.mxu0 %v8510_v61  ;;  %v8637_v4 = vcombine.low %v833_v53, %v837_v56 }
  0xe9   : > { %v717_v0 = vld [vmem:[%s9618_s17 + $0xb60] sm:$0xff]  ;;  %6660 = vmatpush1.bf16.msra.mxu0 %v8509_v3 }
  0xea   : > { %v841_v1 = vld [vmem:[%s9618_s17 + $0xf40] sm:$0xff]  ;;  %v8518_v5 = vcombine.high %v713_v63, %v717_v0  ;;  %6700 = vmatprep.subr.bf16.mxu1 %v8638_v62  ;;  %v8517_v11 = vcombine.low %v713_v63, %v717_v0 }
  0xeb   : > { %v845_v2 = vld [vmem:[%s9618_s17 + $0xf60] sm:$0xff]  ;;  %6701 = vmatpush1.bf16.msra.mxu1 %v8637_v4 }
  0xec   : > { %v8646_v6 = vcombine.high %v841_v1, %v845_v2  ;;  %v721_v7 = vld [vmem:[%s9618_s17 + $0xb80] sm:$0xff]  ;;  %6661 = vmatprep.subr.bf16.mxu0 %v8518_v5  ;;  %v8645_v12 = vcombine.low %v841_v1, %v845_v2 }
  0xed   : > { %v725_v8 = vld [vmem:[%s9618_s17 + $0xba0] sm:$0xff]  ;;  %6662 = vmatpush1.bf16.msra.mxu0 %v8517_v11 }
  0xee   : > { %v849_v9 = vld [vmem:[%s9618_s17 + $0xf80] sm:$0xff]  ;;  %v8526_v13 = vcombine.high %v721_v7, %v725_v8  ;;  %6702 = vmatprep.subr.bf16.mxu1 %v8646_v6  ;;  %v8525_v22 = vcombine.low %v721_v7, %v725_v8 }
  0xef   : > { %v853_v10 = vld [vmem:[%s9618_s17 + $0xfa0] sm:$0xff]  ;;  %6703 = vmatpush1.bf16.msra.mxu1 %v8645_v12 }
  0xf0   : > { %v8654_v14 = vcombine.high %v849_v9, %v853_v10  ;;  %v729_v15 = vld [vmem:[%s9618_s17 + $0xbc0] sm:$0xff]  ;;  %6663 = vmatprep.subr.bf16.mxu0 %v8526_v13  ;;  %v8653_v24 = vcombine.low %v849_v9, %v853_v10 }
  0xf1   : > { %v733_v16 = vld [vmem:[%s9618_s17 + $0xbe0] sm:$0xff]  ;;  %6664 = vmatpush1.bf16.msra.mxu0 %v8525_v22 }
  0xf2   : > { %v857_v18 = vld [vmem:[%s9618_s17 + $0xfc0] sm:$0xff]  ;;  %v8534_v25 = vcombine.high %v729_v15, %v733_v16  ;;  %6704 = vmatprep.subr.bf16.mxu1 %v8654_v14  ;;  %v8533_v31 = vcombine.low %v729_v15, %v733_v16 }
  0xf3   : > { %v861_v19 = vld [vmem:[%s9618_s17 + $0xfe0] sm:$0xff]  ;;  %6705 = vmatpush1.bf16.msra.mxu1 %v8653_v24 }
  0xf4   : > { %v8662_v54 = vcombine.high %v857_v18, %v861_v19  ;;  %v865_v26 = vld [vmem:[%s9618_s17 + $0x1000] sm:$0xff]  ;;  %6665 = vmatprep.subr.bf16.mxu0 %v8534_v25  ;;  %v8661_v32 = vcombine.low %v857_v18, %v861_v19 }
  0xf5   : > { %v869_v27 = vld [vmem:[%s9618_s17 + $0x1020] sm:$0xff]  ;;  %6666 = vmatpush1.bf16.msra.mxu0 %v8533_v31 }
  0xf6   : > { %v993_v55 = vld [vmem:[%s9618_s17 + $0x1400] sm:$0xff]  ;;  %v8670_v33 = vcombine.high %v865_v26, %v869_v27  ;;  %6706 = vmatprep.subr.bf16.mxu1 %v8662_v54  ;;  %v8669_v42 = vcombine.low %v865_v26, %v869_v27 }
  0xf7   : > { %v997_v29 = vld [vmem:[%s9618_s17 + $0x1420] sm:$0xff]  ;;  %6707 = vmatpush1.bf16.msra.mxu1 %v8661_v32 }
  0xf8   : > { %v8798_v34 = vcombine.high %v993_v55, %v997_v29  ;;  %v873_v35 = vld [vmem:[%s9618_s17 + $0x1040] sm:$0xff]  ;;  %6717 = vmatprep.subr.bf16.mxu0 %v8670_v33  ;;  %v8797_v44 = vcombine.low %v993_v55, %v997_v29  ;;  %6668 = vmatmul.mubr.bf16.vlgmr.msra.gmra.mrb[4].mxu0 %v9813_v37 }
  0xf9   : > { %v877_v36 = vld [vmem:[%s9618_s17 + $0x1060] sm:$0xff]  ;;  %6718 = vmatpush1.bf16.msra.mxu0 %v8669_v42 }
  0xfa   : > { %v1001_v38 = vld [vmem:[%s9618_s17 + $0x1440] sm:$0xff]  ;;  %v8678_v45 = vcombine.high %v873_v35, %v877_v36  ;;  %6758 = vmatprep.subr.bf16.mxu1 %v8798_v34  ;;  %6709 = vmatmul.mubr.bf16.vlgmr.msra.gmra.mrb[4].mxu1 %v9822_v41  ;;  %v8677_v51 = vcombine.low %v873_v35, %v877_v36 }
  0xfb   : > { %v1005_v39 = vld [vmem:[%s9618_s17 + $0x1460] sm:$0xff]  ;;  %6759 = vmatpush1.bf16.msra.mxu1 %v8797_v44  ;;  %6790 = vmatprep.mubr.bf16.mxu1 %v9838_v50 }
  0xfc   : > { %v9818_v40 = vld [vmem:[%s9632_s14 + $0x20] sm:$0xff]  ;;  %v8806_v20 = vcombine.high %v1001_v38, %v1005_v39  ;;  %6719 = vmatprep.subr.bf16.mxu0 %v8678_v45  ;;  %v8805_v52 = vcombine.low %v1001_v38, %v1005_v39 }
  0xfd   : > { %v881_v46 = vld [vmem:[%s9618_s17 + $0x1080] sm:$0xff]  ;;  %v9831_v48 = vcombine.high %v9818_v40, %v9818_v40  ;;  %6720 = vmatpush1.bf16.msra.mxu0 %v8677_v51 }
  0xfe   : > { %v885_v47 = vld [vmem:[%s9618_s17 + $0x10a0] sm:$0xff]  ;;  %6760 = vmatprep.subr.bf16.mxu1 %v8806_v20 }
  0xff   : > { %v1009_v23 = vld [vmem:[%s9618_s17 + $0x1480] sm:$0xff]  ;;  %v8686_v53 = vcombine.high %v881_v46, %v885_v47  ;;  %6749 = vmatprep.mubr.bf16.mxu0 %v9831_v48  ;;  %v8685_v63 = vcombine.low %v881_v46, %v885_v47  ;;  %6761 = vmatpush1.bf16.msra.mxu1 %v8805_v52 }
 0x100   : > { %v1013_v49 = vld [vmem:[%s9618_s17 + $0x14a0] sm:$0xff] }
 0x101   : > { %v8814_v56 = vcombine.high %v1009_v23, %v1013_v49  ;;  %v889_v57 = vld [vmem:[%s9618_s17 + $0x10c0] sm:$0xff]  ;;  %6721 = vmatprep.subr.bf16.mxu0 %v8686_v53  ;;  %v8813_v0 = vcombine.low %v1009_v23, %v1013_v49 }
 0x102   : > { %v893_v58 = vld [vmem:[%s9618_s17 + $0x10e0] sm:$0xff]  ;;  %6722 = vmatpush1.bf16.msra.mxu0 %v8685_v63 }
 0x103   : > { %v1017_v61 = vld [vmem:[%s9618_s17 + $0x14c0] sm:$0xff]  ;;  %v8694_v1 = vcombine.high %v889_v57, %v893_v58  ;;  %6762 = vmatprep.subr.bf16.mxu1 %v8814_v56  ;;  %v8693_v7 = vcombine.low %v889_v57, %v893_v58 }
 0x104   : > { %v1021_v62 = vld [vmem:[%s9618_s17 + $0x14e0] sm:$0xff]  ;;  %6763 = vmatpush1.bf16.msra.mxu1 %v8813_v0 }
 0x105   : > { %v8822_v2 = vcombine.high %v1017_v61, %v1021_v62  ;;  %v897_v3 = vld [vmem:[%s9618_s17 + $0x1100] sm:$0xff]  ;;  %6723 = vmatprep.subr.bf16.mxu0 %v8694_v1  ;;  %v8821_v8 = vcombine.low %v1017_v61, %v1021_v62 }
 0x106   : > { %v901_v4 = vld [vmem:[%s9618_s17 + $0x1120] sm:$0xff]  ;;  %6724 = vmatpush1.bf16.msra.mxu0 %v8693_v7 }
 0x107   : > { %v1025_v5 = vld [vmem:[%s9618_s17 + $0x1500] sm:$0xff]  ;;  %v8702_v9 = vcombine.high %v897_v3, %v901_v4  ;;  %6764 = vmatprep.subr.bf16.mxu1 %v8822_v2  ;;  %v8701_v15 = vcombine.low %v897_v3, %v901_v4 }
 0x108   : > { %v1029_v6 = vld [vmem:[%s9618_s17 + $0x1520] sm:$0xff]  ;;  %6765 = vmatpush1.bf16.msra.mxu1 %v8821_v8 }
 0x109   : > { %v8830_v10 = vcombine.high %v1025_v5, %v1029_v6  ;;  %v905_v11 = vld [vmem:[%s9618_s17 + $0x1140] sm:$0xff]  ;;  %6725 = vmatprep.subr.bf16.mxu0 %v8702_v9  ;;  %v8829_v16 = vcombine.low %v1025_v5, %v1029_v6 }
 0x10a   : > { %v909_v12 = vld [vmem:[%s9618_s17 + $0x1160] sm:$0xff]  ;;  %6726 = vmatpush1.bf16.msra.mxu0 %v8701_v15 }
 0x10b   : > { %v1033_v13 = vld [vmem:[%s9618_s17 + $0x1540] sm:$0xff]  ;;  %v8710_v18 = vcombine.high %v905_v11, %v909_v12  ;;  %6766 = vmatprep.subr.bf16.mxu1 %v8830_v10  ;;  %v8709_v26 = vcombine.low %v905_v11, %v909_v12 }
 0x10c   : > { %v1037_v14 = vld [vmem:[%s9618_s17 + $0x1560] sm:$0xff]  ;;  %6767 = vmatpush1.bf16.msra.mxu1 %v8829_v16 }
 0x10d   : > { %v8838_v19 = vcombine.high %v1033_v13, %v1037_v14  ;;  %v913_v22 = vld [vmem:[%s9618_s17 + $0x1180] sm:$0xff]  ;;  %6727 = vmatprep.subr.bf16.mxu0 %v8710_v18  ;;  %v8837_v27 = vcombine.low %v1033_v13, %v1037_v14 }
 0x10e   : > { %v917_v24 = vld [vmem:[%s9618_s17 + $0x11a0] sm:$0xff]  ;;  %6728 = vmatpush1.bf16.msra.mxu0 %v8709_v26 }
 0x10f   : > { %v1041_v25 = vld [vmem:[%s9618_s17 + $0x1580] sm:$0xff]  ;;  %v8718_v55 = vcombine.high %v913_v22, %v917_v24  ;;  %6768 = vmatprep.subr.bf16.mxu1 %v8838_v19  ;;  %v8717_v35 = vcombine.low %v913_v22, %v917_v24 }
 0x110   : > { %v1045_v54 = vld [vmem:[%s9618_s17 + $0x15a0] sm:$0xff]  ;;  %6769 = vmatpush1.bf16.msra.mxu1 %v8837_v27 }
 0x111   : > { %v8846_v29 = vcombine.high %v1041_v25, %v1045_v54  ;;  %v921_v31 = vld [vmem:[%s9618_s17 + $0x11c0] sm:$0xff]  ;;  %6729 = vmatprep.subr.bf16.mxu0 %v8718_v55  ;;  %v8845_v36 = vcombine.low %v1041_v25, %v1045_v54 }
 0x112   : > { %v925_v32 = vld [vmem:[%s9618_s17 + $0x11e0] sm:$0xff]  ;;  %6730 = vmatpush1.bf16.msra.mxu0 %v8717_v35 }
 0x113   : > { %v1049_v33 = vld [vmem:[%s9618_s17 + $0x15c0] sm:$0xff]  ;;  %v8726_v38 = vcombine.high %v921_v31, %v925_v32  ;;  %6770 = vmatprep.subr.bf16.mxu1 %v8846_v29  ;;  %v8725_v46 = vcombine.low %v921_v31, %v925_v32 }
 0x114   : > { %v1053_v34 = vld [vmem:[%s9618_s17 + $0x15e0] sm:$0xff]  ;;  %6771 = vmatpush1.bf16.msra.mxu1 %v8845_v36 }
 0x115   : > { %v8854_v39 = vcombine.high %v1049_v33, %v1053_v34  ;;  %v929_v42 = vld [vmem:[%s9618_s17 + $0x1200] sm:$0xff]  ;;  %6731 = vmatprep.subr.bf16.mxu0 %v8726_v38  ;;  %v8853_v47 = vcombine.low %v1049_v33, %v1053_v34 }
 0x116   : > { %v933_v44 = vld [vmem:[%s9618_s17 + $0x1220] sm:$0xff]  ;;  %6732 = vmatpush1.bf16.msra.mxu0 %v8725_v46 }
 0x117   : > { %v1057_v45 = vld [vmem:[%s9618_s17 + $0x1600] sm:$0xff]  ;;  %v8734_v23 = vcombine.high %v929_v42, %v933_v44  ;;  %6772 = vmatprep.subr.bf16.mxu1 %v8854_v39  ;;  %v8733_v57 = vcombine.low %v929_v42, %v933_v44 }
 0x118   : > { %v1061_v20 = vld [vmem:[%s9618_s17 + $0x1620] sm:$0xff]  ;;  %6773 = vmatpush1.bf16.msra.mxu1 %v8853_v47 }
 0x119   : > { %v8862_v49 = vcombine.high %v1057_v45, %v1061_v20  ;;  %v937_v51 = vld [vmem:[%s9618_s17 + $0x1240] sm:$0xff]  ;;  %6733 = vmatprep.subr.bf16.mxu0 %v8734_v23  ;;  %v8861_v58 = vcombine.low %v1057_v45, %v1061_v20 }
 0x11a   : > { %v941_v52 = vld [vmem:[%s9618_s17 + $0x1260] sm:$0xff]  ;;  %6734 = vmatpush1.bf16.msra.mxu0 %v8733_v57 }
 0x11b   : > { %v1065_v53 = vld [vmem:[%s9618_s17 + $0x1640] sm:$0xff]  ;;  %v8742_v61 = vcombine.high %v937_v51, %v941_v52  ;;  %6774 = vmatprep.subr.bf16.mxu1 %v8862_v49  ;;  %v8741_v3 = vcombine.low %v937_v51, %v941_v52 }
 0x11c   : > { %v1069_v56 = vld [vmem:[%s9618_s17 + $0x1660] sm:$0xff]  ;;  %6775 = vmatpush1.bf16.msra.mxu1 %v8861_v58 }
 0x11d   : > { %v8870_v62 = vcombine.high %v1065_v53, %v1069_v56  ;;  %v945_v63 = vld [vmem:[%s9618_s17 + $0x1280] sm:$0xff]  ;;  %6735 = vmatprep.subr.bf16.mxu0 %v8742_v61  ;;  %v8869_v4 = vcombine.low %v1065_v53, %v1069_v56 }
 0x11e   : > { %v949_v0 = vld [vmem:[%s9618_s17 + $0x12a0] sm:$0xff]  ;;  %6736 = vmatpush1.bf16.msra.mxu0 %v8741_v3 }
 0x11f   : > { %v1073_v1 = vld [vmem:[%s9618_s17 + $0x1680] sm:$0xff]  ;;  %v8750_v5 = vcombine.high %v945_v63, %v949_v0  ;;  %6776 = vmatprep.subr.bf16.mxu1 %v8870_v62  ;;  %v8749_v11 = vcombine.low %v945_v63, %v949_v0 }
 0x120   : > { %v1077_v2 = vld [vmem:[%s9618_s17 + $0x16a0] sm:$0xff]  ;;  %6777 = vmatpush1.bf16.msra.mxu1 %v8869_v4 }
 0x121   : > { %v8878_v6 = vcombine.high %v1073_v1, %v1077_v2  ;;  %v953_v7 = vld [vmem:[%s9618_s17 + $0x12c0] sm:$0xff]  ;;  %6737 = vmatprep.subr.bf16.mxu0 %v8750_v5  ;;  %v8877_v12 = vcombine.low %v1073_v1, %v1077_v2  ;;  %v9903_v5 = vcombine.low %v9818_v40, %v9818_v40 }
 0x122   : > { %v957_v8 = vld [vmem:[%s9618_s17 + $0x12e0] sm:$0xff]  ;;  %6738 = vmatpush1.bf16.msra.mxu0 %v8749_v11  ;;  %v9915_v11 = vld [vmem:[%s9632_s14 + $0x38] sm:$0xff] }
 0x123   : > { %v1081_v9 = vld [vmem:[%s9618_s17 + $0x16c0] sm:$0xff]  ;;  %v8758_v13 = vcombine.high %v953_v7, %v957_v8  ;;  %6778 = vmatprep.subr.bf16.mxu1 %v8878_v6  ;;  %v8757_v22 = vcombine.low %v953_v7, %v957_v8  ;;  %v9908_v8 = vld [vmem:[%s9632_s14 + $0x30] sm:$0xff] }
 0x124   : > { %v1085_v10 = vld [vmem:[%s9618_s17 + $0x16e0] sm:$0xff]  ;;  %6779 = vmatpush1.bf16.msra.mxu1 %v8877_v12 }
 0x125   : > { %v8886_v14 = vcombine.high %v1081_v9, %v1085_v10  ;;  %v961_v15 = vld [vmem:[%s9618_s17 + $0x1300] sm:$0xff]  ;;  %6739 = vmatprep.subr.bf16.mxu0 %v8758_v13  ;;  %v8885_v24 = vcombine.low %v1081_v9, %v1085_v10  ;;  %v9912_v9 = vcombine.low %v9825_v43, %v9825_v43 }
 0x126   : > { %v965_v16 = vld [vmem:[%s9618_s17 + $0x1320] sm:$0xff]  ;;  %6740 = vmatpush1.bf16.msra.mxu0 %v8757_v22 }
 0x127   : > { %v1089_v18 = vld [vmem:[%s9618_s17 + $0x1700] sm:$0xff]  ;;  %v8766_v25 = vcombine.high %v961_v15, %v965_v16  ;;  %6780 = vmatprep.subr.bf16.mxu1 %v8886_v14  ;;  %v8765_v31 = vcombine.low %v961_v15, %v965_v16  ;;  %v9921_v16 = vcombine.high %v9908_v8, %v9908_v8 }
 0x128   : > { %v1093_v19 = vld [vmem:[%s9618_s17 + $0x1720] sm:$0xff]  ;;  %6781 = vmatpush1.bf16.msra.mxu1 %v8885_v24 }
 0x129   : > { %v8894_v54 = vcombine.high %v1089_v18, %v1093_v19  ;;  %v969_v26 = vld [vmem:[%s9618_s17 + $0x1340] sm:$0xff]  ;;  %6741 = vmatprep.subr.bf16.mxu0 %v8766_v25  ;;  %v8893_v32 = vcombine.low %v1089_v18, %v1093_v19  ;;  %v9928_v19 = vcombine.high %v9915_v11, %v9915_v11 }
 0x12a   : > { %v973_v27 = vld [vmem:[%s9618_s17 + $0x1360] sm:$0xff]  ;;  %6742 = vmatpush1.bf16.msra.mxu0 %v8765_v31 }
 0x12b   : > { %v1097_v55 = vld [vmem:[%s9618_s17 + $0x1740] sm:$0xff]  ;;  %v8774_v33 = vcombine.high %v969_v26, %v973_v27  ;;  %6782 = vmatprep.subr.bf16.mxu1 %v8894_v54  ;;  %v8773_v42 = vcombine.low %v969_v26, %v973_v27 }
 0x12c   : > { %v1101_v29 = vld [vmem:[%s9618_s17 + $0x1760] sm:$0xff]  ;;  %6783 = vmatpush1.bf16.msra.mxu1 %v8893_v32 }
 0x12d   : > { %v8902_v34 = vcombine.high %v1097_v55, %v1101_v29  ;;  %v977_v35 = vld [vmem:[%s9618_s17 + $0x1380] sm:$0xff]  ;;  %6743 = vmatprep.subr.bf16.mxu0 %v8774_v33  ;;  %v8901_v44 = vcombine.low %v1097_v55, %v1101_v29 }
 0x12e   : > { %v981_v36 = vld [vmem:[%s9618_s17 + $0x13a0] sm:$0xff]  ;;  %6744 = vmatpush1.bf16.msra.mxu0 %v8773_v42 }
 0x12f   : > { %v1105_v38 = vld [vmem:[%s9618_s17 + $0x1780] sm:$0xff]  ;;  %v8782_v45 = vcombine.high %v977_v35, %v981_v36  ;;  %6784 = vmatprep.subr.bf16.mxu1 %v8902_v34  ;;  %v8781_v51 = vcombine.low %v977_v35, %v981_v36 }
 0x130   : > { %v1109_v39 = vld [vmem:[%s9618_s17 + $0x17a0] sm:$0xff]  ;;  %6785 = vmatpush1.bf16.msra.mxu1 %v8901_v44 }
 0x131   : > { %v8910_v20 = vcombine.high %v1105_v38, %v1109_v39  ;;  %v985_v46 = vld [vmem:[%s9618_s17 + $0x13c0] sm:$0xff]  ;;  %6745 = vmatprep.subr.bf16.mxu0 %v8782_v45  ;;  %v8909_v52 = vcombine.low %v1105_v38, %v1109_v39 }
 0x132   : > { %v989_v47 = vld [vmem:[%s9618_s17 + $0x13e0] sm:$0xff]  ;;  %6746 = vmatpush1.bf16.msra.mxu0 %v8781_v51 }
 0x133   : > { %v1113_v23 = vld [vmem:[%s9618_s17 + $0x17c0] sm:$0xff]  ;;  %v8790_v53 = vcombine.high %v985_v46, %v989_v47  ;;  %6786 = vmatprep.subr.bf16.mxu1 %v8910_v20  ;;  %v8789_v63 = vcombine.low %v985_v46, %v989_v47 }
 0x134   : > { %v1117_v49 = vld [vmem:[%s9618_s17 + $0x17e0] sm:$0xff]  ;;  %6787 = vmatpush1.bf16.msra.mxu1 %v8909_v52 }
 0x135   : > { %v8918_v56 = vcombine.high %v1113_v23, %v1117_v49  ;;  %v1121_v57 = vld [vmem:[%s9618_s17 + $0x1800] sm:$0xff]  ;;  %6747 = vmatprep.subr.bf16.mxu0 %v8790_v53  ;;  %v8917_v0 = vcombine.low %v1113_v23, %v1117_v49 }
 0x136   : > { %v1125_v58 = vld [vmem:[%s9618_s17 + $0x1820] sm:$0xff]  ;;  %6748 = vmatpush1.bf16.msra.mxu0 %v8789_v63 }
 0x137   : > { %v1249_v61 = vld [vmem:[%s9618_s17 + $0x1c00] sm:$0xff]  ;;  %v8926_v1 = vcombine.high %v1121_v57, %v1125_v58  ;;  %6788 = vmatprep.subr.bf16.mxu1 %v8918_v56  ;;  %v8925_v10 = vcombine.low %v1121_v57, %v1125_v58 }
 0x138   : > { %v1253_v62 = vld [vmem:[%s9618_s17 + $0x1c20] sm:$0xff]  ;;  %6789 = vmatpush1.bf16.msra.mxu1 %v8917_v0 }
 0x139   : > { %v9054_v2 = vcombine.high %v1249_v61, %v1253_v62  ;;  %v1129_v3 = vld [vmem:[%s9618_s17 + $0x1840] sm:$0xff]  ;;  %6799 = vmatprep.subr.bf16.mxu0 %v8926_v1  ;;  %v9053_v12 = vcombine.low %v1249_v61, %v1253_v62  ;;  %6750 = vmatmul.mubr.bf16.vlgmr.msra.gmra.mrb[8].mxu0 %v9903_v5 }
 0x13a   : > { %v1133_v4 = vld [vmem:[%s9618_s17 + $0x1860] sm:$0xff]  ;;  %6800 = vmatpush1.bf16.msra.mxu0 %v8925_v10  ;;  %6831 = vmatprep.mubr.bf16.mxu0 %v9921_v16 }
 0x13b   : > { %v1257_v6 = vld [vmem:[%s9618_s17 + $0x1c40] sm:$0xff]  ;;  %v8934_v13 = vcombine.high %v1129_v3, %v1133_v4  ;;  %6840 = vmatprep.subr.bf16.mxu1 %v9054_v2  ;;  %6791 = vmatmul.mubr.bf16.vlgmr.msra.gmra.mrb[8].mxu1 %v9912_v9  ;;  %v8933_v22 = vcombine.low %v1129_v3, %v1133_v4 }
 0x13c   : > { %v1261_v7 = vld [vmem:[%s9618_s17 + $0x1c60] sm:$0xff]  ;;  %6841 = vmatpush1.bf16.msra.mxu1 %v9053_v12  ;;  %6872 = vmatprep.mubr.bf16.mxu1 %v9928_v19 }
 0x13d   : > { %v9062_v40 = vcombine.high %v1257_v6, %v1261_v7  ;;  %v1137_v14 = vld [vmem:[%s9618_s17 + $0x1880] sm:$0xff]  ;;  %6801 = vmatprep.subr.bf16.mxu0 %v8934_v13  ;;  %v9061_v24 = vcombine.low %v1257_v6, %v1261_v7 }
 0x13e   : > { %v1141_v15 = vld [vmem:[%s9618_s17 + $0x18a0] sm:$0xff]  ;;  %6802 = vmatpush1.bf16.msra.mxu0 %v8933_v22 }
 0x13f   : > { %v1265_v43 = vld [vmem:[%s9618_s17 + $0x1c80] sm:$0xff]  ;;  %v8942_v25 = vcombine.high %v1137_v14, %v1141_v15  ;;  %6842 = vmatprep.subr.bf16.mxu1 %v9062_v40  ;;  %v8941_v31 = vcombine.low %v1137_v14, %v1141_v15 }
 0x140   : > { %v1269_v18 = vld [vmem:[%s9618_s17 + $0x1ca0] sm:$0xff]  ;;  %6843 = vmatpush1.bf16.msra.mxu1 %v9061_v24 }
 0x141   : > { %v9070_v54 = vcombine.high %v1265_v43, %v1269_v18  ;;  %v1145_v26 = vld [vmem:[%s9618_s17 + $0x18c0] sm:$0xff]  ;;  %6803 = vmatprep.subr.bf16.mxu0 %v8942_v25  ;;  %v9069_v32 = vcombine.low %v1265_v43, %v1269_v18 }
 0x142   : > { %v1149_v27 = vld [vmem:[%s9618_s17 + $0x18e0] sm:$0xff]  ;;  %6804 = vmatpush1.bf16.msra.mxu0 %v8941_v31 }
 0x143   : > { %v1273_v55 = vld [vmem:[%s9618_s17 + $0x1cc0] sm:$0xff]  ;;  %v8950_v33 = vcombine.high %v1145_v26, %v1149_v27  ;;  %6844 = vmatprep.subr.bf16.mxu1 %v9070_v54  ;;  %v8949_v42 = vcombine.low %v1145_v26, %v1149_v27 }
 0x144   : > { %v1277_v29 = vld [vmem:[%s9618_s17 + $0x1ce0] sm:$0xff]  ;;  %6845 = vmatpush1.bf16.msra.mxu1 %v9069_v32 }
 0x145   : > { %v9078_v34 = vcombine.high %v1273_v55, %v1277_v29  ;;  %v1153_v35 = vld [vmem:[%s9618_s17 + $0x1900] sm:$0xff]  ;;  %6805 = vmatprep.subr.bf16.mxu0 %v8950_v33  ;;  %v9077_v44 = vcombine.low %v1273_v55, %v1277_v29 }
 0x146   : > { %v1157_v36 = vld [vmem:[%s9618_s17 + $0x1920] sm:$0xff]  ;;  %6806 = vmatpush1.bf16.msra.mxu0 %v8949_v42 }
 0x147   : > { %v1281_v38 = vld [vmem:[%s9618_s17 + $0x1d00] sm:$0xff]  ;;  %v8958_v45 = vcombine.high %v1153_v35, %v1157_v36  ;;  %6846 = vmatprep.subr.bf16.mxu1 %v9078_v34  ;;  %v8957_v51 = vcombine.low %v1153_v35, %v1157_v36 }
 0x148   : > { %v1285_v39 = vld [vmem:[%s9618_s17 + $0x1d20] sm:$0xff]  ;;  %6847 = vmatpush1.bf16.msra.mxu1 %v9077_v44 }
 0x149   : > { %v9086_v20 = vcombine.high %v1281_v38, %v1285_v39  ;;  %v1161_v46 = vld [vmem:[%s9618_s17 + $0x1940] sm:$0xff]  ;;  %6807 = vmatprep.subr.bf16.mxu0 %v8958_v45  ;;  %v9085_v52 = vcombine.low %v1281_v38, %v1285_v39 }
 0x14a   : > { %v1165_v47 = vld [vmem:[%s9618_s17 + $0x1960] sm:$0xff]  ;;  %6808 = vmatpush1.bf16.msra.mxu0 %v8957_v51 }
 0x14b   : > { %v1289_v23 = vld [vmem:[%s9618_s17 + $0x1d40] sm:$0xff]  ;;  %v8966_v53 = vcombine.high %v1161_v46, %v1165_v47  ;;  %6848 = vmatprep.subr.bf16.mxu1 %v9086_v20  ;;  %v8965_v63 = vcombine.low %v1161_v46, %v1165_v47 }
 0x14c   : > { %v1293_v49 = vld [vmem:[%s9618_s17 + $0x1d60] sm:$0xff]  ;;  %6849 = vmatpush1.bf16.msra.mxu1 %v9085_v52 }
 0x14d   : > { %v9094_v56 = vcombine.high %v1289_v23, %v1293_v49  ;;  %v1169_v57 = vld [vmem:[%s9618_s17 + $0x1980] sm:$0xff]  ;;  %6809 = vmatprep.subr.bf16.mxu0 %v8966_v53  ;;  %v9093_v0 = vcombine.low %v1289_v23, %v1293_v49 }
 0x14e   : > { %v1173_v58 = vld [vmem:[%s9618_s17 + $0x19a0] sm:$0xff]  ;;  %6810 = vmatpush1.bf16.msra.mxu0 %v8965_v63 }
 0x14f   : > { %v1297_v61 = vld [vmem:[%s9618_s17 + $0x1d80] sm:$0xff]  ;;  %v8974_v1 = vcombine.high %v1169_v57, %v1173_v58  ;;  %6850 = vmatprep.subr.bf16.mxu1 %v9094_v56  ;;  %v8973_v10 = vcombine.low %v1169_v57, %v1173_v58 }
 0x150   : > { %v1301_v62 = vld [vmem:[%s9618_s17 + $0x1da0] sm:$0xff]  ;;  %6851 = vmatpush1.bf16.msra.mxu1 %v9093_v0 }
 0x151   : > { %v9102_v2 = vcombine.high %v1297_v61, %v1301_v62  ;;  %v1177_v3 = vld [vmem:[%s9618_s17 + $0x19c0] sm:$0xff]  ;;  %6811 = vmatprep.subr.bf16.mxu0 %v8974_v1  ;;  %v9101_v12 = vcombine.low %v1297_v61, %v1301_v62 }
 0x152   : > { %v1181_v4 = vld [vmem:[%s9618_s17 + $0x19e0] sm:$0xff]  ;;  %6812 = vmatpush1.bf16.msra.mxu0 %v8973_v10 }
 0x153   : > { %v1305_v6 = vld [vmem:[%s9618_s17 + $0x1dc0] sm:$0xff]  ;;  %v8982_v13 = vcombine.high %v1177_v3, %v1181_v4  ;;  %6852 = vmatprep.subr.bf16.mxu1 %v9102_v2  ;;  %v8981_v22 = vcombine.low %v1177_v3, %v1181_v4 }
 0x154   : > { %v1309_v7 = vld [vmem:[%s9618_s17 + $0x1de0] sm:$0xff]  ;;  %6853 = vmatpush1.bf16.msra.mxu1 %v9101_v12 }
 0x155   : > { %v9110_v40 = vcombine.high %v1305_v6, %v1309_v7  ;;  %v1185_v14 = vld [vmem:[%s9618_s17 + $0x1a00] sm:$0xff]  ;;  %6813 = vmatprep.subr.bf16.mxu0 %v8982_v13  ;;  %v9109_v24 = vcombine.low %v1305_v6, %v1309_v7 }
 0x156   : > { %v1189_v15 = vld [vmem:[%s9618_s17 + $0x1a20] sm:$0xff]  ;;  %6814 = vmatpush1.bf16.msra.mxu0 %v8981_v22 }
 0x157   : > { %v1313_v43 = vld [vmem:[%s9618_s17 + $0x1e00] sm:$0xff]  ;;  %v8990_v25 = vcombine.high %v1185_v14, %v1189_v15  ;;  %6854 = vmatprep.subr.bf16.mxu1 %v9110_v40  ;;  %v8989_v31 = vcombine.low %v1185_v14, %v1189_v15 }
 0x158   : > { %v1317_v18 = vld [vmem:[%s9618_s17 + $0x1e20] sm:$0xff]  ;;  %6855 = vmatpush1.bf16.msra.mxu1 %v9109_v24 }
 0x159   : > { %v9118_v54 = vcombine.high %v1313_v43, %v1317_v18  ;;  %v1193_v26 = vld [vmem:[%s9618_s17 + $0x1a40] sm:$0xff]  ;;  %6815 = vmatprep.subr.bf16.mxu0 %v8990_v25  ;;  %v9117_v32 = vcombine.low %v1313_v43, %v1317_v18 }
 0x15a   : > { %v1197_v27 = vld [vmem:[%s9618_s17 + $0x1a60] sm:$0xff]  ;;  %6816 = vmatpush1.bf16.msra.mxu0 %v8989_v31 }
 0x15b   : > { %v1321_v55 = vld [vmem:[%s9618_s17 + $0x1e40] sm:$0xff]  ;;  %v8998_v33 = vcombine.high %v1193_v26, %v1197_v27  ;;  %6856 = vmatprep.subr.bf16.mxu1 %v9118_v54  ;;  %v8997_v42 = vcombine.low %v1193_v26, %v1197_v27 }
 0x15c   : > { %v1325_v29 = vld [vmem:[%s9618_s17 + $0x1e60] sm:$0xff]  ;;  %6857 = vmatpush1.bf16.msra.mxu1 %v9117_v32 }
 0x15d   : > { %v9126_v34 = vcombine.high %v1321_v55, %v1325_v29  ;;  %v1201_v35 = vld [vmem:[%s9618_s17 + $0x1a80] sm:$0xff]  ;;  %6817 = vmatprep.subr.bf16.mxu0 %v8998_v33  ;;  %v9125_v44 = vcombine.low %v1321_v55, %v1325_v29 }
 0x15e   : > { %v1205_v36 = vld [vmem:[%s9618_s17 + $0x1aa0] sm:$0xff]  ;;  %6818 = vmatpush1.bf16.msra.mxu0 %v8997_v42 }
 0x15f   : > { %v1329_v38 = vld [vmem:[%s9618_s17 + $0x1e80] sm:$0xff]  ;;  %v9006_v45 = vcombine.high %v1201_v35, %v1205_v36  ;;  %6858 = vmatprep.subr.bf16.mxu1 %v9126_v34  ;;  %v9005_v51 = vcombine.low %v1201_v35, %v1205_v36  ;;  %v354_v35 = vld [vmem:[%s9618_s17 + $0x8] sm:$0xff] }
 0x160   : > { %v1333_v39 = vld [vmem:[%s9618_s17 + $0x1ea0] sm:$0xff]  ;;  %6859 = vmatpush1.bf16.msra.mxu1 %v9125_v44  ;;  %v358_v36 = vld [vmem:[%s9618_s17 + $0x28] sm:$0xff] }
 0x161   : > { %v9134_v20 = vcombine.high %v1329_v38, %v1333_v39  ;;  %v1209_v46 = vld [vmem:[%s9618_s17 + $0x1ac0] sm:$0xff]  ;;  %6819 = vmatprep.subr.bf16.mxu0 %v9006_v45  ;;  %v9133_v52 = vcombine.low %v1329_v38, %v1333_v39  ;;  %v482_v38 = vld [vmem:[%s9618_s17 + $0x408] sm:$0xff]  ;;  %v8160_v45 = vcombine.high %v354_v35, %v358_v36 }
 0x162   : > { %v1213_v47 = vld [vmem:[%s9618_s17 + $0x1ae0] sm:$0xff]  ;;  %6820 = vmatpush1.bf16.msra.mxu0 %v9005_v51  ;;  %v486_v39 = vld [vmem:[%s9618_s17 + $0x428] sm:$0xff] }
 0x163   : > { %v1337_v23 = vld [vmem:[%s9618_s17 + $0x1ec0] sm:$0xff]  ;;  %v9014_v53 = vcombine.high %v1209_v46, %v1213_v47  ;;  %6860 = vmatprep.subr.bf16.mxu1 %v9134_v20  ;;  %v9013_v63 = vcombine.low %v1209_v46, %v1213_v47  ;;  %v8288_v20 = vcombine.high %v482_v38, %v486_v39  ;;  %v362_v46 = vld [vmem:[%s9618_s17 + $0x48] sm:$0xff] }
 0x164   : > { %v1341_v49 = vld [vmem:[%s9618_s17 + $0x1ee0] sm:$0xff]  ;;  %6861 = vmatpush1.bf16.msra.mxu1 %v9133_v52  ;;  %v366_v47 = vld [vmem:[%s9618_s17 + $0x68] sm:$0xff]  ;;  %v9999_v52 = vcombine.low %v9915_v11, %v9915_v11 }
 0x165   : > { %v9142_v56 = vcombine.high %v1337_v23, %v1341_v49  ;;  %v1217_v57 = vld [vmem:[%s9618_s17 + $0x1b00] sm:$0xff]  ;;  %6821 = vmatprep.subr.bf16.mxu0 %v9014_v53  ;;  %v9141_v0 = vcombine.low %v1337_v23, %v1341_v49  ;;  %v9993_v23 = vcombine.low %v9908_v8, %v9908_v8  ;;  %v490_v49 = vld [vmem:[%s9618_s17 + $0x448] sm:$0xff]  ;;  %v8159_v53 = vcombine.low %v354_v35, %v358_v36 }
 0x166   : > { %v1221_v58 = vld [vmem:[%s9618_s17 + $0x1b20] sm:$0xff]  ;;  %6822 = vmatpush1.bf16.msra.mxu0 %v9013_v63  ;;  %v494_v51 = vld [vmem:[%s9618_s17 + $0x468] sm:$0xff]  ;;  %v8167_v11 = vcombine.low %v362_v46, %v366_v47 }
 0x167   : > { %v1345_v61 = vld [vmem:[%s9618_s17 + $0x1f00] sm:$0xff]  ;;  %v9022_v1 = vcombine.high %v1217_v57, %v1221_v58  ;;  %6862 = vmatprep.subr.bf16.mxu1 %v9142_v56  ;;  %v9021_v10 = vcombine.low %v1217_v57, %v1221_v58  ;;  %v8287_v56 = vcombine.low %v482_v38, %v486_v39  ;;  %v8168_v57 = vcombine.high %v362_v46, %v366_v47  ;;  %v374_v8 = vld [vmem:[%s9618_s17 + $0xa8] sm:$0xff] }
 0x168   : > { %v1349_v62 = vld [vmem:[%s9618_s17 + $0x1f20] sm:$0xff]  ;;  %6863 = vmatpush1.bf16.msra.mxu1 %v9141_v0  ;;  %v8296_v58 = vcombine.high %v490_v49, %v494_v51  ;;  %v502_v63 = vld [vmem:[%s9618_s17 + $0x4a8] sm:$0xff]  ;;  %v8295_v0 = vcombine.low %v490_v49, %v494_v51 }
 0x169   : > { %v9150_v2 = vcombine.high %v1345_v61, %v1349_v62  ;;  %v1225_v3 = vld [vmem:[%s9618_s17 + $0x1b40] sm:$0xff]  ;;  %6823 = vmatprep.subr.bf16.mxu0 %v9022_v1  ;;  %v9149_v12 = vcombine.low %v1345_v61, %v1349_v62  ;;  %v370_v61 = vld [vmem:[%s9618_s17 + $0x88] sm:$0xff] }
 0x16a   : > { %v1229_v4 = vld [vmem:[%s9618_s17 + $0x1b60] sm:$0xff]  ;;  %6824 = vmatpush1.bf16.msra.mxu0 %v9021_v10  ;;  %v498_v62 = vld [vmem:[%s9618_s17 + $0x488] sm:$0xff]  ;;  %v8176_v1 = vcombine.high %v370_v61, %v374_v8  ;;  %v8175_v10 = vcombine.low %v370_v61, %v374_v8 }
 0x16b   : > { %v1353_v6 = vld [vmem:[%s9618_s17 + $0x1f40] sm:$0xff]  ;;  %v9030_v13 = vcombine.high %v1225_v3, %v1229_v4  ;;  %6864 = vmatprep.subr.bf16.mxu1 %v9150_v2  ;;  %v9029_v22 = vcombine.low %v1225_v3, %v1229_v4  ;;  %v8304_v2 = vcombine.high %v498_v62, %v502_v63  ;;  %v378_v3 = vld [vmem:[%s9618_s17 + $0xc8] sm:$0xff] }
 0x16c   : > { %v1357_v7 = vld [vmem:[%s9618_s17 + $0x1f60] sm:$0xff]  ;;  %6865 = vmatpush1.bf16.msra.mxu1 %v9149_v12  ;;  %v382_v4 = vld [vmem:[%s9618_s17 + $0xe8] sm:$0xff]  ;;  %v8303_v12 = vcombine.low %v498_v62, %v502_v63 }
 0x16d   : > { %v9158_v40 = vcombine.high %v1353_v6, %v1357_v7  ;;  %v1233_v14 = vld [vmem:[%s9618_s17 + $0x1b80] sm:$0xff]  ;;  %6825 = vmatprep.subr.bf16.mxu0 %v9030_v13  ;;  %v9157_v24 = vcombine.low %v1353_v6, %v1357_v7  ;;  %v506_v6 = vld [vmem:[%s9618_s17 + $0x4c8] sm:$0xff]  ;;  %v8184_v13 = vcombine.high %v378_v3, %v382_v4 }
 0x16e   : > { %v1237_v15 = vld [vmem:[%s9618_s17 + $0x1ba0] sm:$0xff]  ;;  %6826 = vmatpush1.bf16.msra.mxu0 %v9029_v22  ;;  %v510_v7 = vld [vmem:[%s9618_s17 + $0x4e8] sm:$0xff]  ;;  %v8183_v22 = vcombine.low %v378_v3, %v382_v4 }
 0x16f   : > { %v1361_v43 = vld [vmem:[%s9618_s17 + $0x1f80] sm:$0xff]  ;;  %v9038_v25 = vcombine.high %v1233_v14, %v1237_v15  ;;  %6866 = vmatprep.subr.bf16.mxu1 %v9158_v40  ;;  %v9037_v31 = vcombine.low %v1233_v14, %v1237_v15  ;;  %v8312_v40 = vcombine.high %v506_v6, %v510_v7  ;;  %v386_v14 = vld [vmem:[%s9618_s17 + $0x108] sm:$0xff] }
 0x170   : > { %v1365_v18 = vld [vmem:[%s9618_s17 + $0x1fa0] sm:$0xff]  ;;  %6867 = vmatpush1.bf16.msra.mxu1 %v9157_v24  ;;  %v390_v15 = vld [vmem:[%s9618_s17 + $0x128] sm:$0xff]  ;;  %v8311_v24 = vcombine.low %v506_v6, %v510_v7 }
 0x171   : > { %v9166_v54 = vcombine.high %v1361_v43, %v1365_v18  ;;  %v1241_v26 = vld [vmem:[%s9618_s17 + $0x1bc0] sm:$0xff]  ;;  %6827 = vmatprep.subr.bf16.mxu0 %v9038_v25  ;;  %v9165_v32 = vcombine.low %v1361_v43, %v1365_v18  ;;  %v514_v43 = vld [vmem:[%s9618_s17 + $0x508] sm:$0xff]  ;;  %v8192_v25 = vcombine.high %v386_v14, %v390_v15 }
 0x172   : > { %v1245_v27 = vld [vmem:[%s9618_s17 + $0x1be0] sm:$0xff]  ;;  %6828 = vmatpush1.bf16.msra.mxu0 %v9037_v31  ;;  %v518_v18 = vld [vmem:[%s9618_s17 + $0x528] sm:$0xff]  ;;  %v8191_v31 = vcombine.low %v386_v14, %v390_v15 }
 0x173   : > { %v1369_v55 = vld [vmem:[%s9618_s17 + $0x1fc0] sm:$0xff]  ;;  %v9046_v33 = vcombine.high %v1241_v26, %v1245_v27  ;;  %6868 = vmatprep.subr.bf16.mxu1 %v9166_v54  ;;  %v9045_v42 = vcombine.low %v1241_v26, %v1245_v27  ;;  %v8320_v54 = vcombine.high %v514_v43, %v518_v18  ;;  %v394_v26 = vld [vmem:[%s9618_s17 + $0x148] sm:$0xff] }
 0x174   : > { %v1373_v29 = vld [vmem:[%s9618_s17 + $0x1fe0] sm:$0xff]  ;;  %6869 = vmatpush1.bf16.msra.mxu1 %v9165_v32  ;;  %v398_v27 = vld [vmem:[%s9618_s17 + $0x168] sm:$0xff]  ;;  %v8319_v32 = vcombine.low %v514_v43, %v518_v18 }
 0x175   : > { %v9174_v34 = vcombine.high %v1369_v55, %v1373_v29  ;;  %6829 = vmatprep.subr.bf16.mxu0 %v9046_v33  ;;  %v9173_v44 = vcombine.low %v1369_v55, %v1373_v29  ;;  %v522_v55 = vld [vmem:[%s9618_s17 + $0x548] sm:$0xff]  ;;  %v8200_v33 = vcombine.high %v394_v26, %v398_v27 }
 0x176   : > { %6830 = vmatpush1.bf16.msra.mxu0 %v9045_v42  ;;  %v526_v29 = vld [vmem:[%s9618_s17 + $0x568] sm:$0xff]  ;;  %v8199_v42 = vcombine.low %v394_v26, %v398_v27 }
 0x177   : > { %6870 = vmatprep.subr.bf16.mxu1 %v9174_v34  ;;  %6881 = vmatprep.subr.bf16.mxu0 %v8160_v45  ;;  %v8328_v34 = vcombine.high %v522_v55, %v526_v29  ;;  %v402_v35 = vld [vmem:[%s9618_s17 + $0x188] sm:$0xff] }
 0x178   : > { %6871 = vmatpush1.bf16.msra.mxu1 %v9173_v44  ;;  %v406_v36 = vld [vmem:[%s9618_s17 + $0x1a8] sm:$0xff]  ;;  %v8327_v44 = vcombine.low %v522_v55, %v526_v29 }
 0x179   : > { %6922 = vmatprep.subr.bf16.mxu1 %v8288_v20  ;;  %6832 = vmatmul.mubr.bf16.vlgmr.msra.gmra.mrb[12].mxu0 %v9993_v23  ;;  %v530_v38 = vld [vmem:[%s9618_s17 + $0x588] sm:$0xff]  ;;  %v8208_v45 = vcombine.high %v402_v35, %v406_v36  ;;  %v8207_v62 = vcombine.low %v402_v35, %v406_v36 }
 0x17a   : > { %6882 = vmatpush1.bf16.msra.mxu0 %v8159_v53  ;;  %6913 = vmatprep.mubr.bf16.mxu0 %v9673_v59  ;;  %v534_v39 = vld [vmem:[%s9618_s17 + $0x5a8] sm:$0xff] }
 0x17b   : > { %6873 = vmatmul.mubr.bf16.vlgmr.msra.gmra.mrb[12].mxu1 %v9999_v52  ;;  %6883 = vmatprep.subr.bf16.mxu0 %v8168_v57  ;;  %v8336_v46 = vcombine.high %v530_v38, %v534_v39  ;;  %v410_v47 = vld [vmem:[%s9618_s17 + $0x1c8] sm:$0xff] }
 0x17c   : > { %6923 = vmatpush1.bf16.msra.mxu1 %v8287_v56  ;;  %6954 = vmatprep.mubr.bf16.mxu1 %v9677_v60  ;;  %v414_v49 = vld [vmem:[%s9618_s17 + $0x1e8] sm:$0xff] }
 0x17d   : > { %6924 = vmatprep.subr.bf16.mxu1 %v8296_v58  ;;  %v538_v56 = vld [vmem:[%s9618_s17 + $0x5c8] sm:$0xff] }
 0x17e   : > { %6884 = vmatpush1.bf16.msra.mxu0 %v8167_v11  ;;  %v542_v57 = vld [vmem:[%s9618_s17 + $0x5e8] sm:$0xff] }
 0x17f   : > { %6885 = vmatprep.subr.bf16.mxu0 %v8176_v1  ;;  %v8335_v1 = vcombine.low %v530_v38, %v534_v39  ;;  %v8344_v4 = vcombine.high %v538_v56, %v542_v57  ;;  %v418_v6 = vld [vmem:[%s9618_s17 + $0x208] sm:$0xff] }
 0x180   : > { %6925 = vmatpush1.bf16.msra.mxu1 %v8295_v0  ;;  %v422_v7 = vld [vmem:[%s9618_s17 + $0x228] sm:$0xff] }
 0x181   : > { %6926 = vmatprep.subr.bf16.mxu1 %v8304_v2  ;;  %v8216_v2 = vcombine.high %v410_v47, %v414_v49  ;;  %v8224_v14 = vcombine.high %v418_v6, %v422_v7  ;;  %v426_v43 = vld [vmem:[%s9618_s17 + $0x248] sm:$0xff] }
 0x182   : > { %6886 = vmatpush1.bf16.msra.mxu0 %v8175_v10  ;;  %v546_v10 = vld [vmem:[%s9618_s17 + $0x608] sm:$0xff] }
 0x183   : > { %6887 = vmatprep.subr.bf16.mxu0 %v8184_v13  ;;  %v8215_v13 = vcombine.low %v410_v47, %v414_v49  ;;  %v430_v18 = vld [vmem:[%s9618_s17 + $0x268] sm:$0xff] }
 0x184   : > { %6927 = vmatpush1.bf16.msra.mxu1 %v8303_v12  ;;  %v550_v12 = vld [vmem:[%s9618_s17 + $0x628] sm:$0xff]  ;;  %v8232_v26 = vcombine.high %v426_v43, %v430_v18 }
 0x185   : > { %6928 = vmatprep.subr.bf16.mxu1 %v8312_v40  ;;  %v8343_v40 = vcombine.low %v538_v56, %v542_v57  ;;  %v8352_v15 = vcombine.high %v546_v10, %v550_v12  ;;  %v434_v55 = vld [vmem:[%s9618_s17 + $0x288] sm:$0xff] }
 0x186   : > { %6888 = vmatpush1.bf16.msra.mxu0 %v8183_v22  ;;  %v554_v22 = vld [vmem:[%s9618_s17 + $0x648] sm:$0xff] }
 0x187   : > { %6889 = vmatprep.subr.bf16.mxu0 %v8192_v25  ;;  %v8223_v25 = vcombine.low %v418_v6, %v422_v7  ;;  %v438_v29 = vld [vmem:[%s9618_s17 + $0x2a8] sm:$0xff] }
 0x188   : > { %6929 = vmatpush1.bf16.msra.mxu1 %v8311_v24  ;;  %v558_v24 = vld [vmem:[%s9618_s17 + $0x668] sm:$0xff]  ;;  %v8240_v35 = vcombine.high %v434_v55, %v438_v29 }
 0x189   : > { %6930 = vmatprep.subr.bf16.mxu1 %v8320_v54  ;;  %v8351_v54 = vcombine.low %v546_v10, %v550_v12  ;;  %v8360_v27 = vcombine.high %v554_v22, %v558_v24  ;;  %v442_v38 = vld [vmem:[%s9618_s17 + $0x2c8] sm:$0xff] }
 0x18a   : > { %6890 = vmatpush1.bf16.msra.mxu0 %v8191_v31  ;;  %v562_v31 = vld [vmem:[%s9618_s17 + $0x688] sm:$0xff] }
 0x18b   : > { %6891 = vmatprep.subr.bf16.mxu0 %v8200_v33  ;;  %v6587_v20 = vpop.f32.mrb[0].mxu0  ;;  %v8231_v33 = vcombine.low %v426_v43, %v430_v18  ;;  %v446_v39 = vld [vmem:[%s9618_s17 + $0x2e8] sm:$0xff] }
 0x18c   : > { %6931 = vmatpush1.bf16.msra.mxu1 %v8319_v32  ;;  %v6589_v53 = vpop.f32.mrb[1].mxu0  ;;  %v566_v32 = vld [vmem:[%s9618_s17 + $0x6a8] sm:$0xff]  ;;  %v8247_v57 = vcombine.low %v442_v38, %v446_v39 }
 0x18d   : > { %6932 = vmatprep.subr.bf16.mxu1 %v8328_v34  ;;  %v6628_v51 = vpop.f32.mrb[0].mxu1  ;;  %v6591_v8 = vpop.f32.mrb[2].mxu0  ;;  %v8359_v34 = vcombine.low %v554_v22, %v558_v24  ;;  %v8368_v36 = vcombine.high %v562_v31, %v566_v32  ;;  %v450_v49 = vld [vmem:[%s9618_s17 + $0x308] sm:$0xff] }
 0x18e   : > { %v10029_v58 = vadd.f32 %v6628_v51, %v6587_v20  ;;  %v6630_v61 = vpop.f32.mrb[1].mxu1  ;;  %6892 = vmatpush1.bf16.msra.mxu0 %v8199_v42  ;;  %v6592_v0 = vpop.f32.mrb[3].mxu0  ;;  %v570_v42 = vld [vmem:[%s9618_s17 + $0x6c8] sm:$0xff]  ;;  %v8367_v20 = vcombine.low %v562_v31, %v566_v32 }
 0x18f   : > { %v10031_v63 = vadd.f32 %v6630_v61, %v6589_v53  ;;  %v6632_v11 = vpop.f32.mrb[2].mxu1  ;;  %6893 = vmatprep.subr.bf16.mxu0 %v8208_v45  ;;  %v8239_v45 = vcombine.low %v434_v55, %v438_v29  ;;  %v454_v51 = vld [vmem:[%s9618_s17 + $0x328] sm:$0xff] }
 0x190   : > { %6933 = vmatpush1.bf16.msra.mxu1 %v8327_v44  ;;  %v6633_v3 = vpop.f32.mrb[3].mxu1  ;;  %v574_v44 = vld [vmem:[%s9618_s17 + $0x6e8] sm:$0xff]  ;;  %v8256_v8 = vcombine.high %v450_v49, %v454_v51 }
 0x191   : > { %6934 = vmatprep.subr.bf16.mxu1 %v8336_v46  ;;  %v8248_v46 = vcombine.high %v442_v38, %v446_v39  ;;  %v8376_v47 = vcombine.high %v570_v42, %v574_v44  ;;  %v578_v53 = vld [vmem:[%s9618_s17 + $0x708] sm:$0xff]  ;;  %v8375_v61 = vcombine.low %v570_v42, %v574_v44  ;;  %v8255_v3 = vcombine.low %v450_v49, %v454_v51 }
 0x192   : > { %6894 = vmatpush1.bf16.msra.mxu0 %v8207_v62  ;;  %v582_v56 = vld [vmem:[%s9618_s17 + $0x728] sm:$0xff] }
 0x193   : > { %6895 = vmatprep.subr.bf16.mxu0 %v8216_v2  ;;  %v8384_v62 = vcombine.high %v578_v53, %v582_v56  ;;  %v458_v11 = vld [vmem:[%s9618_s17 + $0x348] sm:$0xff] }
 0x194   : > { %6935 = vmatpush1.bf16.msra.mxu1 %v8335_v1  ;;  %v462_v0 = vld [vmem:[%s9618_s17 + $0x368] sm:$0xff] }
 0x195   : > { %6936 = vmatprep.subr.bf16.mxu1 %v8344_v4  ;;  %v586_v1 = vld [vmem:[%s9618_s17 + $0x748] sm:$0xff]  ;;  %v8383_v4 = vcombine.low %v578_v53, %v582_v56  ;;  %v8264_v6 = vcombine.high %v458_v11, %v462_v0 }
 0x196   : > { %6896 = vmatpush1.bf16.msra.mxu0 %v8215_v13  ;;  %v590_v2 = vld [vmem:[%s9618_s17 + $0x768] sm:$0xff] }
 0x197   : > { %6897 = vmatprep.subr.bf16.mxu0 %v8224_v14  ;;  %v8392_v7 = vcombine.high %v586_v1, %v590_v2  ;;  %v466_v10 = vld [vmem:[%s9618_s17 + $0x388] sm:$0xff]  ;;  %v8263_v14 = vcombine.low %v458_v11, %v462_v0 }
 0x198   : > { %6937 = vmatpush1.bf16.msra.mxu1 %v8343_v40  ;;  %v470_v12 = vld [vmem:[%s9618_s17 + $0x3a8] sm:$0xff] }
 0x199   : > { %6938 = vmatprep.subr.bf16.mxu1 %v8352_v15  ;;  %v594_v13 = vld [vmem:[%s9618_s17 + $0x788] sm:$0xff]  ;;  %v8391_v15 = vcombine.low %v586_v1, %v590_v2  ;;  %v8272_v43 = vcombine.high %v466_v10, %v470_v12 }
 0x19a   : > { %6898 = vmatpush1.bf16.msra.mxu0 %v8223_v25  ;;  %v598_v40 = vld [vmem:[%s9618_s17 + $0x7a8] sm:$0xff] }
 0x19b   : > { %6899 = vmatprep.subr.bf16.mxu0 %v8232_v26  ;;  %v8400_v18 = vcombine.high %v594_v13, %v598_v40  ;;  %v474_v22 = vld [vmem:[%s9618_s17 + $0x3c8] sm:$0xff]  ;;  %v8271_v26 = vcombine.low %v466_v10, %v470_v12 }
 0x19c   : > { %6939 = vmatpush1.bf16.msra.mxu1 %v8351_v54  ;;  %v478_v24 = vld [vmem:[%s9618_s17 + $0x3e8] sm:$0xff] }
 0x19d   : > { %6940 = vmatprep.subr.bf16.mxu1 %v8360_v27  ;;  %v602_v25 = vld [vmem:[%s9618_s17 + $0x7c8] sm:$0xff]  ;;  %v8399_v27 = vcombine.low %v594_v13, %v598_v40  ;;  %v8280_v55 = vcombine.high %v474_v22, %v478_v24 }
 0x19e   : > { %6900 = vmatpush1.bf16.msra.mxu0 %v8231_v33  ;;  %v606_v54 = vld [vmem:[%s9618_s17 + $0x7e8] sm:$0xff] }
 0x19f   : > { %6901 = vmatprep.subr.bf16.mxu0 %v8240_v35  ;;  %v8408_v29 = vcombine.high %v602_v25, %v606_v54  ;;  %v610_v31 = vld [vmem:[%s9618_s17 + $0x808] sm:$0xff]  ;;  %v8279_v35 = vcombine.low %v474_v22, %v478_v24 }
 0x1a0   : > { %6941 = vmatpush1.bf16.msra.mxu1 %v8359_v34  ;;  %v614_v32 = vld [vmem:[%s9618_s17 + $0x828] sm:$0xff] }
 0x1a1   : > { %6942 = vmatprep.subr.bf16.mxu1 %v8368_v36  ;;  %v738_v33 = vld [vmem:[%s9618_s17 + $0xc08] sm:$0xff]  ;;  %v8407_v36 = vcombine.low %v602_v25, %v606_v54  ;;  %v8416_v38 = vcombine.high %v610_v31, %v614_v32 }
 0x1a2   : > { %6902 = vmatpush1.bf16.msra.mxu0 %v8239_v45  ;;  %v742_v34 = vld [vmem:[%s9618_s17 + $0xc28] sm:$0xff] }
 0x1a3   : > { %6903 = vmatprep.subr.bf16.mxu0 %v8248_v46  ;;  %v8544_v39 = vcombine.high %v738_v33, %v742_v34  ;;  %v618_v42 = vld [vmem:[%s9618_s17 + $0x848] sm:$0xff]  ;;  %v8415_v46 = vcombine.low %v610_v31, %v614_v32 }
 0x1a4   : > { %6943 = vmatpush1.bf16.msra.mxu1 %v8367_v20  ;;  %v622_v44 = vld [vmem:[%s9618_s17 + $0x868] sm:$0xff] }
 0x1a5   : > { %6944 = vmatprep.subr.bf16.mxu1 %v8376_v47  ;;  %v746_v45 = vld [vmem:[%s9618_s17 + $0xc48] sm:$0xff]  ;;  %v8543_v47 = vcombine.low %v738_v33, %v742_v34  ;;  %v8424_v49 = vcombine.high %v618_v42, %v622_v44 }
 0x1a6   : > { %6904 = vmatpush1.bf16.msra.mxu0 %v8247_v57  ;;  %v750_v20 = vld [vmem:[%s9618_s17 + $0xc68] sm:$0xff] }
 0x1a7   : > { %6905 = vmatprep.subr.bf16.mxu0 %v8256_v8  ;;  %v8552_v51 = vcombine.high %v746_v45, %v750_v20  ;;  %v626_v53 = vld [vmem:[%s9618_s17 + $0x888] sm:$0xff]  ;;  %v8423_v8 = vcombine.low %v618_v42, %v622_v44 }
 0x1a8   : > { %6945 = vmatpush1.bf16.msra.mxu1 %v8375_v61  ;;  %v630_v56 = vld [vmem:[%s9618_s17 + $0x8a8] sm:$0xff] }
 0x1a9   : > { %6946 = vmatprep.subr.bf16.mxu1 %v8384_v62  ;;  %v754_v57 = vld [vmem:[%s9618_s17 + $0xc88] sm:$0xff]  ;;  %v8551_v62 = vcombine.low %v746_v45, %v750_v20  ;;  %v8432_v11 = vcombine.high %v626_v53, %v630_v56 }
 0x1aa   : > { %6906 = vmatpush1.bf16.msra.mxu0 %v8255_v3  ;;  %v758_v61 = vld [vmem:[%s9618_s17 + $0xca8] sm:$0xff] }
 0x1ab   : > { %6907 = vmatprep.subr.bf16.mxu0 %v8264_v6  ;;  %v8560_v0 = vcombine.high %v754_v57, %v758_v61  ;;  %v634_v1 = vld [vmem:[%s9618_s17 + $0x8c8] sm:$0xff]  ;;  %v8431_v6 = vcombine.low %v626_v53, %v630_v56 }
 0x1ac   : > { %6947 = vmatpush1.bf16.msra.mxu1 %v8383_v4  ;;  %v638_v2 = vld [vmem:[%s9618_s17 + $0x8e8] sm:$0xff] }
 0x1ad   : > { %6948 = vmatprep.subr.bf16.mxu1 %v8392_v7  ;;  %v762_v3 = vld [vmem:[%s9618_s17 + $0xcc8] sm:$0xff]  ;;  %v8559_v7 = vcombine.low %v754_v57, %v758_v61  ;;  %v8440_v10 = vcombine.high %v634_v1, %v638_v2 }
 0x1ae   : > { %6908 = vmatpush1.bf16.msra.mxu0 %v8263_v14  ;;  %v766_v4 = vld [vmem:[%s9618_s17 + $0xce8] sm:$0xff] }
 0x1af   : > { %6909 = vmatprep.subr.bf16.mxu0 %v8272_v43  ;;  %v8568_v12 = vcombine.high %v762_v3, %v766_v4  ;;  %v642_v13 = vld [vmem:[%s9618_s17 + $0x908] sm:$0xff]  ;;  %v8439_v43 = vcombine.low %v634_v1, %v638_v2 }
 0x1b0   : > { %6949 = vmatpush1.bf16.msra.mxu1 %v8391_v15  ;;  %v646_v40 = vld [vmem:[%s9618_s17 + $0x928] sm:$0xff] }
 0x1b1   : > { %6950 = vmatprep.subr.bf16.mxu1 %v8400_v18  ;;  %v770_v14 = vld [vmem:[%s9618_s17 + $0xd08] sm:$0xff]  ;;  %v8567_v18 = vcombine.low %v762_v3, %v766_v4  ;;  %v8448_v22 = vcombine.high %v642_v13, %v646_v40 }
 0x1b2   : > { %6910 = vmatpush1.bf16.msra.mxu0 %v8271_v26  ;;  %v774_v15 = vld [vmem:[%s9618_s17 + $0xd28] sm:$0xff] }
 0x1b3   : > { %6911 = vmatprep.subr.bf16.mxu0 %v8280_v55  ;;  %v8576_v24 = vcombine.high %v770_v14, %v774_v15  ;;  %v650_v25 = vld [vmem:[%s9618_s17 + $0x948] sm:$0xff]  ;;  %v8447_v55 = vcombine.low %v642_v13, %v646_v40 }
 0x1b4   : > { %6951 = vmatpush1.bf16.msra.mxu1 %v8399_v27  ;;  %v654_v54 = vld [vmem:[%s9618_s17 + $0x968] sm:$0xff] }
 0x1b5   : > { %6952 = vmatprep.subr.bf16.mxu1 %v8408_v29  ;;  %v778_v26 = vld [vmem:[%s9618_s17 + $0xd48] sm:$0xff]  ;;  %v8575_v29 = vcombine.low %v770_v14, %v774_v15  ;;  %v8456_v31 = vcombine.high %v650_v25, %v654_v54 }
 0x1b6   : > { %6912 = vmatpush1.bf16.msra.mxu0 %v8279_v35  ;;  %v782_v27 = vld [vmem:[%s9618_s17 + $0xd68] sm:$0xff] }
 0x1b7   : > { %6963 = vmatprep.subr.bf16.mxu0 %v8416_v38  ;;  %v8584_v32 = vcombine.high %v778_v26, %v782_v27  ;;  %v658_v33 = vld [vmem:[%s9618_s17 + $0x988] sm:$0xff]  ;;  %v8455_v38 = vcombine.low %v650_v25, %v654_v54 }
 0x1b8   : > { %6953 = vmatpush1.bf16.msra.mxu1 %v8407_v36  ;;  %v662_v34 = vld [vmem:[%s9618_s17 + $0x9a8] sm:$0xff] }
 0x1b9   : > { %7004 = vmatprep.subr.bf16.mxu1 %v8544_v39  ;;  %6914 = vmatmul.mubr.bf16.vlgmr.msra.gmra.mrb[16].mxu0 %v9723_v17  ;;  %v786_v35 = vld [vmem:[%s9618_s17 + $0xd88] sm:$0xff]  ;;  %v8583_v39 = vcombine.low %v778_v26, %v782_v27  ;;  %v8464_v42 = vcombine.high %v658_v33, %v662_v34 }
 0x1ba   : > { %6964 = vmatpush1.bf16.msra.mxu0 %v8415_v46  ;;  %6995 = vmatprep.mubr.bf16.mxu0 %v9741_v28  ;;  %v790_v36 = vld [vmem:[%s9618_s17 + $0xda8] sm:$0xff] }
 0x1bb   : > { %6955 = vmatmul.mubr.bf16.vlgmr.msra.gmra.mrb[16].mxu1 %v9732_v21  ;;  %6965 = vmatprep.subr.bf16.mxu0 %v8424_v49  ;;  %v8592_v45 = vcombine.high %v786_v35, %v790_v36  ;;  %v666_v20 = vld [vmem:[%s9618_s17 + $0x9c8] sm:$0xff] }
 0x1bc   : > { %7005 = vmatpush1.bf16.msra.mxu1 %v8543_v47  ;;  %7036 = vmatprep.mubr.bf16.mxu1 %v9748_v30  ;;  %v670_v46 = vld [vmem:[%s9618_s17 + $0x9e8] sm:$0xff] }
 0x1bd   : > { %7006 = vmatprep.subr.bf16.mxu1 %v8552_v51  ;;  %v794_v53 = vld [vmem:[%s9618_s17 + $0xdc8] sm:$0xff]  ;;  %v8472_v2 = vcombine.high %v666_v20, %v670_v46  ;;  %v8471_v13 = vcombine.low %v666_v20, %v670_v46 }
 0x1be   : > { %6966 = vmatpush1.bf16.msra.mxu0 %v8423_v8  ;;  %v798_v56 = vld [vmem:[%s9618_s17 + $0xde8] sm:$0xff] }
 0x1bf   : > { %6967 = vmatprep.subr.bf16.mxu0 %v8432_v11  ;;  %v8600_v4 = vcombine.high %v794_v53, %v798_v56  ;;  %v8599_v40 = vcombine.low %v794_v53, %v798_v56  ;;  %v834_v53 = vld [vmem:[%s9618_s17 + $0xf08] sm:$0xff] }
 0x1c0   : > { %7007 = vmatpush1.bf16.msra.mxu1 %v8551_v62  ;;  %v8463_v62 = vcombine.low %v658_v33, %v662_v34  ;;  %v838_v56 = vld [vmem:[%s9618_s17 + $0xf28] sm:$0xff] }
 0x1c1   : > { %7008 = vmatprep.subr.bf16.mxu1 %v8560_v0 }
 0x1c2   : > { %6968 = vmatpush1.bf16.msra.mxu0 %v8431_v6  ;;  %v674_v6 = vld [vmem:[%s9618_s17 + $0xa08] sm:$0xff] }
 0x1c3   : > { %6969 = vmatprep.subr.bf16.mxu0 %v8440_v10  ;;  %v802_v10 = vld [vmem:[%s9618_s17 + $0xe08] sm:$0xff] }
 0x1c4   : > { %7009 = vmatpush1.bf16.msra.mxu1 %v8559_v7  ;;  %v678_v7 = vld [vmem:[%s9618_s17 + $0xa28] sm:$0xff] }
 0x1c5   : > { %7010 = vmatprep.subr.bf16.mxu1 %v8568_v12  ;;  %v806_v12 = vld [vmem:[%s9618_s17 + $0xe28] sm:$0xff]  ;;  %v8480_v14 = vcombine.high %v674_v6, %v678_v7  ;;  %v8479_v25 = vcombine.low %v674_v6, %v678_v7 }
 0x1c6   : > { %6970 = vmatpush1.bf16.msra.mxu0 %v8439_v43  ;;  %v8608_v15 = vcombine.high %v802_v10, %v806_v12  ;;  %v682_v43 = vld [vmem:[%s9618_s17 + $0xa48] sm:$0xff]  ;;  %v8607_v54 = vcombine.low %v802_v10, %v806_v12 }
 0x1c7   : > { %6971 = vmatprep.subr.bf16.mxu0 %v8448_v22  ;;  %v810_v22 = vld [vmem:[%s9618_s17 + $0xe48] sm:$0xff] }
 0x1c8   : > { %7011 = vmatpush1.bf16.msra.mxu1 %v8567_v18  ;;  %v686_v18 = vld [vmem:[%s9618_s17 + $0xa68] sm:$0xff] }
 0x1c9   : > { %7012 = vmatprep.subr.bf16.mxu1 %v8576_v24  ;;  %v814_v24 = vld [vmem:[%s9618_s17 + $0xe68] sm:$0xff]  ;;  %v8488_v26 = vcombine.high %v682_v43, %v686_v18  ;;  %v8487_v33 = vcombine.low %v682_v43, %v686_v18 }
 0x1ca   : > { %6972 = vmatpush1.bf16.msra.mxu0 %v8447_v55  ;;  %v8616_v27 = vcombine.high %v810_v22, %v814_v24  ;;  %v690_v55 = vld [vmem:[%s9618_s17 + $0xa88] sm:$0xff]  ;;  %v8615_v34 = vcombine.low %v810_v22, %v814_v24 }
 0x1cb   : > { %6973 = vmatprep.subr.bf16.mxu0 %v8456_v31  ;;  %v6669_v44 = vpop.f32.mrb[4].mxu0  ;;  %v818_v31 = vld [vmem:[%s9618_s17 + $0xe88] sm:$0xff] }
 0x1cc   : > { %7013 = vmatpush1.bf16.msra.mxu1 %v8575_v29  ;;  %v6670_v47 = vadd.f32 %v6669_v44, %v10029_v58  ;;  %v6671_v51 = vpop.f32.mrb[5].mxu0  ;;  %v8591_v58 = vcombine.low %v786_v35, %v790_v36  ;;  %v694_v29 = vld [vmem:[%s9618_s17 + $0xaa8] sm:$0xff] }
 0x1cd   : > { %7014 = vmatprep.subr.bf16.mxu1 %v8584_v32  ;;  %v6710_v49 = vpop.f32.mrb[4].mxu1  ;;  %v6672_v57 = vadd.f32 %v6671_v51, %v10031_v63  ;;  %v6673_v8 = vpop.f32.mrb[6].mxu0  ;;  %v822_v32 = vld [vmem:[%s9618_s17 + $0xea8] sm:$0xff]  ;;  %v8496_v35 = vcombine.high %v690_v55, %v694_v29 }
 0x1ce   : > { %v6712_v61 = vpop.f32.mrb[5].mxu1  ;;  %6974 = vmatpush1.bf16.msra.mxu0 %v8455_v38  ;;  %v10103_v11 = vadd.f32 %v6710_v49, %v6670_v47  ;;  %v6674_v1 = vpop.f32.mrb[7].mxu0  ;;  %v8624_v36 = vcombine.high %v818_v31, %v822_v32  ;;  %v698_v38 = vld [vmem:[%s9618_s17 + $0xac8] sm:$0xff]  ;;  %v8623_v20 = vcombine.low %v818_v31, %v822_v32 }
 0x1cf   : > { %v6714_v0 = vpop.f32.mrb[6].mxu1  ;;  %6975 = vmatprep.subr.bf16.mxu0 %v8464_v42  ;;  %v10105_v3 = vadd.f32 %v6712_v61, %v6672_v57  ;;  %v826_v42 = vld [vmem:[%s9618_s17 + $0xec8] sm:$0xff] }
 0x1d0   : > { %7015 = vmatpush1.bf16.msra.mxu1 %v8583_v39  ;;  %v6715_v63 = vpop.f32.mrb[7].mxu1  ;;  %v702_v39 = vld [vmem:[%s9618_s17 + $0xae8] sm:$0xff] }
 0x1d1   : > { %7016 = vmatprep.subr.bf16.mxu1 %v8592_v45  ;;  %v830_v44 = vld [vmem:[%s9618_s17 + $0xee8] sm:$0xff]  ;;  %v8495_v45 = vcombine.low %v690_v55, %v694_v29  ;;  %v8504_v46 = vcombine.high %v698_v38, %v702_v39  ;;  %v8503_v57 = vcombine.low %v698_v38, %v702_v39 }
 0x1d2   : > { %6976 = vmatpush1.bf16.msra.mxu0 %v8463_v62  ;;  %v8632_v47 = vcombine.high %v826_v42, %v830_v44  ;;  %v706_v49 = vld [vmem:[%s9618_s17 + $0xb08] sm:$0xff]  ;;  %v8631_v61 = vcombine.low %v826_v42, %v830_v44  ;;  %v8640_v62 = vcombine.high %v834_v53, %v838_v56 }
 0x1d3   : > { %6977 = vmatprep.subr.bf16.mxu0 %v8472_v2  ;;  %v710_v51 = vld [vmem:[%s9618_s17 + $0xb28] sm:$0xff] }
 0x1d4   : > { %7017 = vmatpush1.bf16.msra.mxu1 %v8591_v58  ;;  %v8512_v8 = vcombine.high %v706_v49, %v710_v51  ;;  %v714_v0 = vld [vmem:[%s9618_s17 + $0xb48] sm:$0xff]  ;;  %v8511_v63 = vcombine.low %v706_v49, %v710_v51 }
 0x1d5   : > { %7018 = vmatprep.subr.bf16.mxu1 %v8600_v4  ;;  %v718_v1 = vld [vmem:[%s9618_s17 + $0xb68] sm:$0xff]  ;;  %v8639_v4 = vcombine.low %v834_v53, %v838_v56 }
 0x1d6   : > { %6978 = vmatpush1.bf16.msra.mxu0 %v8471_v13  ;;  %v842_v58 = vld [vmem:[%s9618_s17 + $0xf48] sm:$0xff]  ;;  %v8520_v6 = vcombine.high %v714_v0, %v718_v1 }
 0x1d7   : > { %6979 = vmatprep.subr.bf16.mxu0 %v8480_v14  ;;  %v846_v2 = vld [vmem:[%s9618_s17 + $0xf68] sm:$0xff]  ;;  %v8519_v14 = vcombine.low %v714_v0, %v718_v1 }
 0x1d8   : > { %7019 = vmatpush1.bf16.msra.mxu1 %v8599_v40  ;;  %v8648_v7 = vcombine.high %v842_v58, %v846_v2  ;;  %v722_v10 = vld [vmem:[%s9618_s17 + $0xb88] sm:$0xff] }
 0x1d9   : > { %7020 = vmatprep.subr.bf16.mxu1 %v8608_v15  ;;  %v726_v12 = vld [vmem:[%s9618_s17 + $0xba8] sm:$0xff]  ;;  %v8647_v15 = vcombine.low %v842_v58, %v846_v2 }
 0x1da   : > { %6980 = vmatpush1.bf16.msra.mxu0 %v8479_v25  ;;  %v850_v13 = vld [vmem:[%s9618_s17 + $0xf88] sm:$0xff]  ;;  %v8528_v43 = vcombine.high %v722_v10, %v726_v12 }
 0x1db   : > { %6981 = vmatprep.subr.bf16.mxu0 %v8488_v26  ;;  %v854_v40 = vld [vmem:[%s9618_s17 + $0xfa8] sm:$0xff]  ;;  %v8527_v26 = vcombine.low %v722_v10, %v726_v12 }
 0x1dc   : > { %7021 = vmatpush1.bf16.msra.mxu1 %v8607_v54  ;;  %v8656_v18 = vcombine.high %v850_v13, %v854_v40  ;;  %v730_v22 = vld [vmem:[%s9618_s17 + $0xbc8] sm:$0xff] }
 0x1dd   : > { %7022 = vmatprep.subr.bf16.mxu1 %v8616_v27  ;;  %v734_v24 = vld [vmem:[%s9618_s17 + $0xbe8] sm:$0xff]  ;;  %v8655_v27 = vcombine.low %v850_v13, %v854_v40 }
 0x1de   : > { %6982 = vmatpush1.bf16.msra.mxu0 %v8487_v33  ;;  %v858_v25 = vld [vmem:[%s9618_s17 + $0xfc8] sm:$0xff]  ;;  %v8536_v55 = vcombine.high %v730_v22, %v734_v24 }
 0x1df   : > { %6983 = vmatprep.subr.bf16.mxu0 %v8496_v35  ;;  %v862_v54 = vld [vmem:[%s9618_s17 + $0xfe8] sm:$0xff]  ;;  %v8535_v35 = vcombine.low %v730_v22, %v734_v24 }
 0x1e0   : > { %7023 = vmatpush1.bf16.msra.mxu1 %v8615_v34  ;;  %v8664_v29 = vcombine.high %v858_v25, %v862_v54  ;;  %v866_v31 = vld [vmem:[%s9618_s17 + $0x1008] sm:$0xff] }
 0x1e1   : > { %7024 = vmatprep.subr.bf16.mxu1 %v8624_v36  ;;  %v870_v32 = vld [vmem:[%s9618_s17 + $0x1028] sm:$0xff]  ;;  %v8663_v36 = vcombine.low %v858_v25, %v862_v54 }
 0x1e2   : > { %6984 = vmatpush1.bf16.msra.mxu0 %v8495_v45  ;;  %v994_v33 = vld [vmem:[%s9618_s17 + $0x1408] sm:$0xff]  ;;  %v8672_v38 = vcombine.high %v866_v31, %v870_v32 }
 0x1e3   : > { %6985 = vmatprep.subr.bf16.mxu0 %v8504_v46  ;;  %v998_v34 = vld [vmem:[%s9618_s17 + $0x1428] sm:$0xff]  ;;  %v8671_v46 = vcombine.low %v866_v31, %v870_v32 }
 0x1e4   : > { %7025 = vmatpush1.bf16.msra.mxu1 %v8623_v20  ;;  %v8800_v39 = vcombine.high %v994_v33, %v998_v34  ;;  %v874_v42 = vld [vmem:[%s9618_s17 + $0x1048] sm:$0xff] }
 0x1e5   : > { %7026 = vmatprep.subr.bf16.mxu1 %v8632_v47  ;;  %v878_v44 = vld [vmem:[%s9618_s17 + $0x1068] sm:$0xff]  ;;  %v8799_v47 = vcombine.low %v994_v33, %v998_v34 }
 0x1e6   : > { %6986 = vmatpush1.bf16.msra.mxu0 %v8503_v57  ;;  %v1002_v45 = vld [vmem:[%s9618_s17 + $0x1448] sm:$0xff]  ;;  %v8680_v49 = vcombine.high %v874_v42, %v878_v44 }
 0x1e7   : > { %6987 = vmatprep.subr.bf16.mxu0 %v8512_v8  ;;  %v1006_v20 = vld [vmem:[%s9618_s17 + $0x1468] sm:$0xff]  ;;  %v8679_v8 = vcombine.low %v874_v42, %v878_v44 }
 0x1e8   : > { %7027 = vmatpush1.bf16.msra.mxu1 %v8631_v61  ;;  %v8808_v51 = vcombine.high %v1002_v45, %v1006_v20  ;;  %v882_v53 = vld [vmem:[%s9618_s17 + $0x1088] sm:$0xff] }
 0x1e9   : > { %7028 = vmatprep.subr.bf16.mxu1 %v8640_v62  ;;  %v886_v56 = vld [vmem:[%s9618_s17 + $0x10a8] sm:$0xff]  ;;  %v8807_v62 = vcombine.low %v1002_v45, %v1006_v20 }
 0x1ea   : > { %6988 = vmatpush1.bf16.msra.mxu0 %v8511_v63  ;;  %v1010_v57 = vld [vmem:[%s9618_s17 + $0x1488] sm:$0xff]  ;;  %v8688_v0 = vcombine.high %v882_v53, %v886_v56 }
 0x1eb   : > { %6989 = vmatprep.subr.bf16.mxu0 %v8520_v6  ;;  %v1014_v61 = vld [vmem:[%s9618_s17 + $0x14a8] sm:$0xff]  ;;  %v8687_v6 = vcombine.low %v882_v53, %v886_v56 }
 0x1ec   : > { %7029 = vmatpush1.bf16.msra.mxu1 %v8639_v4  ;;  %v8816_v1 = vcombine.high %v1010_v57, %v1014_v61  ;;  %v890_v58 = vld [vmem:[%s9618_s17 + $0x10c8] sm:$0xff] }
 0x1ed   : > { %7030 = vmatprep.subr.bf16.mxu1 %v8648_v7  ;;  %v894_v2 = vld [vmem:[%s9618_s17 + $0x10e8] sm:$0xff]  ;;  %v8815_v7 = vcombine.low %v1010_v57, %v1014_v61 }
 0x1ee   : > { %6990 = vmatpush1.bf16.msra.mxu0 %v8519_v14  ;;  %v1018_v63 = vld [vmem:[%s9618_s17 + $0x14c8] sm:$0xff]  ;;  %v8696_v10 = vcombine.high %v890_v58, %v894_v2 }
 0x1ef   : > { %6991 = vmatprep.subr.bf16.mxu0 %v8528_v43  ;;  %v1022_v4 = vld [vmem:[%s9618_s17 + $0x14e8] sm:$0xff]  ;;  %v8695_v43 = vcombine.low %v890_v58, %v894_v2 }
 0x1f0   : > { %7031 = vmatpush1.bf16.msra.mxu1 %v8647_v15  ;;  %v8824_v12 = vcombine.high %v1018_v63, %v1022_v4  ;;  %v898_v13 = vld [vmem:[%s9618_s17 + $0x1108] sm:$0xff] }
 0x1f1   : > { %7032 = vmatprep.subr.bf16.mxu1 %v8656_v18  ;;  %v902_v40 = vld [vmem:[%s9618_s17 + $0x1128] sm:$0xff]  ;;  %v8823_v18 = vcombine.low %v1018_v63, %v1022_v4 }
 0x1f2   : > { %6992 = vmatpush1.bf16.msra.mxu0 %v8527_v26  ;;  %v1026_v14 = vld [vmem:[%s9618_s17 + $0x1508] sm:$0xff]  ;;  %v8704_v22 = vcombine.high %v898_v13, %v902_v40 }
 0x1f3   : > { %6993 = vmatprep.subr.bf16.mxu0 %v8536_v55  ;;  %v1030_v15 = vld [vmem:[%s9618_s17 + $0x1528] sm:$0xff]  ;;  %v8703_v55 = vcombine.low %v898_v13, %v902_v40 }
 0x1f4   : > { %7033 = vmatpush1.bf16.msra.mxu1 %v8655_v27  ;;  %v8832_v24 = vcombine.high %v1026_v14, %v1030_v15  ;;  %v906_v25 = vld [vmem:[%s9618_s17 + $0x1148] sm:$0xff] }
 0x1f5   : > { %7034 = vmatprep.subr.bf16.mxu1 %v8664_v29  ;;  %v910_v54 = vld [vmem:[%s9618_s17 + $0x1168] sm:$0xff]  ;;  %v8831_v29 = vcombine.low %v1026_v14, %v1030_v15 }
 0x1f6   : > { %6994 = vmatpush1.bf16.msra.mxu0 %v8535_v35  ;;  %v1034_v26 = vld [vmem:[%s9618_s17 + $0x1548] sm:$0xff]  ;;  %v8712_v31 = vcombine.high %v906_v25, %v910_v54 }
 0x1f7   : > { %7045 = vmatprep.subr.bf16.mxu0 %v8672_v38  ;;  %v1038_v27 = vld [vmem:[%s9618_s17 + $0x1568] sm:$0xff]  ;;  %v8711_v38 = vcombine.low %v906_v25, %v910_v54 }
 0x1f8   : > { %7035 = vmatpush1.bf16.msra.mxu1 %v8663_v36  ;;  %v8840_v32 = vcombine.high %v1034_v26, %v1038_v27  ;;  %v914_v33 = vld [vmem:[%s9618_s17 + $0x1188] sm:$0xff] }
 0x1f9   : > { %7086 = vmatprep.subr.bf16.mxu1 %v8800_v39  ;;  %6996 = vmatmul.mubr.bf16.vlgmr.msra.gmra.mrb[20].mxu0 %v9813_v37  ;;  %v918_v34 = vld [vmem:[%s9618_s17 + $0x11a8] sm:$0xff]  ;;  %v8839_v39 = vcombine.low %v1034_v26, %v1038_v27 }
 0x1fa   : > { %7046 = vmatpush1.bf16.msra.mxu0 %v8671_v46  ;;  %7077 = vmatprep.mubr.bf16.mxu0 %v9831_v48  ;;  %v1042_v35 = vld [vmem:[%s9618_s17 + $0x1588] sm:$0xff]  ;;  %v8720_v42 = vcombine.high %v914_v33, %v918_v34 }
 0x1fb   : > { %7037 = vmatmul.mubr.bf16.vlgmr.msra.gmra.mrb[20].mxu1 %v9822_v41  ;;  %7047 = vmatprep.subr.bf16.mxu0 %v8680_v49  ;;  %v1046_v36 = vld [vmem:[%s9618_s17 + $0x15a8] sm:$0xff] }
 0x1fc   : > { %7087 = vmatpush1.bf16.msra.mxu1 %v8799_v47  ;;  %7118 = vmatprep.mubr.bf16.mxu1 %v9838_v50  ;;  %v8848_v45 = vcombine.high %v1042_v35, %v1046_v36  ;;  %v922_v20 = vld [vmem:[%s9618_s17 + $0x11c8] sm:$0xff] }
 0x1fd   : > { %7088 = vmatprep.subr.bf16.mxu1 %v8808_v51  ;;  %v926_v46 = vld [vmem:[%s9618_s17 + $0x11e8] sm:$0xff] }
 0x1fe   : > { %7048 = vmatpush1.bf16.msra.mxu0 %v8679_v8  ;;  %v1050_v53 = vld [vmem:[%s9618_s17 + $0x15c8] sm:$0xff]  ;;  %v8728_v2 = vcombine.high %v922_v20, %v926_v46  ;;  %v8727_v13 = vcombine.low %v922_v20, %v926_v46 }
 0x1ff   : > { %7049 = vmatprep.subr.bf16.mxu0 %v8688_v0  ;;  %v1054_v56 = vld [vmem:[%s9618_s17 + $0x15e8] sm:$0xff] }
 0x200   : > { %7089 = vmatpush1.bf16.msra.mxu1 %v8807_v62  ;;  %v8719_v62 = vcombine.low %v914_v33, %v918_v34  ;;  %v8856_v4 = vcombine.high %v1050_v53, %v1054_v56  ;;  %v8855_v40 = vcombine.low %v1050_v53, %v1054_v56  ;;  %v1090_v53 = vld [vmem:[%s9618_s17 + $0x1708] sm:$0xff] }
 0x201   : > { %7090 = vmatprep.subr.bf16.mxu1 %v8816_v1  ;;  %v1094_v56 = vld [vmem:[%s9618_s17 + $0x1728] sm:$0xff] }
 0x202   : > { %7050 = vmatpush1.bf16.msra.mxu0 %v8687_v6  ;;  %v930_v6 = vld [vmem:[%s9618_s17 + $0x1208] sm:$0xff] }
 0x203   : > { %7051 = vmatprep.subr.bf16.mxu0 %v8696_v10  ;;  %v1058_v10 = vld [vmem:[%s9618_s17 + $0x1608] sm:$0xff] }
 0x204   : > { %7091 = vmatpush1.bf16.msra.mxu1 %v8815_v7  ;;  %v934_v7 = vld [vmem:[%s9618_s17 + $0x1228] sm:$0xff] }
 0x205   : > { %7092 = vmatprep.subr.bf16.mxu1 %v8824_v12  ;;  %v1062_v12 = vld [vmem:[%s9618_s17 + $0x1628] sm:$0xff]  ;;  %v8736_v14 = vcombine.high %v930_v6, %v934_v7  ;;  %v8735_v25 = vcombine.low %v930_v6, %v934_v7 }
 0x206   : > { %7052 = vmatpush1.bf16.msra.mxu0 %v8695_v43  ;;  %v8864_v15 = vcombine.high %v1058_v10, %v1062_v12  ;;  %v938_v43 = vld [vmem:[%s9618_s17 + $0x1248] sm:$0xff]  ;;  %v8863_v54 = vcombine.low %v1058_v10, %v1062_v12 }
 0x207   : > { %7053 = vmatprep.subr.bf16.mxu0 %v8704_v22  ;;  %v1066_v22 = vld [vmem:[%s9618_s17 + $0x1648] sm:$0xff] }
 0x208   : > { %7093 = vmatpush1.bf16.msra.mxu1 %v8823_v18  ;;  %v942_v18 = vld [vmem:[%s9618_s17 + $0x1268] sm:$0xff] }
 0x209   : > { %7094 = vmatprep.subr.bf16.mxu1 %v8832_v24  ;;  %v1070_v24 = vld [vmem:[%s9618_s17 + $0x1668] sm:$0xff]  ;;  %v8744_v26 = vcombine.high %v938_v43, %v942_v18  ;;  %v8743_v33 = vcombine.low %v938_v43, %v942_v18 }
 0x20a   : > { %7054 = vmatpush1.bf16.msra.mxu0 %v8703_v55  ;;  %v8872_v27 = vcombine.high %v1066_v22, %v1070_v24  ;;  %v946_v55 = vld [vmem:[%s9618_s17 + $0x1288] sm:$0xff]  ;;  %v8871_v34 = vcombine.low %v1066_v22, %v1070_v24 }
 0x20b   : > { %7055 = vmatprep.subr.bf16.mxu0 %v8712_v31  ;;  %v1074_v31 = vld [vmem:[%s9618_s17 + $0x1688] sm:$0xff] }
 0x20c   : > { %7095 = vmatpush1.bf16.msra.mxu1 %v8831_v29  ;;  %v6751_v44 = vpop.f32.mrb[8].mxu0  ;;  %v950_v29 = vld [vmem:[%s9618_s17 + $0x12a8] sm:$0xff] }
 0x20d   : > { %7096 = vmatprep.subr.bf16.mxu1 %v8840_v32  ;;  %v6752_v47 = vadd.f32 %v6751_v44, %v10103_v11  ;;  %v6753_v51 = vpop.f32.mrb[9].mxu0  ;;  %v8847_v11 = vcombine.low %v1042_v35, %v1046_v36  ;;  %v1078_v32 = vld [vmem:[%s9618_s17 + $0x16a8] sm:$0xff]  ;;  %v8752_v35 = vcombine.high %v946_v55, %v950_v29 }
 0x20e   : > { %v6792_v49 = vpop.f32.mrb[8].mxu1  ;;  %v6754_v57 = vadd.f32 %v6753_v51, %v10105_v3  ;;  %v6755_v8 = vpop.f32.mrb[10].mxu0  ;;  %7056 = vmatpush1.bf16.msra.mxu0 %v8711_v38  ;;  %v8880_v36 = vcombine.high %v1074_v31, %v1078_v32  ;;  %v954_v38 = vld [vmem:[%s9618_s17 + $0x12c8] sm:$0xff]  ;;  %v8879_v20 = vcombine.low %v1074_v31, %v1078_v32 }
 0x20f   : > { %v6794_v61 = vpop.f32.mrb[9].mxu1  ;;  %v10177_v0 = vadd.f32 %v6792_v49, %v6752_v47  ;;  %v6756_v58 = vpop.f32.mrb[11].mxu0  ;;  %7057 = vmatprep.subr.bf16.mxu0 %v8720_v42  ;;  %v1082_v42 = vld [vmem:[%s9618_s17 + $0x16c8] sm:$0xff] }
 0x210   : > { %v6796_v1 = vpop.f32.mrb[10].mxu1  ;;  %7097 = vmatpush1.bf16.msra.mxu1 %v8839_v39  ;;  %v10179_v63 = vadd.f32 %v6794_v61, %v6754_v57  ;;  %v958_v39 = vld [vmem:[%s9618_s17 + $0x12e8] sm:$0xff] }
 0x211   : > { %v6797_v3 = vpop.f32.mrb[11].mxu1  ;;  %7098 = vmatprep.subr.bf16.mxu1 %v8848_v45  ;;  %v1086_v44 = vld [vmem:[%s9618_s17 + $0x16e8] sm:$0xff]  ;;  %v8751_v45 = vcombine.low %v946_v55, %v950_v29  ;;  %v8760_v46 = vcombine.high %v954_v38, %v958_v39  ;;  %v8759_v57 = vcombine.low %v954_v38, %v958_v39 }
 0x212   : > { %7058 = vmatpush1.bf16.msra.mxu0 %v8719_v62  ;;  %v8888_v47 = vcombine.high %v1082_v42, %v1086_v44  ;;  %v962_v49 = vld [vmem:[%s9618_s17 + $0x1308] sm:$0xff]  ;;  %v8887_v61 = vcombine.low %v1082_v42, %v1086_v44  ;;  %v8896_v62 = vcombine.high %v1090_v53, %v1094_v56 }
 0x213   : > { %7059 = vmatprep.subr.bf16.mxu0 %v8728_v2  ;;  %v966_v51 = vld [vmem:[%s9618_s17 + $0x1328] sm:$0xff] }
 0x214   : > { %7099 = vmatpush1.bf16.msra.mxu1 %v8847_v11  ;;  %v8768_v8 = vcombine.high %v962_v49, %v966_v51  ;;  %v970_v1 = vld [vmem:[%s9618_s17 + $0x1348] sm:$0xff]  ;;  %v8767_v3 = vcombine.low %v962_v49, %v966_v51 }
 0x215   : > { %7100 = vmatprep.subr.bf16.mxu1 %v8856_v4  ;;  %v974_v58 = vld [vmem:[%s9618_s17 + $0x1368] sm:$0xff]  ;;  %v8895_v4 = vcombine.low %v1090_v53, %v1094_v56 }
 0x216   : > { %7060 = vmatpush1.bf16.msra.mxu0 %v8727_v13  ;;  %v1098_v11 = vld [vmem:[%s9618_s17 + $0x1748] sm:$0xff]  ;;  %v8776_v6 = vcombine.high %v970_v1, %v974_v58 }
 0x217   : > { %7061 = vmatprep.subr.bf16.mxu0 %v8736_v14  ;;  %v1102_v2 = vld [vmem:[%s9618_s17 + $0x1768] sm:$0xff]  ;;  %v8775_v14 = vcombine.low %v970_v1, %v974_v58 }
 0x218   : > { %7101 = vmatpush1.bf16.msra.mxu1 %v8855_v40  ;;  %v8904_v7 = vcombine.high %v1098_v11, %v1102_v2  ;;  %v978_v10 = vld [vmem:[%s9618_s17 + $0x1388] sm:$0xff] }
 0x219   : > { %7102 = vmatprep.subr.bf16.mxu1 %v8864_v15  ;;  %v982_v12 = vld [vmem:[%s9618_s17 + $0x13a8] sm:$0xff]  ;;  %v8903_v15 = vcombine.low %v1098_v11, %v1102_v2 }
 0x21a   : > { %7062 = vmatpush1.bf16.msra.mxu0 %v8735_v25  ;;  %v1106_v13 = vld [vmem:[%s9618_s17 + $0x1788] sm:$0xff]  ;;  %v8784_v43 = vcombine.high %v978_v10, %v982_v12 }
 0x21b   : > { %7063 = vmatprep.subr.bf16.mxu0 %v8744_v26  ;;  %v1110_v40 = vld [vmem:[%s9618_s17 + $0x17a8] sm:$0xff]  ;;  %v8783_v26 = vcombine.low %v978_v10, %v982_v12 }
 0x21c   : > { %7103 = vmatpush1.bf16.msra.mxu1 %v8863_v54  ;;  %v8912_v18 = vcombine.high %v1106_v13, %v1110_v40  ;;  %v986_v22 = vld [vmem:[%s9618_s17 + $0x13c8] sm:$0xff] }
 0x21d   : > { %7104 = vmatprep.subr.bf16.mxu1 %v8872_v27  ;;  %v990_v24 = vld [vmem:[%s9618_s17 + $0x13e8] sm:$0xff]  ;;  %v8911_v27 = vcombine.low %v1106_v13, %v1110_v40 }
 0x21e   : > { %7064 = vmatpush1.bf16.msra.mxu0 %v8743_v33  ;;  %v1114_v25 = vld [vmem:[%s9618_s17 + $0x17c8] sm:$0xff]  ;;  %v8792_v55 = vcombine.high %v986_v22, %v990_v24 }
 0x21f   : > { %7065 = vmatprep.subr.bf16.mxu0 %v8752_v35  ;;  %v1118_v54 = vld [vmem:[%s9618_s17 + $0x17e8] sm:$0xff]  ;;  %v8791_v35 = vcombine.low %v986_v22, %v990_v24 }
 0x220   : > { %7105 = vmatpush1.bf16.msra.mxu1 %v8871_v34  ;;  %v8920_v29 = vcombine.high %v1114_v25, %v1118_v54  ;;  %v1122_v31 = vld [vmem:[%s9618_s17 + $0x1808] sm:$0xff] }
 0x221   : > { %7106 = vmatprep.subr.bf16.mxu1 %v8880_v36  ;;  %v1126_v32 = vld [vmem:[%s9618_s17 + $0x1828] sm:$0xff]  ;;  %v8919_v36 = vcombine.low %v1114_v25, %v1118_v54 }
 0x222   : > { %7066 = vmatpush1.bf16.msra.mxu0 %v8751_v45  ;;  %v1250_v33 = vld [vmem:[%s9618_s17 + $0x1c08] sm:$0xff]  ;;  %v8928_v38 = vcombine.high %v1122_v31, %v1126_v32 }
 0x223   : > { %7067 = vmatprep.subr.bf16.mxu0 %v8760_v46  ;;  %v1254_v34 = vld [vmem:[%s9618_s17 + $0x1c28] sm:$0xff]  ;;  %v8927_v46 = vcombine.low %v1122_v31, %v1126_v32 }
 0x224   : > { %7107 = vmatpush1.bf16.msra.mxu1 %v8879_v20  ;;  %v9056_v39 = vcombine.high %v1250_v33, %v1254_v34  ;;  %v1130_v42 = vld [vmem:[%s9618_s17 + $0x1848] sm:$0xff] }
 0x225   : > { %7108 = vmatprep.subr.bf16.mxu1 %v8888_v47  ;;  %v1134_v44 = vld [vmem:[%s9618_s17 + $0x1868] sm:$0xff]  ;;  %v9055_v47 = vcombine.low %v1250_v33, %v1254_v34 }
 0x226   : > { %7068 = vmatpush1.bf16.msra.mxu0 %v8759_v57  ;;  %v1258_v45 = vld [vmem:[%s9618_s17 + $0x1c48] sm:$0xff]  ;;  %v8936_v49 = vcombine.high %v1130_v42, %v1134_v44 }
 0x227   : > { %7069 = vmatprep.subr.bf16.mxu0 %v8768_v8  ;;  %v1262_v20 = vld [vmem:[%s9618_s17 + $0x1c68] sm:$0xff]  ;;  %v8935_v8 = vcombine.low %v1130_v42, %v1134_v44 }
 0x228   : > { %7109 = vmatpush1.bf16.msra.mxu1 %v8887_v61  ;;  %v9064_v51 = vcombine.high %v1258_v45, %v1262_v20  ;;  %v1138_v53 = vld [vmem:[%s9618_s17 + $0x1888] sm:$0xff] }
 0x229   : > { %7110 = vmatprep.subr.bf16.mxu1 %v8896_v62  ;;  %v1142_v56 = vld [vmem:[%s9618_s17 + $0x18a8] sm:$0xff]  ;;  %v9063_v62 = vcombine.low %v1258_v45, %v1262_v20 }
 0x22a   : > { %7070 = vmatpush1.bf16.msra.mxu0 %v8767_v3  ;;  %v1266_v57 = vld [vmem:[%s9618_s17 + $0x1c88] sm:$0xff]  ;;  %v8944_v1 = vcombine.high %v1138_v53, %v1142_v56 }
 0x22b   : > { %7071 = vmatprep.subr.bf16.mxu0 %v8776_v6  ;;  %v1270_v61 = vld [vmem:[%s9618_s17 + $0x1ca8] sm:$0xff]  ;;  %v8943_v6 = vcombine.low %v1138_v53, %v1142_v56 }
 0x22c   : > { %7111 = vmatpush1.bf16.msra.mxu1 %v8895_v4  ;;  %v9072_v58 = vcombine.high %v1266_v57, %v1270_v61  ;;  %v1146_v11 = vld [vmem:[%s9618_s17 + $0x18c8] sm:$0xff] }
 0x22d   : > { %7112 = vmatprep.subr.bf16.mxu1 %v8904_v7  ;;  %v1150_v2 = vld [vmem:[%s9618_s17 + $0x18e8] sm:$0xff]  ;;  %v9071_v7 = vcombine.low %v1266_v57, %v1270_v61  ;;  %v337_v57 = vld [vmem:[#allocation2] sm:$0xff] }
 0x22e   : > { %7072 = vmatpush1.bf16.msra.mxu0 %v8775_v14  ;;  %v1274_v3 = vld [vmem:[%s9618_s17 + $0x1cc8] sm:$0xff]  ;;  %v8952_v10 = vcombine.high %v1146_v11, %v1150_v2 }
 0x22f   : > { %7073 = vmatprep.subr.bf16.mxu0 %v8784_v43  ;;  %v1278_v4 = vld [vmem:[%s9618_s17 + $0x1ce8] sm:$0xff]  ;;  %v8951_v43 = vcombine.low %v1146_v11, %v1150_v2 }
 0x230   : > { %7113 = vmatpush1.bf16.msra.mxu1 %v8903_v15  ;;  %v9080_v12 = vcombine.high %v1274_v3, %v1278_v4  ;;  %v1154_v13 = vld [vmem:[%s9618_s17 + $0x1908] sm:$0xff] }
 0x231   : > { %7114 = vmatprep.subr.bf16.mxu1 %v8912_v18  ;;  %v1158_v40 = vld [vmem:[%s9618_s17 + $0x1928] sm:$0xff]  ;;  %v9079_v18 = vcombine.low %v1274_v3, %v1278_v4 }
 0x232   : > { %7074 = vmatpush1.bf16.msra.mxu0 %v8783_v26  ;;  %v1282_v14 = vld [vmem:[%s9618_s17 + $0x1d08] sm:$0xff]  ;;  %v8960_v22 = vcombine.high %v1154_v13, %v1158_v40 }
 0x233   : > { %7075 = vmatprep.subr.bf16.mxu0 %v8792_v55  ;;  %v1286_v15 = vld [vmem:[%s9618_s17 + $0x1d28] sm:$0xff]  ;;  %v8959_v55 = vcombine.low %v1154_v13, %v1158_v40 }
 0x234   : > { %7115 = vmatpush1.bf16.msra.mxu1 %v8911_v27  ;;  %v9088_v24 = vcombine.high %v1282_v14, %v1286_v15  ;;  %v1162_v25 = vld [vmem:[%s9618_s17 + $0x1948] sm:$0xff] }
 0x235   : > { %7116 = vmatprep.subr.bf16.mxu1 %v8920_v29  ;;  %v1166_v54 = vld [vmem:[%s9618_s17 + $0x1968] sm:$0xff]  ;;  %v9087_v29 = vcombine.low %v1282_v14, %v1286_v15 }
 0x236   : > { %7076 = vmatpush1.bf16.msra.mxu0 %v8791_v35  ;;  %v1290_v26 = vld [vmem:[%s9618_s17 + $0x1d48] sm:$0xff]  ;;  %v8968_v31 = vcombine.high %v1162_v25, %v1166_v54 }
 0x237   : > { %7127 = vmatprep.subr.bf16.mxu0 %v8928_v38  ;;  %v1294_v27 = vld [vmem:[%s9618_s17 + $0x1d68] sm:$0xff]  ;;  %v8967_v38 = vcombine.low %v1162_v25, %v1166_v54 }
 0x238   : > { %7117 = vmatpush1.bf16.msra.mxu1 %v8919_v36  ;;  %v9096_v32 = vcombine.high %v1290_v26, %v1294_v27  ;;  %v1170_v33 = vld [vmem:[%s9618_s17 + $0x1988] sm:$0xff] }
 0x239   : > { %7168 = vmatprep.subr.bf16.mxu1 %v9056_v39  ;;  %7078 = vmatmul.mubr.bf16.vlgmr.msra.gmra.mrb[24].mxu0 %v9903_v5  ;;  %v1174_v34 = vld [vmem:[%s9618_s17 + $0x19a8] sm:$0xff]  ;;  %v9095_v39 = vcombine.low %v1290_v26, %v1294_v27 }
 0x23a   : > { %7128 = vmatpush1.bf16.msra.mxu0 %v8927_v46  ;;  %7159 = vmatprep.mubr.bf16.mxu0 %v9921_v16  ;;  %v1298_v35 = vld [vmem:[%s9618_s17 + $0x1d88] sm:$0xff]  ;;  %v8976_v42 = vcombine.high %v1170_v33, %v1174_v34 }
 0x23b   : > { %7119 = vmatmul.mubr.bf16.vlgmr.msra.gmra.mrb[24].mxu1 %v9912_v9  ;;  %7129 = vmatprep.subr.bf16.mxu0 %v8936_v49  ;;  %v1302_v36 = vld [vmem:[%s9618_s17 + $0x1da8] sm:$0xff] }
 0x23c   : > { %7169 = vmatpush1.bf16.msra.mxu1 %v9055_v47  ;;  %7200 = vmatprep.mubr.bf16.mxu1 %v9928_v19  ;;  %v9104_v45 = vcombine.high %v1298_v35, %v1302_v36  ;;  %v1178_v20 = vld [vmem:[%s9618_s17 + $0x19c8] sm:$0xff]  ;;  %v9103_v3 = vcombine.low %v1298_v35, %v1302_v36 }
 0x23d   : > { %7170 = vmatprep.subr.bf16.mxu1 %v9064_v51  ;;  %v1182_v46 = vld [vmem:[%s9618_s17 + $0x19e8] sm:$0xff] }
 0x23e   : > { %7130 = vmatpush1.bf16.msra.mxu0 %v8935_v8  ;;  %v1306_v53 = vld [vmem:[%s9618_s17 + $0x1dc8] sm:$0xff]  ;;  %v8984_v4 = vcombine.high %v1178_v20, %v1182_v46 }
 0x23f   : > { %7131 = vmatprep.subr.bf16.mxu0 %v8944_v1  ;;  %v1310_v56 = vld [vmem:[%s9618_s17 + $0x1de8] sm:$0xff]  ;;  %v8975_v1 = vcombine.low %v1170_v33, %v1174_v34 }
 0x240   : > { %7171 = vmatpush1.bf16.msra.mxu1 %v9063_v62  ;;  %v338_v11 = vld [vmem:[#allocation2 + $0x8] sm:$0xff] }
 0x241   : > { %7172 = vmatprep.subr.bf16.mxu1 %v9072_v58  ;;  %v1314_v40 = vld [vmem:[%s9618_s17 + $0x1e08] sm:$0xff] }
 0x242   : > { %7132 = vmatpush1.bf16.msra.mxu0 %v8943_v6  ;;  %v1318_v14 = vld [vmem:[%s9618_s17 + $0x1e28] sm:$0xff] }
 0x243   : > { %7133 = vmatprep.subr.bf16.mxu0 %v8952_v10  ;;  %v1186_v10 = vld [vmem:[%s9618_s17 + $0x1a08] sm:$0xff] }
 0x244   : > { %7173 = vmatpush1.bf16.msra.mxu1 %v9071_v7  ;;  %v1194_v25 = vld [vmem:[%s9618_s17 + $0x1a48] sm:$0xff] }
 0x245   : > { %7174 = vmatprep.subr.bf16.mxu1 %v9080_v12  ;;  %v1190_v12 = vld [vmem:[%s9618_s17 + $0x1a28] sm:$0xff] }
 0x246   : > { %7134 = vmatpush1.bf16.msra.mxu0 %v8951_v43  ;;  %v8983_v43 = vcombine.low %v1178_v20, %v1182_v46  ;;  %v1198_v54 = vld [vmem:[%s9618_s17 + $0x1a68] sm:$0xff] }
 0x247   : > { %7135 = vmatprep.subr.bf16.mxu0 %v8960_v22  ;;  %v8992_v22 = vcombine.high %v1186_v10, %v1190_v12  ;;  %v1322_v26 = vld [vmem:[%s9618_s17 + $0x1e48] sm:$0xff] }
 0x248   : > { %7175 = vmatpush1.bf16.msra.mxu1 %v9079_v18  ;;  %v9111_v18 = vcombine.low %v1306_v53, %v1310_v56  ;;  %v1326_v27 = vld [vmem:[%s9618_s17 + $0x1e68] sm:$0xff] }
 0x249   : > { %7176 = vmatprep.subr.bf16.mxu1 %v9088_v24  ;;  %v9120_v24 = vcombine.high %v1314_v40, %v1318_v14  ;;  %v1202_v33 = vld [vmem:[%s9618_s17 + $0x1a88] sm:$0xff] }
 0x24a   : > { %7136 = vmatpush1.bf16.msra.mxu0 %v8959_v55  ;;  %v8991_v55 = vcombine.low %v1186_v10, %v1190_v12  ;;  %v1206_v34 = vld [vmem:[%s9618_s17 + $0x1aa8] sm:$0xff] }
 0x24b   : > { %7137 = vmatprep.subr.bf16.mxu0 %v8968_v31  ;;  %v9000_v31 = vcombine.high %v1194_v25, %v1198_v54  ;;  %v1330_v35 = vld [vmem:[%s9618_s17 + $0x1e88] sm:$0xff] }
 0x24c   : > { %7177 = vmatpush1.bf16.msra.mxu1 %v9087_v29  ;;  %v6833_v44 = vpop.f32.mrb[12].mxu0  ;;  %v9119_v29 = vcombine.low %v1314_v40, %v1318_v14  ;;  %v1334_v36 = vld [vmem:[%s9618_s17 + $0x1ea8] sm:$0xff] }
 0x24d   : > { %7178 = vmatprep.subr.bf16.mxu1 %v9096_v32  ;;  %v6834_v47 = vadd.f32 %v6833_v44, %v10177_v0  ;;  %v6835_v51 = vpop.f32.mrb[13].mxu0  ;;  %v9128_v32 = vcombine.high %v1322_v26, %v1326_v27  ;;  %v9136_v44 = vcombine.high %v1330_v35, %v1334_v36  ;;  %v1214_v20 = vld [vmem:[%s9618_s17 + $0x1ae8] sm:$0xff] }
 0x24e   : > { %v6874_v49 = vpop.f32.mrb[12].mxu1  ;;  %v6836_v61 = vadd.f32 %v6835_v51, %v10179_v63  ;;  %v6837_v62 = vpop.f32.mrb[14].mxu0  ;;  %7138 = vmatpush1.bf16.msra.mxu0 %v8967_v38  ;;  %v9112_v63 = vcombine.high %v1306_v53, %v1310_v56  ;;  %v8999_v38 = vcombine.low %v1194_v25, %v1198_v54  ;;  %v1338_v46 = vld [vmem:[%s9618_s17 + $0x1ec8] sm:$0xff]  ;;  %v9135_v51 = vcombine.low %v1330_v35, %v1334_v36  ;;  %v483_v35 = vld [vmem:[%s9618_s17 + $0x410] sm:$0xff] }
 0x24f   : > { %v6876_v8 = vpop.f32.mrb[13].mxu1  ;;  %v6875_v58 = vadd.f32 %v6874_v49, %v6834_v47  ;;  %v6838_v0 = vpop.f32.mrb[15].mxu0  ;;  %7139 = vmatprep.subr.bf16.mxu0 %v8976_v42  ;;  %v9008_v42 = vcombine.high %v1202_v33, %v1206_v34  ;;  %v1342_v47 = vld [vmem:[%s9618_s17 + $0x1ee8] sm:$0xff]  ;;  %v9007_v49 = vcombine.low %v1202_v33, %v1206_v34  ;;  %v355_v33 = vld [vmem:[%s9618_s17 + $0x10] sm:$0xff] }
 0x250   : > { %v6878_v2 = vpop.f32.mrb[14].mxu1  ;;  %7179 = vmatpush1.bf16.msra.mxu1 %v9095_v39  ;;  %v6877_v6 = vadd.f32 %v6876_v8, %v6836_v61  ;;  %v9127_v39 = vcombine.low %v1322_v26, %v1326_v27  ;;  %v9144_v56 = vcombine.high %v1338_v46, %v1342_v47  ;;  %v1222_v61 = vld [vmem:[%s9618_s17 + $0x1b28] sm:$0xff]  ;;  %v359_v34 = vld [vmem:[%s9618_s17 + $0x30] sm:$0xff] }
 0x251   : > { %v6879_v7 = vpop.f32.mrb[15].mxu1  ;;  %7180 = vmatprep.subr.bf16.mxu1 %v9104_v45  ;;  %v7865_v13 = vadd.f32 %v6875_v58, %v337_v57  ;;  %v1210_v45 = vld [vmem:[%s9618_s17 + $0x1ac8] sm:$0xff]  ;;  %v9143_v58 = vcombine.low %v1338_v46, %v1342_v47  ;;  %v487_v36 = vld [vmem:[%s9618_s17 + $0x430] sm:$0xff] }
 0x252   : > { %v7866_v15 = vadd.f32 %v6877_v6, %v338_v11  ;;  %7140 = vmatpush1.bf16.msra.mxu0 %v8975_v1  ;;  %v9016_v53 = vcombine.high %v1210_v45, %v1214_v20  ;;  %v1218_v57 = vld [vmem:[%s9618_s17 + $0x1b08] sm:$0xff]  ;;  %v9015_v1 = vcombine.low %v1210_v45, %v1214_v20  ;;  %v363_v45 = vld [vmem:[%s9618_s17 + $0x50] sm:$0xff] }
 0x253   : > { %7873 = vst [vmem:[#allocation2] sm:$0xff] %v7865_v13  ;;  %7141 = vmatprep.subr.bf16.mxu0 %v8984_v4  ;;  %v1346_v8 = vld [vmem:[%s9618_s17 + $0x1f08] sm:$0xff]  ;;  %v9024_v11 = vcombine.high %v1218_v57, %v1222_v61  ;;  %v9023_v7 = vcombine.low %v1218_v57, %v1222_v61  ;;  %v367_v20 = vld [vmem:[%s9618_s17 + $0x70] sm:$0xff] }
 0x254   : > { %7181 = vmatpush1.bf16.msra.mxu1 %v9103_v3  ;;  %7874 = vst [vmem:[#allocation2 + $0x8] sm:$0xff] %v7866_v15  ;;  %v1350_v62 = vld [vmem:[%s9618_s17 + $0x1f28] sm:$0xff]  ;;  %v491_v46 = vld [vmem:[%s9618_s17 + $0x450] sm:$0xff] }
 0x255   : > { %7182 = vmatprep.subr.bf16.mxu1 %v9112_v63  ;;  %v9152_v2 = vcombine.high %v1346_v8, %v1350_v62  ;;  %v1226_v0 = vld [vmem:[%s9618_s17 + $0x1b48] sm:$0xff]  ;;  %v9151_v63 = vcombine.low %v1346_v8, %v1350_v62  ;;  %v495_v47 = vld [vmem:[%s9618_s17 + $0x470] sm:$0xff] }
 0x256   : > { %7142 = vmatpush1.bf16.msra.mxu0 %v8983_v43  ;;  %v1230_v3 = vld [vmem:[%s9618_s17 + $0x1b68] sm:$0xff]  ;;  %v371_v57 = vld [vmem:[%s9618_s17 + $0x90] sm:$0xff] }
 0x257   : > { %7143 = vmatprep.subr.bf16.mxu0 %v8992_v22  ;;  %v1354_v4 = vld [vmem:[%s9618_s17 + $0x1f48] sm:$0xff]  ;;  %v9032_v10 = vcombine.high %v1226_v0, %v1230_v3  ;;  %v9031_v43 = vcombine.low %v1226_v0, %v1230_v3  ;;  %v375_v61 = vld [vmem:[%s9618_s17 + $0xb0] sm:$0xff] }
 0x258   : > { %7183 = vmatpush1.bf16.msra.mxu1 %v9111_v18  ;;  %v1358_v6 = vld [vmem:[%s9618_s17 + $0x1f68] sm:$0xff]  ;;  %v499_v8 = vld [vmem:[%s9618_s17 + $0x490] sm:$0xff] }
 0x259   : > { %7184 = vmatprep.subr.bf16.mxu1 %v9120_v24  ;;  %v9160_v12 = vcombine.high %v1354_v4, %v1358_v6  ;;  %v1234_v13 = vld [vmem:[%s9618_s17 + $0x1b88] sm:$0xff]  ;;  %v9159_v18 = vcombine.low %v1354_v4, %v1358_v6  ;;  %v503_v62 = vld [vmem:[%s9618_s17 + $0x4b0] sm:$0xff] }
 0x25a   : > { %7144 = vmatpush1.bf16.msra.mxu0 %v8991_v55  ;;  %v1238_v40 = vld [vmem:[%s9618_s17 + $0x1ba8] sm:$0xff]  ;;  %v379_v0 = vld [vmem:[%s9618_s17 + $0xd0] sm:$0xff] }
 0x25b   : > { %7145 = vmatprep.subr.bf16.mxu0 %v9000_v31  ;;  %v1362_v14 = vld [vmem:[%s9618_s17 + $0x1f88] sm:$0xff]  ;;  %v9040_v22 = vcombine.high %v1234_v13, %v1238_v40  ;;  %v9039_v55 = vcombine.low %v1234_v13, %v1238_v40  ;;  %v383_v3 = vld [vmem:[%s9618_s17 + $0xf0] sm:$0xff] }
 0x25c   : > { %7185 = vmatpush1.bf16.msra.mxu1 %v9119_v29  ;;  %v1366_v15 = vld [vmem:[%s9618_s17 + $0x1fa8] sm:$0xff]  ;;  %v507_v4 = vld [vmem:[%s9618_s17 + $0x4d0] sm:$0xff] }
 0x25d   : > { %7186 = vmatprep.subr.bf16.mxu1 %v9128_v32  ;;  %v9168_v24 = vcombine.high %v1362_v14, %v1366_v15  ;;  %v1242_v25 = vld [vmem:[%s9618_s17 + $0x1bc8] sm:$0xff]  ;;  %v9167_v29 = vcombine.low %v1362_v14, %v1366_v15  ;;  %v511_v6 = vld [vmem:[%s9618_s17 + $0x4f0] sm:$0xff] }
 0x25e   : > { %7146 = vmatpush1.bf16.msra.mxu0 %v8999_v38  ;;  %v1246_v54 = vld [vmem:[%s9618_s17 + $0x1be8] sm:$0xff]  ;;  %v387_v13 = vld [vmem:[%s9618_s17 + $0x110] sm:$0xff] }
 0x25f   : > { %7147 = vmatprep.subr.bf16.mxu0 %v9008_v42  ;;  %v1370_v26 = vld [vmem:[%s9618_s17 + $0x1fc8] sm:$0xff]  ;;  %v9048_v31 = vcombine.high %v1242_v25, %v1246_v54  ;;  %v9047_v38 = vcombine.low %v1242_v25, %v1246_v54  ;;  %v8162_v42 = vcombine.high %v355_v33, %v359_v34  ;;  %v391_v40 = vld [vmem:[%s9618_s17 + $0x130] sm:$0xff] }
 0x260   : > { %7187 = vmatpush1.bf16.msra.mxu1 %v9127_v39  ;;  %v1374_v27 = vld [vmem:[%s9618_s17 + $0x1fe8] sm:$0xff]  ;;  %v515_v14 = vld [vmem:[%s9618_s17 + $0x510] sm:$0xff] }
 0x261   : > { %7188 = vmatprep.subr.bf16.mxu1 %v9136_v44  ;;  %v9176_v32 = vcombine.high %v1370_v26, %v1374_v27  ;;  %v9175_v39 = vcombine.low %v1370_v26, %v1374_v27  ;;  %v8290_v44 = vcombine.high %v483_v35, %v487_v36  ;;  %v519_v15 = vld [vmem:[%s9618_s17 + $0x530] sm:$0xff] }
 0x262   : > { %7148 = vmatpush1.bf16.msra.mxu0 %v9007_v49  ;;  %v8161_v49 = vcombine.low %v355_v33, %v359_v34  ;;  %v395_v25 = vld [vmem:[%s9618_s17 + $0x150] sm:$0xff] }
 0x263   : > { %7149 = vmatprep.subr.bf16.mxu0 %v9016_v53  ;;  %v8170_v53 = vcombine.high %v363_v45, %v367_v20  ;;  %v399_v54 = vld [vmem:[%s9618_s17 + $0x170] sm:$0xff] }
 0x264   : > { %7189 = vmatpush1.bf16.msra.mxu1 %v9135_v51  ;;  %v8289_v51 = vcombine.low %v483_v35, %v487_v36  ;;  %v523_v26 = vld [vmem:[%s9618_s17 + $0x550] sm:$0xff] }
 0x265   : > { %7190 = vmatprep.subr.bf16.mxu1 %v9144_v56  ;;  %v8298_v56 = vcombine.high %v491_v46, %v495_v47  ;;  %v527_v27 = vld [vmem:[%s9618_s17 + $0x570] sm:$0xff] }
 0x266   : > { %7150 = vmatpush1.bf16.msra.mxu0 %v9015_v1  ;;  %v8169_v1 = vcombine.low %v363_v45, %v367_v20  ;;  %v403_v33 = vld [vmem:[%s9618_s17 + $0x190] sm:$0xff] }
 0x267   : > { %7151 = vmatprep.subr.bf16.mxu0 %v9024_v11  ;;  %v8178_v11 = vcombine.high %v371_v57, %v375_v61  ;;  %v407_v34 = vld [vmem:[%s9618_s17 + $0x1b0] sm:$0xff] }
 0x268   : > { %7191 = vmatpush1.bf16.msra.mxu1 %v9143_v58  ;;  %v8297_v58 = vcombine.low %v491_v46, %v495_v47  ;;  %v531_v35 = vld [vmem:[%s9618_s17 + $0x590] sm:$0xff] }
 0x269   : > { %7192 = vmatprep.subr.bf16.mxu1 %v9152_v2  ;;  %v8306_v2 = vcombine.high %v499_v8, %v503_v62  ;;  %v535_v36 = vld [vmem:[%s9618_s17 + $0x5b0] sm:$0xff] }
 0x26a   : > { %7152 = vmatpush1.bf16.msra.mxu0 %v9023_v7  ;;  %v8177_v7 = vcombine.low %v371_v57, %v375_v61  ;;  %v8338_v45 = vcombine.high %v531_v35, %v535_v36  ;;  %v411_v20 = vld [vmem:[%s9618_s17 + $0x1d0] sm:$0xff] }
 0x26b   : > { %7153 = vmatprep.subr.bf16.mxu0 %v9032_v10  ;;  %v8186_v10 = vcombine.high %v379_v0, %v383_v3  ;;  %v415_v46 = vld [vmem:[%s9618_s17 + $0x1f0] sm:$0xff] }
 0x26c   : > { %7193 = vmatpush1.bf16.msra.mxu1 %v9151_v63  ;;  %v8305_v63 = vcombine.low %v499_v8, %v503_v62  ;;  %v8209_v8 = vcombine.low %v403_v33, %v407_v34 }
 0x26d   : > { %7194 = vmatprep.subr.bf16.mxu1 %v9160_v12  ;;  %v8314_v12 = vcombine.high %v507_v4, %v511_v6 }
 0x26e   : > { %7154 = vmatpush1.bf16.msra.mxu0 %v9031_v43  ;;  %v8185_v43 = vcombine.low %v379_v0, %v383_v3 }
 0x26f   : > { %7155 = vmatprep.subr.bf16.mxu0 %v9040_v22  ;;  %v8194_v22 = vcombine.high %v387_v13, %v391_v40 }
 0x270   : > { %7195 = vmatpush1.bf16.msra.mxu1 %v9159_v18  ;;  %v8313_v18 = vcombine.low %v507_v4, %v511_v6  ;;  %v419_v4 = vld [vmem:[%s9618_s17 + $0x210] sm:$0xff] }
 0x271   : > { %7196 = vmatprep.subr.bf16.mxu1 %v9168_v24  ;;  %v8322_v24 = vcombine.high %v515_v14, %v519_v15  ;;  %v423_v6 = vld [vmem:[%s9618_s17 + $0x230] sm:$0xff] }
 0x272   : > { %7156 = vmatpush1.bf16.msra.mxu0 %v9039_v55  ;;  %v8193_v55 = vcombine.low %v387_v13, %v391_v40  ;;  %v8226_v13 = vcombine.high %v419_v4, %v423_v6 }
 0x273   : > { %7157 = vmatprep.subr.bf16.mxu0 %v9048_v31  ;;  %v8202_v31 = vcombine.high %v395_v25, %v399_v54 }
 0x274   : > { %7197 = vmatpush1.bf16.msra.mxu1 %v9167_v29  ;;  %v8321_v29 = vcombine.low %v515_v14, %v519_v15  ;;  %v427_v14 = vld [vmem:[%s9618_s17 + $0x250] sm:$0xff] }
 0x275   : > { %7198 = vmatprep.subr.bf16.mxu1 %v9176_v32  ;;  %v8330_v32 = vcombine.high %v523_v26, %v527_v27  ;;  %v431_v15 = vld [vmem:[%s9618_s17 + $0x270] sm:$0xff] }
 0x276   : > { %7158 = vmatpush1.bf16.msra.mxu0 %v9047_v38  ;;  %v8201_v38 = vcombine.low %v395_v25, %v399_v54  ;;  %v8234_v25 = vcombine.high %v427_v14, %v431_v15 }
 0x277   : > { %7209 = vmatprep.subr.bf16.mxu0 %v8162_v42  ;;  %v8210_v42 = vcombine.high %v403_v33, %v407_v34 }
 0x278   : > { %7199 = vmatpush1.bf16.msra.mxu1 %v9175_v39  ;;  %v8329_v39 = vcombine.low %v523_v26, %v527_v27  ;;  %v435_v26 = vld [vmem:[%s9618_s17 + $0x290] sm:$0xff] }
 0x279   : > { %7250 = vmatprep.subr.bf16.mxu1 %v8290_v44  ;;  %7160 = vmatmul.mubr.bf16.vlgmr.msra.gmra.mrb[28].mxu0 %v9993_v23  ;;  %v439_v27 = vld [vmem:[%s9618_s17 + $0x2b0] sm:$0xff] }
 0x27a   : > { %7210 = vmatpush1.bf16.msra.mxu0 %v8161_v49  ;;  %7241 = vmatprep.mubr.bf16.mxu0 %v9673_v59  ;;  %v8242_v33 = vcombine.high %v435_v26, %v439_v27 }
 0x27b   : > { %7201 = vmatmul.mubr.bf16.vlgmr.msra.gmra.mrb[28].mxu1 %v9999_v52  ;;  %7211 = vmatprep.subr.bf16.mxu0 %v8170_v53  ;;  %v543_v53 = vld [vmem:[%s9618_s17 + $0x5f0] sm:$0xff] }
 0x27c   : > { %7251 = vmatpush1.bf16.msra.mxu1 %v8289_v51  ;;  %7282 = vmatprep.mubr.bf16.mxu1 %v9677_v60  ;;  %v539_v51 = vld [vmem:[%s9618_s17 + $0x5d0] sm:$0xff] }
 0x27d   : > { %7252 = vmatprep.subr.bf16.mxu1 %v8298_v56  ;;  %v8346_v3 = vcombine.high %v539_v51, %v543_v53 }
 0x27e   : > { %7212 = vmatpush1.bf16.msra.mxu0 %v8169_v1 }
 0x27f   : > { %7213 = vmatprep.subr.bf16.mxu0 %v8178_v11  ;;  %v8337_v11 = vcombine.low %v531_v35, %v535_v36  ;;  %v443_v35 = vld [vmem:[%s9618_s17 + $0x2d0] sm:$0xff] }
 0x280   : > { %7253 = vmatpush1.bf16.msra.mxu1 %v8297_v58  ;;  %v447_v36 = vld [vmem:[%s9618_s17 + $0x2f0] sm:$0xff] }
 0x281   : > { %7254 = vmatprep.subr.bf16.mxu1 %v8306_v2  ;;  %v8218_v2 = vcombine.high %v411_v20, %v415_v46 }
 0x282   : > { %7214 = vmatpush1.bf16.msra.mxu0 %v8177_v7  ;;  %v547_v7 = vld [vmem:[%s9618_s17 + $0x610] sm:$0xff] }
 0x283   : > { %7215 = vmatprep.subr.bf16.mxu0 %v8186_v10  ;;  %v8217_v10 = vcombine.low %v411_v20, %v415_v46  ;;  %v451_v46 = vld [vmem:[%s9618_s17 + $0x310] sm:$0xff] }
 0x284   : > { %7255 = vmatpush1.bf16.msra.mxu1 %v8305_v63  ;;  %v551_v63 = vld [vmem:[%s9618_s17 + $0x630] sm:$0xff] }
 0x285   : > { %7256 = vmatprep.subr.bf16.mxu1 %v8314_v12  ;;  %v8345_v12 = vcombine.low %v539_v51, %v543_v53  ;;  %v8354_v40 = vcombine.high %v547_v7, %v551_v63  ;;  %v583_v51 = vld [vmem:[%s9618_s17 + $0x730] sm:$0xff]  ;;  %v8249_v53 = vcombine.low %v443_v35, %v447_v36 }
 0x286   : > { %7216 = vmatpush1.bf16.msra.mxu0 %v8185_v43  ;;  %v555_v43 = vld [vmem:[%s9618_s17 + $0x650] sm:$0xff] }
 0x287   : > { %7217 = vmatprep.subr.bf16.mxu0 %v8194_v22  ;;  %v8225_v22 = vcombine.low %v419_v4, %v423_v6 }
 0x288   : > { %7257 = vmatpush1.bf16.msra.mxu1 %v8313_v18  ;;  %v559_v18 = vld [vmem:[%s9618_s17 + $0x670] sm:$0xff] }
 0x289   : > { %7258 = vmatprep.subr.bf16.mxu1 %v8322_v24  ;;  %v8353_v24 = vcombine.low %v547_v7, %v551_v63  ;;  %v8362_v54 = vcombine.high %v555_v43, %v559_v18  ;;  %v467_v7 = vld [vmem:[%s9618_s17 + $0x390] sm:$0xff] }
 0x28a   : > { %7218 = vmatpush1.bf16.msra.mxu0 %v8193_v55  ;;  %v563_v55 = vld [vmem:[%s9618_s17 + $0x690] sm:$0xff] }
 0x28b   : > { %7219 = vmatprep.subr.bf16.mxu0 %v8202_v31  ;;  %v8233_v31 = vcombine.low %v427_v14, %v431_v15  ;;  %v471_v63 = vld [vmem:[%s9618_s17 + $0x3b0] sm:$0xff] }
 0x28c   : > { %7259 = vmatpush1.bf16.msra.mxu1 %v8321_v29  ;;  %v6915_v44 = vpop.f32.mrb[16].mxu0  ;;  %v567_v29 = vld [vmem:[%s9618_s17 + $0x6b0] sm:$0xff]  ;;  %v8274_v14 = vcombine.high %v467_v7, %v471_v63 }
 0x28d   : > { %7260 = vmatprep.subr.bf16.mxu1 %v8330_v32  ;;  %v6917_v49 = vpop.f32.mrb[17].mxu0  ;;  %v8361_v32 = vcombine.low %v555_v43, %v559_v18  ;;  %v8370_v34 = vcombine.high %v563_v55, %v567_v29  ;;  %v475_v43 = vld [vmem:[%s9618_s17 + $0x3d0] sm:$0xff] }
 0x28e   : > { %v6956_v47 = vpop.f32.mrb[16].mxu1  ;;  %v6919_v61 = vpop.f32.mrb[18].mxu0  ;;  %7220 = vmatpush1.bf16.msra.mxu0 %v8201_v38  ;;  %v571_v38 = vld [vmem:[%s9618_s17 + $0x6d0] sm:$0xff] }
 0x28f   : > { %v10319_v56 = vadd.f32 %v6956_v47, %v6915_v44  ;;  %v6958_v57 = vpop.f32.mrb[17].mxu1  ;;  %v6920_v58 = vpop.f32.mrb[19].mxu0  ;;  %7221 = vmatprep.subr.bf16.mxu0 %v8210_v42  ;;  %v8241_v42 = vcombine.low %v435_v26, %v439_v27  ;;  %v8369_v44 = vcombine.low %v563_v55, %v567_v29  ;;  %v455_v47 = vld [vmem:[%s9618_s17 + $0x330] sm:$0xff] }
 0x290   : > { %v10321_v62 = vadd.f32 %v6958_v57, %v6917_v49  ;;  %v6960_v1 = vpop.f32.mrb[18].mxu1  ;;  %7261 = vmatpush1.bf16.msra.mxu1 %v8329_v39  ;;  %v575_v39 = vld [vmem:[%s9618_s17 + $0x6f0] sm:$0xff]  ;;  %v8258_v61 = vcombine.high %v451_v46, %v455_v47 }
 0x291   : > { %v6961_v0 = vpop.f32.mrb[19].mxu1  ;;  %7262 = vmatprep.subr.bf16.mxu1 %v8338_v45  ;;  %v8250_v45 = vcombine.high %v443_v35, %v447_v36  ;;  %v8378_v20 = vcombine.high %v571_v38, %v575_v39  ;;  %v579_v49 = vld [vmem:[%s9618_s17 + $0x710] sm:$0xff]  ;;  %v8377_v57 = vcombine.low %v571_v38, %v575_v39 }
 0x292   : > { %7222 = vmatpush1.bf16.msra.mxu0 %v8209_v8  ;;  %v8386_v8 = vcombine.high %v579_v49, %v583_v51  ;;  %v459_v1 = vld [vmem:[%s9618_s17 + $0x350] sm:$0xff]  ;;  %v8257_v0 = vcombine.low %v451_v46, %v455_v47 }
 0x293   : > { %7223 = vmatprep.subr.bf16.mxu0 %v8218_v2  ;;  %v463_v58 = vld [vmem:[%s9618_s17 + $0x370] sm:$0xff] }
 0x294   : > { %7263 = vmatpush1.bf16.msra.mxu1 %v8337_v11  ;;  %v587_v11 = vld [vmem:[%s9618_s17 + $0x750] sm:$0xff]  ;;  %v8266_v4 = vcombine.high %v459_v1, %v463_v58 }
 0x295   : > { %7264 = vmatprep.subr.bf16.mxu1 %v8346_v3  ;;  %v591_v2 = vld [vmem:[%s9618_s17 + $0x770] sm:$0xff]  ;;  %v8385_v3 = vcombine.low %v579_v49, %v583_v51 }
 0x296   : > { %7224 = vmatpush1.bf16.msra.mxu0 %v8217_v10  ;;  %v8394_v6 = vcombine.high %v587_v11, %v591_v2  ;;  %v595_v10 = vld [vmem:[%s9618_s17 + $0x790] sm:$0xff] }
 0x297   : > { %7225 = vmatprep.subr.bf16.mxu0 %v8226_v13  ;;  %v8265_v13 = vcombine.low %v459_v1, %v463_v58  ;;  %v479_v18 = vld [vmem:[%s9618_s17 + $0x3f0] sm:$0xff] }
 0x298   : > { %7265 = vmatpush1.bf16.msra.mxu1 %v8345_v12  ;;  %v599_v12 = vld [vmem:[%s9618_s17 + $0x7b0] sm:$0xff]  ;;  %v8282_v26 = vcombine.high %v475_v43, %v479_v18 }
 0x299   : > { %7266 = vmatprep.subr.bf16.mxu1 %v8354_v40  ;;  %v8393_v40 = vcombine.low %v587_v11, %v591_v2  ;;  %v8402_v15 = vcombine.high %v595_v10, %v599_v12  ;;  %v611_v55 = vld [vmem:[%s9618_s17 + $0x810] sm:$0xff] }
 0x29a   : > { %7226 = vmatpush1.bf16.msra.mxu0 %v8225_v22  ;;  %v603_v22 = vld [vmem:[%s9618_s17 + $0x7d0] sm:$0xff] }
 0x29b   : > { %7227 = vmatprep.subr.bf16.mxu0 %v8234_v25  ;;  %v8273_v25 = vcombine.low %v467_v7, %v471_v63  ;;  %v615_v29 = vld [vmem:[%s9618_s17 + $0x830] sm:$0xff] }
 0x29c   : > { %7267 = vmatpush1.bf16.msra.mxu1 %v8353_v24  ;;  %v607_v24 = vld [vmem:[%s9618_s17 + $0x7f0] sm:$0xff]  ;;  %v8418_v35 = vcombine.high %v611_v55, %v615_v29 }
 0x29d   : > { %7268 = vmatprep.subr.bf16.mxu1 %v8362_v54  ;;  %v8401_v54 = vcombine.low %v595_v10, %v599_v12  ;;  %v8410_v27 = vcombine.high %v603_v22, %v607_v24  ;;  %v619_v38 = vld [vmem:[%s9618_s17 + $0x850] sm:$0xff] }
 0x29e   : > { %7228 = vmatpush1.bf16.msra.mxu0 %v8233_v31  ;;  %v739_v31 = vld [vmem:[%s9618_s17 + $0xc10] sm:$0xff] }
 0x29f   : > { %7229 = vmatprep.subr.bf16.mxu0 %v8242_v33  ;;  %v8281_v33 = vcombine.low %v475_v43, %v479_v18  ;;  %v623_v39 = vld [vmem:[%s9618_s17 + $0x870] sm:$0xff] }
 0x2a0   : > { %7269 = vmatpush1.bf16.msra.mxu1 %v8361_v32  ;;  %v743_v32 = vld [vmem:[%s9618_s17 + $0xc30] sm:$0xff]  ;;  %v8426_v46 = vcombine.high %v619_v38, %v623_v39 }
 0x2a1   : > { %7270 = vmatprep.subr.bf16.mxu1 %v8370_v34  ;;  %v8409_v34 = vcombine.low %v603_v22, %v607_v24  ;;  %v8546_v36 = vcombine.high %v739_v31, %v743_v32  ;;  %v627_v49 = vld [vmem:[%s9618_s17 + $0x890] sm:$0xff] }
 0x2a2   : > { %7230 = vmatpush1.bf16.msra.mxu0 %v8241_v42  ;;  %v747_v42 = vld [vmem:[%s9618_s17 + $0xc50] sm:$0xff] }
 0x2a3   : > { %7231 = vmatprep.subr.bf16.mxu0 %v8250_v45  ;;  %v8417_v45 = vcombine.low %v611_v55, %v615_v29  ;;  %v631_v51 = vld [vmem:[%s9618_s17 + $0x8b0] sm:$0xff] }
 0x2a4   : > { %7271 = vmatpush1.bf16.msra.mxu1 %v8369_v44  ;;  %v751_v44 = vld [vmem:[%s9618_s17 + $0xc70] sm:$0xff]  ;;  %v8434_v1 = vcombine.high %v627_v49, %v631_v51 }
 0x2a5   : > { %7272 = vmatprep.subr.bf16.mxu1 %v8378_v20  ;;  %v8545_v20 = vcombine.low %v739_v31, %v743_v32  ;;  %v8554_v47 = vcombine.high %v747_v42, %v751_v44  ;;  %v635_v11 = vld [vmem:[%s9618_s17 + $0x8d0] sm:$0xff] }
 0x2a6   : > { %7232 = vmatpush1.bf16.msra.mxu0 %v8249_v53  ;;  %v755_v53 = vld [vmem:[%s9618_s17 + $0xc90] sm:$0xff] }
 0x2a7   : > { %7233 = vmatprep.subr.bf16.mxu0 %v8258_v61  ;;  %v8425_v61 = vcombine.low %v619_v38, %v623_v39  ;;  %v639_v2 = vld [vmem:[%s9618_s17 + $0x8f0] sm:$0xff] }
 0x2a8   : > { %7273 = vmatpush1.bf16.msra.mxu1 %v8377_v57  ;;  %v759_v57 = vld [vmem:[%s9618_s17 + $0xcb0] sm:$0xff]  ;;  %v8442_v7 = vcombine.high %v635_v11, %v639_v2 }
 0x2a9   : > { %7274 = vmatprep.subr.bf16.mxu1 %v8386_v8  ;;  %v8553_v8 = vcombine.low %v747_v42, %v751_v44  ;;  %v8562_v58 = vcombine.high %v755_v53, %v759_v57  ;;  %v643_v10 = vld [vmem:[%s9618_s17 + $0x910] sm:$0xff] }
 0x2aa   : > { %7234 = vmatpush1.bf16.msra.mxu0 %v8257_v0  ;;  %v763_v0 = vld [vmem:[%s9618_s17 + $0xcd0] sm:$0xff] }
 0x2ab   : > { %7235 = vmatprep.subr.bf16.mxu0 %v8266_v4  ;;  %v8433_v4 = vcombine.low %v627_v49, %v631_v51  ;;  %v647_v12 = vld [vmem:[%s9618_s17 + $0x930] sm:$0xff] }
 0x2ac   : > { %7275 = vmatpush1.bf16.msra.mxu1 %v8385_v3  ;;  %v767_v3 = vld [vmem:[%s9618_s17 + $0xcf0] sm:$0xff]  ;;  %v8450_v43 = vcombine.high %v643_v10, %v647_v12 }
 0x2ad   : > { %7276 = vmatprep.subr.bf16.mxu1 %v8394_v6  ;;  %v8561_v6 = vcombine.low %v755_v53, %v759_v57  ;;  %v8570_v63 = vcombine.high %v763_v0, %v767_v3  ;;  %v651_v22 = vld [vmem:[%s9618_s17 + $0x950] sm:$0xff] }
 0x2ae   : > { %7236 = vmatpush1.bf16.msra.mxu0 %v8265_v13  ;;  %v771_v13 = vld [vmem:[%s9618_s17 + $0xd10] sm:$0xff] }
 0x2af   : > { %7237 = vmatprep.subr.bf16.mxu0 %v8274_v14  ;;  %v8441_v14 = vcombine.low %v635_v11, %v639_v2  ;;  %v655_v24 = vld [vmem:[%s9618_s17 + $0x970] sm:$0xff] }
 0x2b0   : > { %7277 = vmatpush1.bf16.msra.mxu1 %v8393_v40  ;;  %v775_v40 = vld [vmem:[%s9618_s17 + $0xd30] sm:$0xff]  ;;  %v8458_v55 = vcombine.high %v651_v22, %v655_v24 }
 0x2b1   : > { %7278 = vmatprep.subr.bf16.mxu1 %v8402_v15  ;;  %v8569_v15 = vcombine.low %v763_v0, %v767_v3  ;;  %v8578_v18 = vcombine.high %v771_v13, %v775_v40  ;;  %v659_v31 = vld [vmem:[%s9618_s17 + $0x990] sm:$0xff] }
 0x2b2   : > { %7238 = vmatpush1.bf16.msra.mxu0 %v8273_v25  ;;  %v779_v25 = vld [vmem:[%s9618_s17 + $0xd50] sm:$0xff] }
 0x2b3   : > { %7239 = vmatprep.subr.bf16.mxu0 %v8282_v26  ;;  %v8449_v26 = vcombine.low %v643_v10, %v647_v12  ;;  %v663_v32 = vld [vmem:[%s9618_s17 + $0x9b0] sm:$0xff] }
 0x2b4   : > { %7279 = vmatpush1.bf16.msra.mxu1 %v8401_v54  ;;  %v783_v54 = vld [vmem:[%s9618_s17 + $0xd70] sm:$0xff]  ;;  %v8466_v38 = vcombine.high %v659_v31, %v663_v32 }
 0x2b5   : > { %7280 = vmatprep.subr.bf16.mxu1 %v8410_v27  ;;  %v8577_v27 = vcombine.low %v771_v13, %v775_v40  ;;  %v8586_v29 = vcombine.high %v779_v25, %v783_v54  ;;  %v667_v44 = vld [vmem:[%s9618_s17 + $0x9d0] sm:$0xff] }
 0x2b6   : > { %7240 = vmatpush1.bf16.msra.mxu0 %v8281_v33  ;;  %v787_v33 = vld [vmem:[%s9618_s17 + $0xd90] sm:$0xff] }
 0x2b7   : > { %7291 = vmatprep.subr.bf16.mxu0 %v8418_v35  ;;  %v8457_v35 = vcombine.low %v651_v22, %v655_v24  ;;  %v795_v49 = vld [vmem:[%s9618_s17 + $0xdd0] sm:$0xff] }
 0x2b8   : > { %7281 = vmatpush1.bf16.msra.mxu1 %v8409_v34  ;;  %v791_v34 = vld [vmem:[%s9618_s17 + $0xdb0] sm:$0xff] }
 0x2b9   : > { %7332 = vmatprep.subr.bf16.mxu1 %v8546_v36  ;;  %7242 = vmatmul.mubr.bf16.vlgmr.msra.gmra.mrb[32].mxu0 %v9723_v17  ;;  %v8585_v36 = vcombine.low %v779_v25, %v783_v54  ;;  %v8594_v42 = vcombine.high %v787_v33, %v791_v34  ;;  %v799_v51 = vld [vmem:[%s9618_s17 + $0xdf0] sm:$0xff] }
 0x2ba   : > { %7292 = vmatpush1.bf16.msra.mxu0 %v8417_v45  ;;  %7323 = vmatprep.mubr.bf16.mxu0 %v9741_v28  ;;  %v671_v45 = vld [vmem:[%s9618_s17 + $0x9f0] sm:$0xff]  ;;  %v8602_v3 = vcombine.high %v795_v49, %v799_v51  ;;  %v8601_v12 = vcombine.low %v795_v49, %v799_v51 }
 0x2bb   : > { %7283 = vmatmul.mubr.bf16.vlgmr.msra.gmra.mrb[32].mxu1 %v9732_v21  ;;  %7293 = vmatprep.subr.bf16.mxu0 %v8426_v46  ;;  %v8474_v2 = vcombine.high %v667_v44, %v671_v45  ;;  %v8473_v10 = vcombine.low %v667_v44, %v671_v45  ;;  %v835_v49 = vld [vmem:[%s9618_s17 + $0xf10] sm:$0xff] }
 0x2bc   : > { %7333 = vmatpush1.bf16.msra.mxu1 %v8545_v20  ;;  %7364 = vmatprep.mubr.bf16.mxu1 %v9748_v30  ;;  %v839_v51 = vld [vmem:[%s9618_s17 + $0xf30] sm:$0xff] }
 0x2bd   : > { %7334 = vmatprep.subr.bf16.mxu1 %v8554_v47 }
 0x2be   : > { %7294 = vmatpush1.bf16.msra.mxu0 %v8425_v61 }
 0x2bf   : > { %7295 = vmatprep.subr.bf16.mxu0 %v8434_v1 }
 0x2c0   : > { %7335 = vmatpush1.bf16.msra.mxu1 %v8553_v8  ;;  %v8465_v8 = vcombine.low %v659_v31, %v663_v32 }
 0x2c1   : > { %7336 = vmatprep.subr.bf16.mxu1 %v8562_v58 }
 0x2c2   : > { %7296 = vmatpush1.bf16.msra.mxu0 %v8433_v4  ;;  %v675_v4 = vld [vmem:[%s9618_s17 + $0xa10] sm:$0xff] }
 0x2c3   : > { %7297 = vmatprep.subr.bf16.mxu0 %v8442_v7  ;;  %v803_v7 = vld [vmem:[%s9618_s17 + $0xe10] sm:$0xff] }
 0x2c4   : > { %7337 = vmatpush1.bf16.msra.mxu1 %v8561_v6  ;;  %v679_v6 = vld [vmem:[%s9618_s17 + $0xa30] sm:$0xff] }
 0x2c5   : > { %7338 = vmatprep.subr.bf16.mxu1 %v8570_v63  ;;  %v807_v63 = vld [vmem:[%s9618_s17 + $0xe30] sm:$0xff]  ;;  %v8482_v13 = vcombine.high %v675_v4, %v679_v6  ;;  %v8481_v22 = vcombine.low %v675_v4, %v679_v6 }
 0x2c6   : > { %7298 = vmatpush1.bf16.msra.mxu0 %v8441_v14  ;;  %v8610_v40 = vcombine.high %v803_v7, %v807_v63  ;;  %v683_v14 = vld [vmem:[%s9618_s17 + $0xa50] sm:$0xff]  ;;  %v8609_v24 = vcombine.low %v803_v7, %v807_v63 }
 0x2c7   : > { %7299 = vmatprep.subr.bf16.mxu0 %v8450_v43  ;;  %v811_v43 = vld [vmem:[%s9618_s17 + $0xe50] sm:$0xff] }
 0x2c8   : > { %7339 = vmatpush1.bf16.msra.mxu1 %v8569_v15  ;;  %v687_v15 = vld [vmem:[%s9618_s17 + $0xa70] sm:$0xff] }
 0x2c9   : > { %7340 = vmatprep.subr.bf16.mxu1 %v8578_v18  ;;  %v815_v18 = vld [vmem:[%s9618_s17 + $0xe70] sm:$0xff]  ;;  %v8490_v25 = vcombine.high %v683_v14, %v687_v15  ;;  %v8489_v31 = vcombine.low %v683_v14, %v687_v15 }
 0x2ca   : > { %7300 = vmatpush1.bf16.msra.mxu0 %v8449_v26  ;;  %v8618_v54 = vcombine.high %v811_v43, %v815_v18  ;;  %v691_v26 = vld [vmem:[%s9618_s17 + $0xa90] sm:$0xff]  ;;  %v8617_v32 = vcombine.low %v811_v43, %v815_v18 }
 0x2cb   : > { %7301 = vmatprep.subr.bf16.mxu0 %v8458_v55  ;;  %v819_v55 = vld [vmem:[%s9618_s17 + $0xe90] sm:$0xff] }
 0x2cc   : > { %7341 = vmatpush1.bf16.msra.mxu1 %v8577_v27  ;;  %v6997_v39 = vpop.f32.mrb[20].mxu0  ;;  %v695_v27 = vld [vmem:[%s9618_s17 + $0xab0] sm:$0xff] }
 0x2cd   : > { %7342 = vmatprep.subr.bf16.mxu1 %v8586_v29  ;;  %v6998_v20 = vadd.f32 %v6997_v39, %v10319_v56  ;;  %v6999_v47 = vpop.f32.mrb[21].mxu0  ;;  %v8593_v56 = vcombine.low %v787_v33, %v791_v34  ;;  %v823_v29 = vld [vmem:[%s9618_s17 + $0xeb0] sm:$0xff]  ;;  %v8498_v33 = vcombine.high %v691_v26, %v695_v27 }
 0x2ce   : > { %v7038_v46 = vpop.f32.mrb[20].mxu1  ;;  %v7000_v53 = vadd.f32 %v6999_v47, %v10321_v62  ;;  %v7001_v61 = vpop.f32.mrb[22].mxu0  ;;  %7302 = vmatpush1.bf16.msra.mxu0 %v8457_v35  ;;  %v8626_v34 = vcombine.high %v819_v55, %v823_v29  ;;  %v699_v35 = vld [vmem:[%s9618_s17 + $0xad0] sm:$0xff]  ;;  %v8625_v44 = vcombine.low %v819_v55, %v823_v29 }
 0x2cf   : > { %v7040_v57 = vpop.f32.mrb[21].mxu1  ;;  %v10393_v1 = vadd.f32 %v7038_v46, %v6998_v20  ;;  %v7002_v11 = vpop.f32.mrb[23].mxu0  ;;  %7303 = vmatprep.subr.bf16.mxu0 %v8466_v38  ;;  %v827_v38 = vld [vmem:[%s9618_s17 + $0xed0] sm:$0xff] }
 0x2d0   : > { %v7042_v58 = vpop.f32.mrb[22].mxu1  ;;  %7343 = vmatpush1.bf16.msra.mxu1 %v8585_v36  ;;  %v10395_v0 = vadd.f32 %v7040_v57, %v7000_v53  ;;  %v703_v36 = vld [vmem:[%s9618_s17 + $0xaf0] sm:$0xff] }
 0x2d1   : > { %v7043_v62 = vpop.f32.mrb[23].mxu1  ;;  %7344 = vmatprep.subr.bf16.mxu1 %v8594_v42  ;;  %v831_v39 = vld [vmem:[%s9618_s17 + $0xef0] sm:$0xff]  ;;  %v8497_v42 = vcombine.low %v691_v26, %v695_v27  ;;  %v8506_v45 = vcombine.high %v699_v35, %v703_v36  ;;  %v8505_v53 = vcombine.low %v699_v35, %v703_v36 }
 0x2d2   : > { %7304 = vmatpush1.bf16.msra.mxu0 %v8465_v8  ;;  %v8634_v20 = vcombine.high %v827_v38, %v831_v39  ;;  %v707_v46 = vld [vmem:[%s9618_s17 + $0xb10] sm:$0xff]  ;;  %v8633_v57 = vcombine.low %v827_v38, %v831_v39  ;;  %v8642_v8 = vcombine.high %v835_v49, %v839_v51 }
 0x2d3   : > { %7305 = vmatprep.subr.bf16.mxu0 %v8474_v2  ;;  %v711_v47 = vld [vmem:[%s9618_s17 + $0xb30] sm:$0xff] }
 0x2d4   : > { %7345 = vmatpush1.bf16.msra.mxu1 %v8593_v56  ;;  %v8514_v61 = vcombine.high %v707_v46, %v711_v47  ;;  %v715_v58 = vld [vmem:[%s9618_s17 + $0xb50] sm:$0xff]  ;;  %v8513_v62 = vcombine.low %v707_v46, %v711_v47 }
 0x2d5   : > { %7346 = vmatprep.subr.bf16.mxu1 %v8602_v3  ;;  %v719_v11 = vld [vmem:[%s9618_s17 + $0xb70] sm:$0xff]  ;;  %v8641_v3 = vcombine.low %v835_v49, %v839_v51 }
 0x2d6   : > { %7306 = vmatpush1.bf16.msra.mxu0 %v8473_v10  ;;  %v843_v56 = vld [vmem:[%s9618_s17 + $0xf50] sm:$0xff]  ;;  %v8522_v4 = vcombine.high %v715_v58, %v719_v11 }
 0x2d7   : > { %7307 = vmatprep.subr.bf16.mxu0 %v8482_v13  ;;  %v847_v2 = vld [vmem:[%s9618_s17 + $0xf70] sm:$0xff]  ;;  %v8521_v13 = vcombine.low %v715_v58, %v719_v11 }
 0x2d8   : > { %7347 = vmatpush1.bf16.msra.mxu1 %v8601_v12  ;;  %v8650_v6 = vcombine.high %v843_v56, %v847_v2  ;;  %v723_v7 = vld [vmem:[%s9618_s17 + $0xb90] sm:$0xff] }
 0x2d9   : > { %7348 = vmatprep.subr.bf16.mxu1 %v8610_v40  ;;  %v727_v63 = vld [vmem:[%s9618_s17 + $0xbb0] sm:$0xff]  ;;  %v8649_v40 = vcombine.low %v843_v56, %v847_v2 }
 0x2da   : > { %7308 = vmatpush1.bf16.msra.mxu0 %v8481_v22  ;;  %v851_v10 = vld [vmem:[%s9618_s17 + $0xf90] sm:$0xff]  ;;  %v8530_v14 = vcombine.high %v723_v7, %v727_v63 }
 0x2db   : > { %7309 = vmatprep.subr.bf16.mxu0 %v8490_v25  ;;  %v855_v12 = vld [vmem:[%s9618_s17 + $0xfb0] sm:$0xff]  ;;  %v8529_v25 = vcombine.low %v723_v7, %v727_v63 }
 0x2dc   : > { %7349 = vmatpush1.bf16.msra.mxu1 %v8609_v24  ;;  %v8658_v15 = vcombine.high %v851_v10, %v855_v12  ;;  %v731_v43 = vld [vmem:[%s9618_s17 + $0xbd0] sm:$0xff] }
 0x2dd   : > { %7350 = vmatprep.subr.bf16.mxu1 %v8618_v54  ;;  %v735_v18 = vld [vmem:[%s9618_s17 + $0xbf0] sm:$0xff]  ;;  %v8657_v54 = vcombine.low %v851_v10, %v855_v12 }
 0x2de   : > { %7310 = vmatpush1.bf16.msra.mxu0 %v8489_v31  ;;  %v859_v22 = vld [vmem:[%s9618_s17 + $0xfd0] sm:$0xff]  ;;  %v8538_v26 = vcombine.high %v731_v43, %v735_v18 }
 0x2df   : > { %7311 = vmatprep.subr.bf16.mxu0 %v8498_v33  ;;  %v863_v24 = vld [vmem:[%s9618_s17 + $0xff0] sm:$0xff]  ;;  %v8537_v33 = vcombine.low %v731_v43, %v735_v18 }
 0x2e0   : > { %7351 = vmatpush1.bf16.msra.mxu1 %v8617_v32  ;;  %v8666_v27 = vcombine.high %v859_v22, %v863_v24  ;;  %v867_v55 = vld [vmem:[%s9618_s17 + $0x1010] sm:$0xff] }
 0x2e1   : > { %7352 = vmatprep.subr.bf16.mxu1 %v8626_v34  ;;  %v871_v29 = vld [vmem:[%s9618_s17 + $0x1030] sm:$0xff]  ;;  %v8665_v34 = vcombine.low %v859_v22, %v863_v24 }
 0x2e2   : > { %7312 = vmatpush1.bf16.msra.mxu0 %v8497_v42  ;;  %v995_v31 = vld [vmem:[%s9618_s17 + $0x1410] sm:$0xff]  ;;  %v8674_v35 = vcombine.high %v867_v55, %v871_v29 }
 0x2e3   : > { %7313 = vmatprep.subr.bf16.mxu0 %v8506_v45  ;;  %v999_v32 = vld [vmem:[%s9618_s17 + $0x1430] sm:$0xff]  ;;  %v8673_v45 = vcombine.low %v867_v55, %v871_v29 }
 0x2e4   : > { %7353 = vmatpush1.bf16.msra.mxu1 %v8625_v44  ;;  %v8802_v36 = vcombine.high %v995_v31, %v999_v32  ;;  %v875_v38 = vld [vmem:[%s9618_s17 + $0x1050] sm:$0xff] }
 0x2e5   : > { %7354 = vmatprep.subr.bf16.mxu1 %v8634_v20  ;;  %v879_v39 = vld [vmem:[%s9618_s17 + $0x1070] sm:$0xff]  ;;  %v8801_v20 = vcombine.low %v995_v31, %v999_v32 }
 0x2e6   : > { %7314 = vmatpush1.bf16.msra.mxu0 %v8505_v53  ;;  %v1003_v42 = vld [vmem:[%s9618_s17 + $0x1450] sm:$0xff]  ;;  %v8682_v46 = vcombine.high %v875_v38, %v879_v39 }
 0x2e7   : > { %7315 = vmatprep.subr.bf16.mxu0 %v8514_v61  ;;  %v1007_v44 = vld [vmem:[%s9618_s17 + $0x1470] sm:$0xff]  ;;  %v8681_v61 = vcombine.low %v875_v38, %v879_v39 }
 0x2e8   : > { %7355 = vmatpush1.bf16.msra.mxu1 %v8633_v57  ;;  %v8810_v47 = vcombine.high %v1003_v42, %v1007_v44  ;;  %v883_v49 = vld [vmem:[%s9618_s17 + $0x1090] sm:$0xff] }
 0x2e9   : > { %7356 = vmatprep.subr.bf16.mxu1 %v8642_v8  ;;  %v887_v51 = vld [vmem:[%s9618_s17 + $0x10b0] sm:$0xff]  ;;  %v8809_v8 = vcombine.low %v1003_v42, %v1007_v44 }
 0x2ea   : > { %7316 = vmatpush1.bf16.msra.mxu0 %v8513_v62  ;;  %v1011_v53 = vld [vmem:[%s9618_s17 + $0x1490] sm:$0xff]  ;;  %v8690_v58 = vcombine.high %v883_v49, %v887_v51 }
 0x2eb   : > { %7317 = vmatprep.subr.bf16.mxu0 %v8522_v4  ;;  %v1015_v57 = vld [vmem:[%s9618_s17 + $0x14b0] sm:$0xff]  ;;  %v8689_v4 = vcombine.low %v883_v49, %v887_v51 }
 0x2ec   : > { %7357 = vmatpush1.bf16.msra.mxu1 %v8641_v3  ;;  %v8818_v11 = vcombine.high %v1011_v53, %v1015_v57  ;;  %v891_v56 = vld [vmem:[%s9618_s17 + $0x10d0] sm:$0xff] }
 0x2ed   : > { %7358 = vmatprep.subr.bf16.mxu1 %v8650_v6  ;;  %v895_v2 = vld [vmem:[%s9618_s17 + $0x10f0] sm:$0xff]  ;;  %v8817_v6 = vcombine.low %v1011_v53, %v1015_v57 }
 0x2ee   : > { %7318 = vmatpush1.bf16.msra.mxu0 %v8521_v13  ;;  %v1019_v62 = vld [vmem:[%s9618_s17 + $0x14d0] sm:$0xff]  ;;  %v8698_v7 = vcombine.high %v891_v56, %v895_v2 }
 0x2ef   : > { %7319 = vmatprep.subr.bf16.mxu0 %v8530_v14  ;;  %v1023_v3 = vld [vmem:[%s9618_s17 + $0x14f0] sm:$0xff]  ;;  %v8697_v14 = vcombine.low %v891_v56, %v895_v2 }
 0x2f0   : > { %7359 = vmatpush1.bf16.msra.mxu1 %v8649_v40  ;;  %v8826_v63 = vcombine.high %v1019_v62, %v1023_v3  ;;  %v899_v10 = vld [vmem:[%s9618_s17 + $0x1110] sm:$0xff] }
 0x2f1   : > { %7360 = vmatprep.subr.bf16.mxu1 %v8658_v15  ;;  %v903_v12 = vld [vmem:[%s9618_s17 + $0x1130] sm:$0xff]  ;;  %v8825_v15 = vcombine.low %v1019_v62, %v1023_v3 }
 0x2f2   : > { %7320 = vmatpush1.bf16.msra.mxu0 %v8529_v25  ;;  %v1027_v13 = vld [vmem:[%s9618_s17 + $0x1510] sm:$0xff]  ;;  %v8706_v43 = vcombine.high %v899_v10, %v903_v12 }
 0x2f3   : > { %7321 = vmatprep.subr.bf16.mxu0 %v8538_v26  ;;  %v1031_v40 = vld [vmem:[%s9618_s17 + $0x1530] sm:$0xff]  ;;  %v8705_v26 = vcombine.low %v899_v10, %v903_v12 }
 0x2f4   : > { %7361 = vmatpush1.bf16.msra.mxu1 %v8657_v54  ;;  %v8834_v18 = vcombine.high %v1027_v13, %v1031_v40  ;;  %v907_v22 = vld [vmem:[%s9618_s17 + $0x1150] sm:$0xff] }
 0x2f5   : > { %7362 = vmatprep.subr.bf16.mxu1 %v8666_v27  ;;  %v911_v24 = vld [vmem:[%s9618_s17 + $0x1170] sm:$0xff]  ;;  %v8833_v27 = vcombine.low %v1027_v13, %v1031_v40 }
 0x2f6   : > { %7322 = vmatpush1.bf16.msra.mxu0 %v8537_v33  ;;  %v1035_v25 = vld [vmem:[%s9618_s17 + $0x1550] sm:$0xff]  ;;  %v8714_v55 = vcombine.high %v907_v22, %v911_v24 }
 0x2f7   : > { %7373 = vmatprep.subr.bf16.mxu0 %v8674_v35  ;;  %v1039_v54 = vld [vmem:[%s9618_s17 + $0x1570] sm:$0xff]  ;;  %v8713_v35 = vcombine.low %v907_v22, %v911_v24 }
 0x2f8   : > { %7363 = vmatpush1.bf16.msra.mxu1 %v8665_v34  ;;  %v8842_v29 = vcombine.high %v1035_v25, %v1039_v54  ;;  %v915_v31 = vld [vmem:[%s9618_s17 + $0x1190] sm:$0xff] }
 0x2f9   : > { %7414 = vmatprep.subr.bf16.mxu1 %v8802_v36  ;;  %7324 = vmatmul.mubr.bf16.vlgmr.msra.gmra.mrb[36].mxu0 %v9813_v37  ;;  %v919_v32 = vld [vmem:[%s9618_s17 + $0x11b0] sm:$0xff]  ;;  %v8841_v36 = vcombine.low %v1035_v25, %v1039_v54 }
 0x2fa   : > { %7374 = vmatpush1.bf16.msra.mxu0 %v8673_v45  ;;  %7405 = vmatprep.mubr.bf16.mxu0 %v9831_v48  ;;  %v1043_v33 = vld [vmem:[%s9618_s17 + $0x1590] sm:$0xff]  ;;  %v8722_v38 = vcombine.high %v915_v31, %v919_v32 }
 0x2fb   : > { %7365 = vmatmul.mubr.bf16.vlgmr.msra.gmra.mrb[36].mxu1 %v9822_v41  ;;  %7375 = vmatprep.subr.bf16.mxu0 %v8682_v46  ;;  %v1047_v34 = vld [vmem:[%s9618_s17 + $0x15b0] sm:$0xff] }
 0x2fc   : > { %7415 = vmatpush1.bf16.msra.mxu1 %v8801_v20  ;;  %7446 = vmatprep.mubr.bf16.mxu1 %v9838_v50  ;;  %v8850_v42 = vcombine.high %v1043_v33, %v1047_v34  ;;  %v923_v44 = vld [vmem:[%s9618_s17 + $0x11d0] sm:$0xff] }
 0x2fd   : > { %7416 = vmatprep.subr.bf16.mxu1 %v8810_v47  ;;  %v927_v45 = vld [vmem:[%s9618_s17 + $0x11f0] sm:$0xff] }
 0x2fe   : > { %7376 = vmatpush1.bf16.msra.mxu0 %v8681_v61  ;;  %v1051_v49 = vld [vmem:[%s9618_s17 + $0x15d0] sm:$0xff]  ;;  %v8730_v2 = vcombine.high %v923_v44, %v927_v45  ;;  %v8729_v10 = vcombine.low %v923_v44, %v927_v45 }
 0x2ff   : > { %7377 = vmatprep.subr.bf16.mxu0 %v8690_v58  ;;  %v1055_v51 = vld [vmem:[%s9618_s17 + $0x15f0] sm:$0xff] }
 0x300   : > { %7417 = vmatpush1.bf16.msra.mxu1 %v8809_v8  ;;  %v8721_v8 = vcombine.low %v915_v31, %v919_v32  ;;  %v8858_v3 = vcombine.high %v1051_v49, %v1055_v51  ;;  %v8857_v12 = vcombine.low %v1051_v49, %v1055_v51  ;;  %v1091_v49 = vld [vmem:[%s9618_s17 + $0x1710] sm:$0xff] }
 0x301   : > { %7418 = vmatprep.subr.bf16.mxu1 %v8818_v11  ;;  %v1095_v51 = vld [vmem:[%s9618_s17 + $0x1730] sm:$0xff] }
 0x302   : > { %7378 = vmatpush1.bf16.msra.mxu0 %v8689_v4  ;;  %v931_v4 = vld [vmem:[%s9618_s17 + $0x1210] sm:$0xff] }
 0x303   : > { %7379 = vmatprep.subr.bf16.mxu0 %v8698_v7  ;;  %v1059_v7 = vld [vmem:[%s9618_s17 + $0x1610] sm:$0xff] }
 0x304   : > { %7419 = vmatpush1.bf16.msra.mxu1 %v8817_v6  ;;  %v935_v6 = vld [vmem:[%s9618_s17 + $0x1230] sm:$0xff] }
 0x305   : > { %7420 = vmatprep.subr.bf16.mxu1 %v8826_v63  ;;  %v1063_v63 = vld [vmem:[%s9618_s17 + $0x1630] sm:$0xff]  ;;  %v8738_v13 = vcombine.high %v931_v4, %v935_v6  ;;  %v8737_v22 = vcombine.low %v931_v4, %v935_v6 }
 0x306   : > { %7380 = vmatpush1.bf16.msra.mxu0 %v8697_v14  ;;  %v8866_v40 = vcombine.high %v1059_v7, %v1063_v63  ;;  %v939_v14 = vld [vmem:[%s9618_s17 + $0x1250] sm:$0xff]  ;;  %v8865_v24 = vcombine.low %v1059_v7, %v1063_v63 }
 0x307   : > { %7381 = vmatprep.subr.bf16.mxu0 %v8706_v43  ;;  %v1067_v43 = vld [vmem:[%s9618_s17 + $0x1650] sm:$0xff] }
 0x308   : > { %7421 = vmatpush1.bf16.msra.mxu1 %v8825_v15  ;;  %v943_v15 = vld [vmem:[%s9618_s17 + $0x1270] sm:$0xff] }
 0x309   : > { %7422 = vmatprep.subr.bf16.mxu1 %v8834_v18  ;;  %v1071_v18 = vld [vmem:[%s9618_s17 + $0x1670] sm:$0xff]  ;;  %v8746_v25 = vcombine.high %v939_v14, %v943_v15  ;;  %v8745_v31 = vcombine.low %v939_v14, %v943_v15 }
 0x30a   : > { %7382 = vmatpush1.bf16.msra.mxu0 %v8705_v26  ;;  %v8874_v54 = vcombine.high %v1067_v43, %v1071_v18  ;;  %v947_v26 = vld [vmem:[%s9618_s17 + $0x1290] sm:$0xff]  ;;  %v8873_v32 = vcombine.low %v1067_v43, %v1071_v18 }
 0x30b   : > { %7383 = vmatprep.subr.bf16.mxu0 %v8714_v55  ;;  %v1075_v55 = vld [vmem:[%s9618_s17 + $0x1690] sm:$0xff] }
 0x30c   : > { %7423 = vmatpush1.bf16.msra.mxu1 %v8833_v27  ;;  %v7079_v39 = vpop.f32.mrb[24].mxu0  ;;  %v951_v27 = vld [vmem:[%s9618_s17 + $0x12b0] sm:$0xff] }
 0x30d   : > { %7424 = vmatprep.subr.bf16.mxu1 %v8842_v29  ;;  %v7080_v20 = vadd.f32 %v7079_v39, %v10393_v1  ;;  %v7081_v47 = vpop.f32.mrb[25].mxu0  ;;  %v8849_v1 = vcombine.low %v1043_v33, %v1047_v34  ;;  %v1079_v29 = vld [vmem:[%s9618_s17 + $0x16b0] sm:$0xff]  ;;  %v8754_v33 = vcombine.high %v947_v26, %v951_v27 }
 0x30e   : > { %v7120_v46 = vpop.f32.mrb[24].mxu1  ;;  %v7082_v53 = vadd.f32 %v7081_v47, %v10395_v0  ;;  %v7083_v61 = vpop.f32.mrb[26].mxu0  ;;  %7384 = vmatpush1.bf16.msra.mxu0 %v8713_v35  ;;  %v8882_v34 = vcombine.high %v1075_v55, %v1079_v29  ;;  %v955_v35 = vld [vmem:[%s9618_s17 + $0x12d0] sm:$0xff]  ;;  %v8881_v44 = vcombine.low %v1075_v55, %v1079_v29 }
 0x30f   : > { %v7122_v57 = vpop.f32.mrb[25].mxu1  ;;  %v10467_v58 = vadd.f32 %v7120_v46, %v7080_v20  ;;  %v7084_v56 = vpop.f32.mrb[27].mxu0  ;;  %7385 = vmatprep.subr.bf16.mxu0 %v8722_v38  ;;  %v1083_v38 = vld [vmem:[%s9618_s17 + $0x16d0] sm:$0xff] }
 0x310   : > { %v7124_v11 = vpop.f32.mrb[26].mxu1  ;;  %7425 = vmatpush1.bf16.msra.mxu1 %v8841_v36  ;;  %v10469_v62 = vadd.f32 %v7122_v57, %v7082_v53  ;;  %v959_v36 = vld [vmem:[%s9618_s17 + $0x12f0] sm:$0xff] }
 0x311   : > { %v7125_v0 = vpop.f32.mrb[27].mxu1  ;;  %7426 = vmatprep.subr.bf16.mxu1 %v8850_v42  ;;  %v1087_v39 = vld [vmem:[%s9618_s17 + $0x16f0] sm:$0xff]  ;;  %v8753_v42 = vcombine.low %v947_v26, %v951_v27  ;;  %v8762_v45 = vcombine.high %v955_v35, %v959_v36  ;;  %v8761_v53 = vcombine.low %v955_v35, %v959_v36 }
 0x312   : > { %7386 = vmatpush1.bf16.msra.mxu0 %v8721_v8  ;;  %v8890_v20 = vcombine.high %v1083_v38, %v1087_v39  ;;  %v963_v46 = vld [vmem:[%s9618_s17 + $0x1310] sm:$0xff]  ;;  %v8889_v57 = vcombine.low %v1083_v38, %v1087_v39  ;;  %v8898_v8 = vcombine.high %v1091_v49, %v1095_v51 }
 0x313   : > { %7387 = vmatprep.subr.bf16.mxu0 %v8730_v2  ;;  %v967_v47 = vld [vmem:[%s9618_s17 + $0x1330] sm:$0xff] }
 0x314   : > { %7427 = vmatpush1.bf16.msra.mxu1 %v8849_v1  ;;  %v8770_v61 = vcombine.high %v963_v46, %v967_v47  ;;  %v971_v11 = vld [vmem:[%s9618_s17 + $0x1350] sm:$0xff]  ;;  %v8769_v0 = vcombine.low %v963_v46, %v967_v47 }
 0x315   : > { %7428 = vmatprep.subr.bf16.mxu1 %v8858_v3  ;;  %v975_v56 = vld [vmem:[%s9618_s17 + $0x1370] sm:$0xff]  ;;  %v8897_v3 = vcombine.low %v1091_v49, %v1095_v51 }
 0x316   : > { %7388 = vmatpush1.bf16.msra.mxu0 %v8729_v10  ;;  %v1099_v1 = vld [vmem:[%s9618_s17 + $0x1750] sm:$0xff]  ;;  %v8778_v4 = vcombine.high %v971_v11, %v975_v56 }
 0x317   : > { %7389 = vmatprep.subr.bf16.mxu0 %v8738_v13  ;;  %v1103_v2 = vld [vmem:[%s9618_s17 + $0x1770] sm:$0xff]  ;;  %v8777_v13 = vcombine.low %v971_v11, %v975_v56 }
 0x318   : > { %7429 = vmatpush1.bf16.msra.mxu1 %v8857_v12  ;;  %v8906_v6 = vcombine.high %v1099_v1, %v1103_v2  ;;  %v979_v7 = vld [vmem:[%s9618_s17 + $0x1390] sm:$0xff] }
 0x319   : > { %7430 = vmatprep.subr.bf16.mxu1 %v8866_v40  ;;  %v983_v63 = vld [vmem:[%s9618_s17 + $0x13b0] sm:$0xff]  ;;  %v8905_v40 = vcombine.low %v1099_v1, %v1103_v2 }
 0x31a   : > { %7390 = vmatpush1.bf16.msra.mxu0 %v8737_v22  ;;  %v1107_v10 = vld [vmem:[%s9618_s17 + $0x1790] sm:$0xff]  ;;  %v8786_v14 = vcombine.high %v979_v7, %v983_v63 }
 0x31b   : > { %7391 = vmatprep.subr.bf16.mxu0 %v8746_v25  ;;  %v1111_v12 = vld [vmem:[%s9618_s17 + $0x17b0] sm:$0xff]  ;;  %v8785_v25 = vcombine.low %v979_v7, %v983_v63 }
 0x31c   : > { %7431 = vmatpush1.bf16.msra.mxu1 %v8865_v24  ;;  %v8914_v15 = vcombine.high %v1107_v10, %v1111_v12  ;;  %v987_v43 = vld [vmem:[%s9618_s17 + $0x13d0] sm:$0xff] }
 0x31d   : > { %7432 = vmatprep.subr.bf16.mxu1 %v8874_v54  ;;  %v991_v18 = vld [vmem:[%s9618_s17 + $0x13f0] sm:$0xff]  ;;  %v8913_v54 = vcombine.low %v1107_v10, %v1111_v12 }
 0x31e   : > { %7392 = vmatpush1.bf16.msra.mxu0 %v8745_v31  ;;  %v1115_v22 = vld [vmem:[%s9618_s17 + $0x17d0] sm:$0xff]  ;;  %v8794_v26 = vcombine.high %v987_v43, %v991_v18 }
 0x31f   : > { %7393 = vmatprep.subr.bf16.mxu0 %v8754_v33  ;;  %v1119_v24 = vld [vmem:[%s9618_s17 + $0x17f0] sm:$0xff]  ;;  %v8793_v33 = vcombine.low %v987_v43, %v991_v18 }
 0x320   : > { %7433 = vmatpush1.bf16.msra.mxu1 %v8873_v32  ;;  %v8922_v27 = vcombine.high %v1115_v22, %v1119_v24  ;;  %v1123_v55 = vld [vmem:[%s9618_s17 + $0x1810] sm:$0xff] }
 0x321   : > { %7434 = vmatprep.subr.bf16.mxu1 %v8882_v34  ;;  %v1127_v29 = vld [vmem:[%s9618_s17 + $0x1830] sm:$0xff]  ;;  %v8921_v34 = vcombine.low %v1115_v22, %v1119_v24 }
 0x322   : > { %7394 = vmatpush1.bf16.msra.mxu0 %v8753_v42  ;;  %v1251_v31 = vld [vmem:[%s9618_s17 + $0x1c10] sm:$0xff]  ;;  %v8930_v35 = vcombine.high %v1123_v55, %v1127_v29 }
 0x323   : > { %7395 = vmatprep.subr.bf16.mxu0 %v8762_v45  ;;  %v1255_v32 = vld [vmem:[%s9618_s17 + $0x1c30] sm:$0xff]  ;;  %v8929_v45 = vcombine.low %v1123_v55, %v1127_v29 }
 0x324   : > { %7435 = vmatpush1.bf16.msra.mxu1 %v8881_v44  ;;  %v9058_v36 = vcombine.high %v1251_v31, %v1255_v32  ;;  %v1131_v38 = vld [vmem:[%s9618_s17 + $0x1850] sm:$0xff] }
 0x325   : > { %7436 = vmatprep.subr.bf16.mxu1 %v8890_v20  ;;  %v1135_v39 = vld [vmem:[%s9618_s17 + $0x1870] sm:$0xff]  ;;  %v9057_v20 = vcombine.low %v1251_v31, %v1255_v32 }
 0x326   : > { %7396 = vmatpush1.bf16.msra.mxu0 %v8761_v53  ;;  %v1259_v42 = vld [vmem:[%s9618_s17 + $0x1c50] sm:$0xff]  ;;  %v8938_v46 = vcombine.high %v1131_v38, %v1135_v39 }
 0x327   : > { %7397 = vmatprep.subr.bf16.mxu0 %v8770_v61  ;;  %v1263_v44 = vld [vmem:[%s9618_s17 + $0x1c70] sm:$0xff]  ;;  %v8937_v61 = vcombine.low %v1131_v38, %v1135_v39 }
 0x328   : > { %7437 = vmatpush1.bf16.msra.mxu1 %v8889_v57  ;;  %v9066_v47 = vcombine.high %v1259_v42, %v1263_v44  ;;  %v1139_v49 = vld [vmem:[%s9618_s17 + $0x1890] sm:$0xff] }
 0x329   : > { %7438 = vmatprep.subr.bf16.mxu1 %v8898_v8  ;;  %v1143_v51 = vld [vmem:[%s9618_s17 + $0x18b0] sm:$0xff]  ;;  %v9065_v8 = vcombine.low %v1259_v42, %v1263_v44 }
 0x32a   : > { %7398 = vmatpush1.bf16.msra.mxu0 %v8769_v0  ;;  %v1267_v53 = vld [vmem:[%s9618_s17 + $0x1c90] sm:$0xff]  ;;  %v8946_v11 = vcombine.high %v1139_v49, %v1143_v51 }
 0x32b   : > { %7399 = vmatprep.subr.bf16.mxu0 %v8778_v4  ;;  %v1271_v57 = vld [vmem:[%s9618_s17 + $0x1cb0] sm:$0xff]  ;;  %v8945_v4 = vcombine.low %v1139_v49, %v1143_v51 }
 0x32c   : > { %7439 = vmatpush1.bf16.msra.mxu1 %v8897_v3  ;;  %v9074_v56 = vcombine.high %v1267_v53, %v1271_v57  ;;  %v1147_v1 = vld [vmem:[%s9618_s17 + $0x18d0] sm:$0xff] }
 0x32d   : > { %7440 = vmatprep.subr.bf16.mxu1 %v8906_v6  ;;  %v1151_v2 = vld [vmem:[%s9618_s17 + $0x18f0] sm:$0xff]  ;;  %v9073_v6 = vcombine.low %v1267_v53, %v1271_v57 }
 0x32e   : > { %7400 = vmatpush1.bf16.msra.mxu0 %v8777_v13  ;;  %v1275_v0 = vld [vmem:[%s9618_s17 + $0x1cd0] sm:$0xff]  ;;  %v8954_v7 = vcombine.high %v1147_v1, %v1151_v2 }
 0x32f   : > { %7401 = vmatprep.subr.bf16.mxu0 %v8786_v14  ;;  %v1279_v3 = vld [vmem:[%s9618_s17 + $0x1cf0] sm:$0xff]  ;;  %v8953_v14 = vcombine.low %v1147_v1, %v1151_v2  ;;  %v340_v1 = vld [vmem:[#allocation2 + $0x18] sm:$0xff] }
 0x330   : > { %7441 = vmatpush1.bf16.msra.mxu1 %v8905_v40  ;;  %v9082_v63 = vcombine.high %v1275_v0, %v1279_v3  ;;  %v1155_v10 = vld [vmem:[%s9618_s17 + $0x1910] sm:$0xff] }
 0x331   : > { %7442 = vmatprep.subr.bf16.mxu1 %v8914_v15  ;;  %v1159_v12 = vld [vmem:[%s9618_s17 + $0x1930] sm:$0xff]  ;;  %v9081_v15 = vcombine.low %v1275_v0, %v1279_v3 }
 0x332   : > { %7402 = vmatpush1.bf16.msra.mxu0 %v8785_v25  ;;  %v1283_v13 = vld [vmem:[%s9618_s17 + $0x1d10] sm:$0xff]  ;;  %v8962_v43 = vcombine.high %v1155_v10, %v1159_v12 }
 0x333   : > { %7403 = vmatprep.subr.bf16.mxu0 %v8794_v26  ;;  %v1287_v40 = vld [vmem:[%s9618_s17 + $0x1d30] sm:$0xff]  ;;  %v8961_v26 = vcombine.low %v1155_v10, %v1159_v12 }
 0x334   : > { %7443 = vmatpush1.bf16.msra.mxu1 %v8913_v54  ;;  %v9090_v18 = vcombine.high %v1283_v13, %v1287_v40  ;;  %v1163_v22 = vld [vmem:[%s9618_s17 + $0x1950] sm:$0xff] }
 0x335   : > { %7444 = vmatprep.subr.bf16.mxu1 %v8922_v27  ;;  %v1167_v24 = vld [vmem:[%s9618_s17 + $0x1970] sm:$0xff]  ;;  %v9089_v27 = vcombine.low %v1283_v13, %v1287_v40 }
 0x336   : > { %7404 = vmatpush1.bf16.msra.mxu0 %v8793_v33  ;;  %v1291_v25 = vld [vmem:[%s9618_s17 + $0x1d50] sm:$0xff]  ;;  %v8970_v55 = vcombine.high %v1163_v22, %v1167_v24 }
 0x337   : > { %7455 = vmatprep.subr.bf16.mxu0 %v8930_v35  ;;  %v1295_v54 = vld [vmem:[%s9618_s17 + $0x1d70] sm:$0xff]  ;;  %v8969_v35 = vcombine.low %v1163_v22, %v1167_v24 }
 0x338   : > { %7445 = vmatpush1.bf16.msra.mxu1 %v8921_v34  ;;  %v9098_v29 = vcombine.high %v1291_v25, %v1295_v54  ;;  %v1171_v31 = vld [vmem:[%s9618_s17 + $0x1990] sm:$0xff] }
 0x339   : > { %7496 = vmatprep.subr.bf16.mxu1 %v9058_v36  ;;  %7406 = vmatmul.mubr.bf16.vlgmr.msra.gmra.mrb[40].mxu0 %v9903_v5  ;;  %v1175_v32 = vld [vmem:[%s9618_s17 + $0x19b0] sm:$0xff]  ;;  %v9097_v36 = vcombine.low %v1291_v25, %v1295_v54 }
 0x33a   : > { %7456 = vmatpush1.bf16.msra.mxu0 %v8929_v45  ;;  %7487 = vmatprep.mubr.bf16.mxu0 %v9921_v16  ;;  %v1299_v33 = vld [vmem:[%s9618_s17 + $0x1d90] sm:$0xff]  ;;  %v8978_v38 = vcombine.high %v1171_v31, %v1175_v32 }
 0x33b   : > { %7447 = vmatmul.mubr.bf16.vlgmr.msra.gmra.mrb[40].mxu1 %v9912_v9  ;;  %7457 = vmatprep.subr.bf16.mxu0 %v8938_v46  ;;  %v1303_v34 = vld [vmem:[%s9618_s17 + $0x1db0] sm:$0xff] }
 0x33c   : > { %7497 = vmatpush1.bf16.msra.mxu1 %v9057_v20  ;;  %7528 = vmatprep.mubr.bf16.mxu1 %v9928_v19  ;;  %v9106_v42 = vcombine.high %v1299_v33, %v1303_v34  ;;  %v1179_v44 = vld [vmem:[%s9618_s17 + $0x19d0] sm:$0xff]  ;;  %v9105_v0 = vcombine.low %v1299_v33, %v1303_v34 }
 0x33d   : > { %7498 = vmatprep.subr.bf16.mxu1 %v9066_v47  ;;  %v1183_v45 = vld [vmem:[%s9618_s17 + $0x19f0] sm:$0xff] }
 0x33e   : > { %7458 = vmatpush1.bf16.msra.mxu0 %v8937_v61  ;;  %v1307_v49 = vld [vmem:[%s9618_s17 + $0x1dd0] sm:$0xff]  ;;  %v8986_v3 = vcombine.high %v1179_v44, %v1183_v45 }
 0x33f   : > { %7459 = vmatprep.subr.bf16.mxu0 %v8946_v11  ;;  %v1311_v51 = vld [vmem:[%s9618_s17 + $0x1df0] sm:$0xff]  ;;  %v8977_v11 = vcombine.low %v1171_v31, %v1175_v32 }
 0x340   : > { %7499 = vmatpush1.bf16.msra.mxu1 %v9065_v8  ;;  %v339_v53 = vld [vmem:[#allocation2 + $0x10] sm:$0xff] }
 0x341   : > { %7500 = vmatprep.subr.bf16.mxu1 %v9074_v56  ;;  %v1315_v12 = vld [vmem:[%s9618_s17 + $0x1e10] sm:$0xff] }
 0x342   : > { %7460 = vmatpush1.bf16.msra.mxu0 %v8945_v4  ;;  %v1319_v13 = vld [vmem:[%s9618_s17 + $0x1e30] sm:$0xff] }
 0x343   : > { %7461 = vmatprep.subr.bf16.mxu0 %v8954_v7  ;;  %v1187_v7 = vld [vmem:[%s9618_s17 + $0x1a10] sm:$0xff] }
 0x344   : > { %7501 = vmatpush1.bf16.msra.mxu1 %v9073_v6  ;;  %v1195_v22 = vld [vmem:[%s9618_s17 + $0x1a50] sm:$0xff] }
 0x345   : > { %7502 = vmatprep.subr.bf16.mxu1 %v9082_v63  ;;  %v1191_v63 = vld [vmem:[%s9618_s17 + $0x1a30] sm:$0xff] }
 0x346   : > { %7462 = vmatpush1.bf16.msra.mxu0 %v8953_v14  ;;  %v8985_v14 = vcombine.low %v1179_v44, %v1183_v45  ;;  %v1199_v24 = vld [vmem:[%s9618_s17 + $0x1a70] sm:$0xff] }
 0x347   : > { %7463 = vmatprep.subr.bf16.mxu0 %v8962_v43  ;;  %v8994_v43 = vcombine.high %v1187_v7, %v1191_v63  ;;  %v1323_v25 = vld [vmem:[%s9618_s17 + $0x1e50] sm:$0xff] }
 0x348   : > { %7503 = vmatpush1.bf16.msra.mxu1 %v9081_v15  ;;  %v9113_v15 = vcombine.low %v1307_v49, %v1311_v51  ;;  %v1327_v54 = vld [vmem:[%s9618_s17 + $0x1e70] sm:$0xff] }
 0x349   : > { %7504 = vmatprep.subr.bf16.mxu1 %v9090_v18  ;;  %v9122_v18 = vcombine.high %v1315_v12, %v1319_v13  ;;  %v1203_v31 = vld [vmem:[%s9618_s17 + $0x1a90] sm:$0xff] }
 0x34a   : > { %7464 = vmatpush1.bf16.msra.mxu0 %v8961_v26  ;;  %v8993_v26 = vcombine.low %v1187_v7, %v1191_v63  ;;  %v1207_v32 = vld [vmem:[%s9618_s17 + $0x1ab0] sm:$0xff] }
 0x34b   : > { %7465 = vmatprep.subr.bf16.mxu0 %v8970_v55  ;;  %v9002_v55 = vcombine.high %v1195_v22, %v1199_v24  ;;  %v1331_v33 = vld [vmem:[%s9618_s17 + $0x1e90] sm:$0xff] }
 0x34c   : > { %7505 = vmatpush1.bf16.msra.mxu1 %v9089_v27  ;;  %v7161_v39 = vpop.f32.mrb[28].mxu0  ;;  %v9121_v27 = vcombine.low %v1315_v12, %v1319_v13  ;;  %v1335_v34 = vld [vmem:[%s9618_s17 + $0x1eb0] sm:$0xff] }
 0x34d   : > { %7506 = vmatprep.subr.bf16.mxu1 %v9098_v29  ;;  %v7162_v20 = vadd.f32 %v7161_v39, %v10467_v58  ;;  %v7163_v47 = vpop.f32.mrb[29].mxu0  ;;  %v9130_v29 = vcombine.high %v1323_v25, %v1327_v54  ;;  %v9138_v39 = vcombine.high %v1331_v33, %v1335_v34  ;;  %v1215_v44 = vld [vmem:[%s9618_s17 + $0x1af0] sm:$0xff] }
 0x34e   : > { %v7202_v46 = vpop.f32.mrb[28].mxu1  ;;  %v7164_v57 = vadd.f32 %v7163_v47, %v10469_v62  ;;  %v7165_v8 = vpop.f32.mrb[30].mxu0  ;;  %7466 = vmatpush1.bf16.msra.mxu0 %v8969_v35  ;;  %v9114_v62 = vcombine.high %v1307_v49, %v1311_v51  ;;  %v9001_v35 = vcombine.low %v1195_v22, %v1199_v24  ;;  %v1339_v45 = vld [vmem:[%s9618_s17 + $0x1ed0] sm:$0xff]  ;;  %v9137_v47 = vcombine.low %v1331_v33, %v1335_v34  ;;  %v484_v33 = vld [vmem:[%s9618_s17 + $0x418] sm:$0xff] }
 0x34f   : > { %v7204_v61 = vpop.f32.mrb[29].mxu1  ;;  %v7203_v56 = vadd.f32 %v7202_v46, %v7162_v20  ;;  %v7166_v58 = vpop.f32.mrb[31].mxu0  ;;  %7467 = vmatprep.subr.bf16.mxu0 %v8978_v38  ;;  %v9010_v38 = vcombine.high %v1203_v31, %v1207_v32  ;;  %v1343_v20 = vld [vmem:[%s9618_s17 + $0x1ef0] sm:$0xff]  ;;  %v9009_v46 = vcombine.low %v1203_v31, %v1207_v32  ;;  %v356_v31 = vld [vmem:[%s9618_s17 + $0x18] sm:$0xff] }
 0x350   : > { %v7206_v2 = vpop.f32.mrb[30].mxu1  ;;  %7507 = vmatpush1.bf16.msra.mxu1 %v9097_v36  ;;  %v7205_v4 = vadd.f32 %v7204_v61, %v7164_v57  ;;  %v9129_v36 = vcombine.low %v1323_v25, %v1327_v54  ;;  %v9146_v51 = vcombine.high %v1339_v45, %v1343_v20  ;;  %v1223_v57 = vld [vmem:[%s9618_s17 + $0x1b30] sm:$0xff]  ;;  %v360_v32 = vld [vmem:[%s9618_s17 + $0x38] sm:$0xff] }
 0x351   : > { %v7207_v6 = vpop.f32.mrb[31].mxu1  ;;  %7508 = vmatprep.subr.bf16.mxu1 %v9106_v42  ;;  %v7867_v10 = vadd.f32 %v7203_v56, %v339_v53  ;;  %v1211_v42 = vld [vmem:[%s9618_s17 + $0x1ad0] sm:$0xff]  ;;  %v9145_v56 = vcombine.low %v1339_v45, %v1343_v20  ;;  %v488_v34 = vld [vmem:[%s9618_s17 + $0x438] sm:$0xff] }
 0x352   : > { %v7868_v40 = vadd.f32 %v7205_v4, %v340_v1  ;;  %7468 = vmatpush1.bf16.msra.mxu0 %v8977_v11  ;;  %v9018_v49 = vcombine.high %v1211_v42, %v1215_v44  ;;  %v1219_v53 = vld [vmem:[%s9618_s17 + $0x1b10] sm:$0xff]  ;;  %v9017_v11 = vcombine.low %v1211_v42, %v1215_v44  ;;  %v364_v42 = vld [vmem:[%s9618_s17 + $0x58] sm:$0xff] }
 0x353   : > { %7875 = vst [vmem:[#allocation2 + $0x10] sm:$0xff] %v7867_v10  ;;  %7469 = vmatprep.subr.bf16.mxu0 %v8986_v3  ;;  %v1347_v61 = vld [vmem:[%s9618_s17 + $0x1f10] sm:$0xff]  ;;  %v9026_v1 = vcombine.high %v1219_v53, %v1223_v57  ;;  %v9025_v6 = vcombine.low %v1219_v53, %v1223_v57  ;;  %v368_v44 = vld [vmem:[%s9618_s17 + $0x78] sm:$0xff] }
 0x354   : > { %7509 = vmatpush1.bf16.msra.mxu1 %v9105_v0  ;;  %7876 = vst [vmem:[#allocation2 + $0x18] sm:$0xff] %v7868_v40  ;;  %v1351_v8 = vld [vmem:[%s9618_s17 + $0x1f30] sm:$0xff]  ;;  %v492_v45 = vld [vmem:[%s9618_s17 + $0x458] sm:$0xff] }
 0x355   : > { %7510 = vmatprep.subr.bf16.mxu1 %v9114_v62  ;;  %v9154_v2 = vcombine.high %v1347_v61, %v1351_v8  ;;  %v1227_v58 = vld [vmem:[%s9618_s17 + $0x1b50] sm:$0xff]  ;;  %v9153_v62 = vcombine.low %v1347_v61, %v1351_v8  ;;  %v496_v20 = vld [vmem:[%s9618_s17 + $0x478] sm:$0xff] }
 0x356   : > { %7470 = vmatpush1.bf16.msra.mxu0 %v8985_v14  ;;  %v1231_v0 = vld [vmem:[%s9618_s17 + $0x1b70] sm:$0xff]  ;;  %v372_v53 = vld [vmem:[%s9618_s17 + $0x98] sm:$0xff] }
 0x357   : > { %7471 = vmatprep.subr.bf16.mxu0 %v8994_v43  ;;  %v1355_v3 = vld [vmem:[%s9618_s17 + $0x1f50] sm:$0xff]  ;;  %v9034_v7 = vcombine.high %v1227_v58, %v1231_v0  ;;  %v9033_v14 = vcombine.low %v1227_v58, %v1231_v0  ;;  %v376_v57 = vld [vmem:[%s9618_s17 + $0xb8] sm:$0xff] }
 0x358   : > { %7511 = vmatpush1.bf16.msra.mxu1 %v9113_v15  ;;  %v1359_v4 = vld [vmem:[%s9618_s17 + $0x1f70] sm:$0xff]  ;;  %v500_v61 = vld [vmem:[%s9618_s17 + $0x498] sm:$0xff] }
 0x359   : > { %7512 = vmatprep.subr.bf16.mxu1 %v9122_v18  ;;  %v9162_v63 = vcombine.high %v1355_v3, %v1359_v4  ;;  %v1235_v10 = vld [vmem:[%s9618_s17 + $0x1b90] sm:$0xff]  ;;  %v9161_v15 = vcombine.low %v1355_v3, %v1359_v4  ;;  %v504_v8 = vld [vmem:[%s9618_s17 + $0x4b8] sm:$0xff] }
 0x35a   : > { %7472 = vmatpush1.bf16.msra.mxu0 %v8993_v26  ;;  %v1239_v12 = vld [vmem:[%s9618_s17 + $0x1bb0] sm:$0xff]  ;;  %v380_v58 = vld [vmem:[%s9618_s17 + $0xd8] sm:$0xff] }
 0x35b   : > { %7473 = vmatprep.subr.bf16.mxu0 %v9002_v55  ;;  %v1363_v13 = vld [vmem:[%s9618_s17 + $0x1f90] sm:$0xff]  ;;  %v9042_v43 = vcombine.high %v1235_v10, %v1239_v12  ;;  %v9041_v26 = vcombine.low %v1235_v10, %v1239_v12  ;;  %v384_v0 = vld [vmem:[%s9618_s17 + $0xf8] sm:$0xff] }
 0x35c   : > { %7513 = vmatpush1.bf16.msra.mxu1 %v9121_v27  ;;  %v1367_v40 = vld [vmem:[%s9618_s17 + $0x1fb0] sm:$0xff]  ;;  %v508_v3 = vld [vmem:[%s9618_s17 + $0x4d8] sm:$0xff] }
 0x35d   : > { %7514 = vmatprep.subr.bf16.mxu1 %v9130_v29  ;;  %v9170_v18 = vcombine.high %v1363_v13, %v1367_v40  ;;  %v1243_v22 = vld [vmem:[%s9618_s17 + $0x1bd0] sm:$0xff]  ;;  %v9169_v27 = vcombine.low %v1363_v13, %v1367_v40  ;;  %v512_v4 = vld [vmem:[%s9618_s17 + $0x4f8] sm:$0xff]  ;;  %v8187_v40 = vcombine.low %v380_v58, %v384_v0 }
 0x35e   : > { %7474 = vmatpush1.bf16.msra.mxu0 %v9001_v35  ;;  %v1247_v24 = vld [vmem:[%s9618_s17 + $0x1bf0] sm:$0xff]  ;;  %v388_v10 = vld [vmem:[%s9618_s17 + $0x118] sm:$0xff] }
 0x35f   : > { %7475 = vmatprep.subr.bf16.mxu0 %v9010_v38  ;;  %v1371_v25 = vld [vmem:[%s9618_s17 + $0x1fd0] sm:$0xff]  ;;  %v9050_v55 = vcombine.high %v1243_v22, %v1247_v24  ;;  %v9049_v35 = vcombine.low %v1243_v22, %v1247_v24  ;;  %v8164_v38 = vcombine.high %v356_v31, %v360_v32  ;;  %v392_v12 = vld [vmem:[%s9618_s17 + $0x138] sm:$0xff] }
 0x360   : > { %7515 = vmatpush1.bf16.msra.mxu1 %v9129_v36  ;;  %v1375_v54 = vld [vmem:[%s9618_s17 + $0x1ff0] sm:$0xff]  ;;  %v516_v13 = vld [vmem:[%s9618_s17 + $0x518] sm:$0xff] }
 0x361   : > { %7516 = vmatprep.subr.bf16.mxu1 %v9138_v39  ;;  %v9178_v29 = vcombine.high %v1371_v25, %v1375_v54  ;;  %v9177_v36 = vcombine.low %v1371_v25, %v1375_v54  ;;  %v8292_v39 = vcombine.high %v484_v33, %v488_v34  ;;  %v524_v22 = vld [vmem:[%s9618_s17 + $0x558] sm:$0xff]  ;;  %v8195_v25 = vcombine.low %v388_v10, %v392_v12 }
 0x362   : > { %7476 = vmatpush1.bf16.msra.mxu0 %v9009_v46  ;;  %v8163_v46 = vcombine.low %v356_v31, %v360_v32  ;;  %v528_v24 = vld [vmem:[%s9618_s17 + $0x578] sm:$0xff] }
 0x363   : > { %7477 = vmatprep.subr.bf16.mxu0 %v9018_v49  ;;  %v8172_v49 = vcombine.high %v364_v42, %v368_v44  ;;  %v532_v31 = vld [vmem:[%s9618_s17 + $0x598] sm:$0xff] }
 0x364   : > { %7517 = vmatpush1.bf16.msra.mxu1 %v9137_v47  ;;  %v8291_v47 = vcombine.low %v484_v33, %v488_v34  ;;  %v536_v32 = vld [vmem:[%s9618_s17 + $0x5b8] sm:$0xff]  ;;  %v8331_v34 = vcombine.low %v524_v22, %v528_v24 }
 0x365   : > { %7518 = vmatprep.subr.bf16.mxu1 %v9146_v51  ;;  %v8300_v51 = vcombine.high %v492_v45, %v496_v20 }
 0x366   : > { %7478 = vmatpush1.bf16.msra.mxu0 %v9017_v11  ;;  %v8171_v11 = vcombine.low %v364_v42, %v368_v44  ;;  %v416_v42 = vld [vmem:[%s9618_s17 + $0x1f8] sm:$0xff] }
 0x367   : > { %7479 = vmatprep.subr.bf16.mxu0 %v9026_v1  ;;  %v8180_v1 = vcombine.high %v372_v53, %v376_v57 }
 0x368   : > { %7519 = vmatpush1.bf16.msra.mxu1 %v9145_v56  ;;  %v8299_v56 = vcombine.low %v492_v45, %v496_v20  ;;  %v540_v20 = vld [vmem:[%s9618_s17 + $0x5d8] sm:$0xff] }
 0x369   : > { %7520 = vmatprep.subr.bf16.mxu1 %v9154_v2  ;;  %v8308_v2 = vcombine.high %v500_v61, %v504_v8 }
 0x36a   : > { %7480 = vmatpush1.bf16.msra.mxu0 %v9025_v6  ;;  %v8179_v6 = vcombine.low %v372_v53, %v376_v57 }
 0x36b   : > { %7481 = vmatprep.subr.bf16.mxu0 %v9034_v7  ;;  %v8188_v7 = vcombine.high %v380_v58, %v384_v0  ;;  %v420_v58 = vld [vmem:[%s9618_s17 + $0x218] sm:$0xff] }
 0x36c   : > { %7521 = vmatpush1.bf16.msra.mxu1 %v9153_v62  ;;  %v8307_v62 = vcombine.low %v500_v61, %v504_v8  ;;  %v424_v0 = vld [vmem:[%s9618_s17 + $0x238] sm:$0xff] }
 0x36d   : > { %7522 = vmatprep.subr.bf16.mxu1 %v9162_v63  ;;  %v8316_v63 = vcombine.high %v508_v3, %v512_v4 }
 0x36e   : > { %7482 = vmatpush1.bf16.msra.mxu0 %v9033_v14  ;;  %v8196_v14 = vcombine.high %v388_v10, %v392_v12  ;;  %v428_v10 = vld [vmem:[%s9618_s17 + $0x258] sm:$0xff] }
 0x36f   : > { %7483 = vmatprep.subr.bf16.mxu0 %v9042_v43  ;;  %v396_v43 = vld [vmem:[%s9618_s17 + $0x158] sm:$0xff] }
 0x370   : > { %7523 = vmatpush1.bf16.msra.mxu1 %v9161_v15  ;;  %v432_v12 = vld [vmem:[%s9618_s17 + $0x278] sm:$0xff] }
 0x371   : > { %7524 = vmatprep.subr.bf16.mxu1 %v9170_v18  ;;  %v400_v18 = vld [vmem:[%s9618_s17 + $0x178] sm:$0xff] }
 0x372   : > { %7484 = vmatpush1.bf16.msra.mxu0 %v9041_v26  ;;  %v8204_v26 = vcombine.high %v396_v43, %v400_v18  ;;  %v8203_v33 = vcombine.low %v396_v43, %v400_v18  ;;  %v436_v43 = vld [vmem:[%s9618_s17 + $0x298] sm:$0xff] }
 0x373   : > { %7485 = vmatprep.subr.bf16.mxu0 %v9050_v55  ;;  %v404_v55 = vld [vmem:[%s9618_s17 + $0x198] sm:$0xff] }
 0x374   : > { %7525 = vmatpush1.bf16.msra.mxu1 %v9169_v27  ;;  %v8332_v27 = vcombine.high %v524_v22, %v528_v24  ;;  %v440_v18 = vld [vmem:[%s9618_s17 + $0x2b8] sm:$0xff] }
 0x375   : > { %7526 = vmatprep.subr.bf16.mxu1 %v9178_v29  ;;  %v408_v29 = vld [vmem:[%s9618_s17 + $0x1b8] sm:$0xff] }
 0x376   : > { %7486 = vmatpush1.bf16.msra.mxu0 %v9049_v35  ;;  %v8212_v35 = vcombine.high %v404_v55, %v408_v29  ;;  %v8211_v53 = vcombine.low %v404_v55, %v408_v29  ;;  %v564_v22 = vld [vmem:[%s9618_s17 + $0x698] sm:$0xff] }
 0x377   : > { %7537 = vmatprep.subr.bf16.mxu0 %v8164_v38  ;;  %v8340_v38 = vcombine.high %v532_v31, %v536_v32  ;;  %v568_v24 = vld [vmem:[%s9618_s17 + $0x6b8] sm:$0xff] }
 0x378   : > { %7527 = vmatpush1.bf16.msra.mxu1 %v9177_v36  ;;  %v444_v55 = vld [vmem:[%s9618_s17 + $0x2d8] sm:$0xff] }
 0x379   : > { %7578 = vmatprep.subr.bf16.mxu1 %v8292_v39  ;;  %7488 = vmatmul.mubr.bf16.vlgmr.msra.gmra.mrb[44].mxu0 %v9993_v23  ;;  %v412_v39 = vld [vmem:[%s9618_s17 + $0x1d8] sm:$0xff] }
 0x37a   : > { %7538 = vmatpush1.bf16.msra.mxu0 %v8163_v46  ;;  %7569 = vmatprep.mubr.bf16.mxu0 %v9673_v59  ;;  %v520_v59 = vld [vmem:[%s9618_s17 + $0x538] sm:$0xff] }
 0x37b   : > { %7529 = vmatmul.mubr.bf16.vlgmr.msra.gmra.mrb[44].mxu1 %v9999_v52  ;;  %7539 = vmatprep.subr.bf16.mxu0 %v8172_v49  ;;  %v8324_v15 = vcombine.high %v516_v13, %v520_v59  ;;  %v8323_v54 = vcombine.low %v516_v13, %v520_v59  ;;  %v544_v46 = vld [vmem:[%s9618_s17 + $0x5f8] sm:$0xff] }
 0x37c   : > { %7579 = vmatpush1.bf16.msra.mxu1 %v8291_v47  ;;  %7610 = vmatprep.mubr.bf16.mxu1 %v9677_v60  ;;  %v8315_v60 = vcombine.low %v508_v3, %v512_v4  ;;  %v548_v3 = vld [vmem:[%s9618_s17 + $0x618] sm:$0xff] }
 0x37d   : > { %7580 = vmatprep.subr.bf16.mxu1 %v8300_v51  ;;  %v552_v4 = vld [vmem:[%s9618_s17 + $0x638] sm:$0xff] }
 0x37e   : > { %7540 = vmatpush1.bf16.msra.mxu0 %v8171_v11  ;;  %v8339_v11 = vcombine.low %v532_v31, %v536_v32  ;;  %v556_v13 = vld [vmem:[%s9618_s17 + $0x658] sm:$0xff] }
 0x37f   : > { %7541 = vmatprep.subr.bf16.mxu0 %v8180_v1  ;;  %v560_v59 = vld [vmem:[%s9618_s17 + $0x678] sm:$0xff] }
 0x380   : > { %7581 = vmatpush1.bf16.msra.mxu1 %v8299_v56  ;;  %v8220_v56 = vcombine.high %v412_v39, %v416_v42  ;;  %v448_v29 = vld [vmem:[%s9618_s17 + $0x2f8] sm:$0xff] }
 0x381   : > { %7582 = vmatprep.subr.bf16.mxu1 %v8308_v2  ;;  %v8348_v2 = vcombine.high %v540_v20, %v544_v46  ;;  %v572_v31 = vld [vmem:[%s9618_s17 + $0x6d8] sm:$0xff] }
 0x382   : > { %7542 = vmatpush1.bf16.msra.mxu0 %v8179_v6  ;;  %v8219_v6 = vcombine.low %v412_v39, %v416_v42  ;;  %v576_v32 = vld [vmem:[%s9618_s17 + $0x6f8] sm:$0xff] }
 0x383   : > { %7543 = vmatprep.subr.bf16.mxu0 %v8188_v7  ;;  %v8228_v7 = vcombine.high %v420_v58, %v424_v0  ;;  %v456_v39 = vld [vmem:[%s9618_s17 + $0x338] sm:$0xff] }
 0x384   : > { %7583 = vmatpush1.bf16.msra.mxu1 %v8307_v62  ;;  %v8347_v62 = vcombine.low %v540_v20, %v544_v46  ;;  %v580_v42 = vld [vmem:[%s9618_s17 + $0x718] sm:$0xff]  ;;  %v8379_v20 = vcombine.low %v572_v31, %v576_v32 }
 0x385   : > { %7584 = vmatprep.subr.bf16.mxu1 %v8316_v63  ;;  %v8356_v63 = vcombine.high %v548_v3, %v552_v4 }
 0x386   : > { %7544 = vmatpush1.bf16.msra.mxu0 %v8187_v40  ;;  %v8227_v40 = vcombine.low %v420_v58, %v424_v0  ;;  %v468_v58 = vld [vmem:[%s9618_s17 + $0x398] sm:$0xff] }
 0x387   : > { %7545 = vmatprep.subr.bf16.mxu0 %v8196_v14  ;;  %v8236_v14 = vcombine.high %v428_v10, %v432_v12  ;;  %v472_v0 = vld [vmem:[%s9618_s17 + $0x3b8] sm:$0xff] }
 0x388   : > { %7585 = vmatpush1.bf16.msra.mxu1 %v8315_v60  ;;  %v8355_v60 = vcombine.low %v548_v3, %v552_v4  ;;  %v596_v3 = vld [vmem:[%s9618_s17 + $0x798] sm:$0xff] }
 0x389   : > { %7586 = vmatprep.subr.bf16.mxu1 %v8324_v15  ;;  %v8364_v15 = vcombine.high %v556_v13, %v560_v59  ;;  %v600_v4 = vld [vmem:[%s9618_s17 + $0x7b8] sm:$0xff] }
 0x38a   : > { %7546 = vmatpush1.bf16.msra.mxu0 %v8195_v25  ;;  %v8235_v25 = vcombine.low %v428_v10, %v432_v12  ;;  %v476_v10 = vld [vmem:[%s9618_s17 + $0x3d8] sm:$0xff] }
 0x38b   : > { %7547 = vmatprep.subr.bf16.mxu0 %v8204_v26  ;;  %v8244_v26 = vcombine.high %v436_v43, %v440_v18  ;;  %v480_v12 = vld [vmem:[%s9618_s17 + $0x3f8] sm:$0xff] }
 0x38c   : > { %7587 = vmatpush1.bf16.msra.mxu1 %v8323_v54  ;;  %v7243_v36 = vpop.f32.mrb[32].mxu0  ;;  %v8363_v54 = vcombine.low %v556_v13, %v560_v59  ;;  %v604_v13 = vld [vmem:[%s9618_s17 + $0x7d8] sm:$0xff] }
 0x38d   : > { %7588 = vmatprep.subr.bf16.mxu1 %v8332_v27  ;;  %v7245_v45 = vpop.f32.mrb[33].mxu0  ;;  %v8372_v27 = vcombine.high %v564_v22, %v568_v24  ;;  %v608_v59 = vld [vmem:[%s9618_s17 + $0x7f8] sm:$0xff] }
 0x38e   : > { %v7284_v44 = vpop.f32.mrb[32].mxu1  ;;  %v7247_v51 = vpop.f32.mrb[34].mxu0  ;;  %7548 = vmatpush1.bf16.msra.mxu0 %v8203_v33  ;;  %v8243_v33 = vcombine.low %v436_v43, %v440_v18  ;;  %v612_v43 = vld [vmem:[%s9618_s17 + $0x818] sm:$0xff] }
 0x38f   : > { %v10609_v47 = vadd.f32 %v7284_v44, %v7243_v36  ;;  %v7286_v49 = vpop.f32.mrb[33].mxu1  ;;  %v7248_v8 = vpop.f32.mrb[35].mxu0  ;;  %7549 = vmatprep.subr.bf16.mxu0 %v8212_v35  ;;  %v8252_v35 = vcombine.high %v444_v55, %v448_v29  ;;  %v8380_v36 = vcombine.high %v572_v31, %v576_v32  ;;  %v584_v44 = vld [vmem:[%s9618_s17 + $0x738] sm:$0xff] }
 0x390   : > { %v10611_v57 = vadd.f32 %v7286_v49, %v7245_v45  ;;  %v7288_v61 = vpop.f32.mrb[34].mxu1  ;;  %7589 = vmatpush1.bf16.msra.mxu1 %v8331_v34  ;;  %v8371_v34 = vcombine.low %v564_v22, %v568_v24  ;;  %v8251_v45 = vcombine.low %v444_v55, %v448_v29  ;;  %v8388_v49 = vcombine.high %v580_v42, %v584_v44  ;;  %v460_v51 = vld [vmem:[%s9618_s17 + $0x358] sm:$0xff] }
 0x391   : > { %v7289_v1 = vpop.f32.mrb[35].mxu1  ;;  %7590 = vmatprep.subr.bf16.mxu1 %v8340_v38  ;;  %v452_v38 = vld [vmem:[%s9618_s17 + $0x318] sm:$0xff] }
 0x392   : > { %7550 = vmatpush1.bf16.msra.mxu0 %v8211_v53  ;;  %v8260_v46 = vcombine.high %v452_v38, %v456_v39  ;;  %v464_v53 = vld [vmem:[%s9618_s17 + $0x378] sm:$0xff] }
 0x393   : > { %7551 = vmatprep.subr.bf16.mxu0 %v8220_v56  ;;  %v588_v61 = vld [vmem:[%s9618_s17 + $0x758] sm:$0xff]  ;;  %v8387_v56 = vcombine.low %v580_v42, %v584_v44  ;;  %v8268_v1 = vcombine.high %v460_v51, %v464_v53 }
 0x394   : > { %7591 = vmatpush1.bf16.msra.mxu1 %v8339_v11  ;;  %v592_v8 = vld [vmem:[%s9618_s17 + $0x778] sm:$0xff]  ;;  %v8259_v11 = vcombine.low %v452_v38, %v456_v39 }
 0x395   : > { %7592 = vmatprep.subr.bf16.mxu1 %v8348_v2  ;;  %v8396_v2 = vcombine.high %v588_v61, %v592_v8  ;;  %v616_v18 = vld [vmem:[%s9618_s17 + $0x838] sm:$0xff] }
 0x396   : > { %7552 = vmatpush1.bf16.msra.mxu0 %v8219_v6  ;;  %v8267_v6 = vcombine.low %v460_v51, %v464_v53  ;;  %v740_v22 = vld [vmem:[%s9618_s17 + $0xc18] sm:$0xff] }
 0x397   : > { %7553 = vmatprep.subr.bf16.mxu0 %v8228_v7  ;;  %v8276_v7 = vcombine.high %v468_v58, %v472_v0  ;;  %v744_v24 = vld [vmem:[%s9618_s17 + $0xc38] sm:$0xff] }
 0x398   : > { %7593 = vmatpush1.bf16.msra.mxu1 %v8347_v62  ;;  %v8395_v62 = vcombine.low %v588_v61, %v592_v8  ;;  %v620_v55 = vld [vmem:[%s9618_s17 + $0x858] sm:$0xff] }
 0x399   : > { %7594 = vmatprep.subr.bf16.mxu1 %v8356_v63  ;;  %v8404_v63 = vcombine.high %v596_v3, %v600_v4  ;;  %v624_v29 = vld [vmem:[%s9618_s17 + $0x878] sm:$0xff] }
 0x39a   : > { %7554 = vmatpush1.bf16.msra.mxu0 %v8227_v40  ;;  %v8275_v40 = vcombine.low %v468_v58, %v472_v0  ;;  %v748_v31 = vld [vmem:[%s9618_s17 + $0xc58] sm:$0xff] }
 0x39b   : > { %7555 = vmatprep.subr.bf16.mxu0 %v8236_v14  ;;  %v8284_v14 = vcombine.high %v476_v10, %v480_v12  ;;  %v752_v32 = vld [vmem:[%s9618_s17 + $0xc78] sm:$0xff] }
 0x39c   : > { %7595 = vmatpush1.bf16.msra.mxu1 %v8355_v60  ;;  %v8403_v60 = vcombine.low %v596_v3, %v600_v4  ;;  %v628_v38 = vld [vmem:[%s9618_s17 + $0x898] sm:$0xff] }
 0x39d   : > { %7596 = vmatprep.subr.bf16.mxu1 %v8364_v15  ;;  %v8412_v15 = vcombine.high %v604_v13, %v608_v59  ;;  %v632_v39 = vld [vmem:[%s9618_s17 + $0x8b8] sm:$0xff] }
 0x39e   : > { %7556 = vmatpush1.bf16.msra.mxu0 %v8235_v25  ;;  %v8283_v25 = vcombine.low %v476_v10, %v480_v12  ;;  %v756_v42 = vld [vmem:[%s9618_s17 + $0xc98] sm:$0xff] }
 0x39f   : > { %7557 = vmatprep.subr.bf16.mxu0 %v8244_v26  ;;  %v8420_v26 = vcombine.high %v612_v43, %v616_v18  ;;  %v760_v44 = vld [vmem:[%s9618_s17 + $0xcb8] sm:$0xff] }
 0x3a0   : > { %7597 = vmatpush1.bf16.msra.mxu1 %v8363_v54  ;;  %v8411_v54 = vcombine.low %v604_v13, %v608_v59  ;;  %v636_v51 = vld [vmem:[%s9618_s17 + $0x8d8] sm:$0xff]  ;;  %v8563_v8 = vcombine.low %v756_v42, %v760_v44 }
 0x3a1   : > { %7598 = vmatprep.subr.bf16.mxu1 %v8372_v27  ;;  %v8548_v27 = vcombine.high %v740_v22, %v744_v24  ;;  %v640_v53 = vld [vmem:[%s9618_s17 + $0x8f8] sm:$0xff] }
 0x3a2   : > { %7558 = vmatpush1.bf16.msra.mxu0 %v8243_v33  ;;  %v8419_v33 = vcombine.low %v612_v43, %v616_v18  ;;  %v768_v61 = vld [vmem:[%s9618_s17 + $0xcf8] sm:$0xff]  ;;  %v8443_v0 = vcombine.low %v636_v51, %v640_v53 }
 0x3a3   : > { %7559 = vmatprep.subr.bf16.mxu0 %v8252_v35  ;;  %v8428_v35 = vcombine.high %v620_v55, %v624_v29  ;;  %v772_v58 = vld [vmem:[%s9618_s17 + $0xd18] sm:$0xff] }
 0x3a4   : > { %7599 = vmatpush1.bf16.msra.mxu1 %v8371_v34  ;;  %v8547_v34 = vcombine.low %v740_v22, %v744_v24 }
 0x3a5   : > { %7600 = vmatprep.subr.bf16.mxu1 %v8380_v36  ;;  %v8556_v36 = vcombine.high %v748_v31, %v752_v32 }
 0x3a6   : > { %7560 = vmatpush1.bf16.msra.mxu0 %v8251_v45  ;;  %v8427_v45 = vcombine.low %v620_v55, %v624_v29 }
 0x3a7   : > { %7561 = vmatprep.subr.bf16.mxu0 %v8260_v46  ;;  %v8436_v46 = vcombine.high %v628_v38, %v632_v39 }
 0x3a8   : > { %7601 = vmatpush1.bf16.msra.mxu1 %v8379_v20  ;;  %v8555_v20 = vcombine.low %v748_v31, %v752_v32  ;;  %v796_v31 = vld [vmem:[%s9618_s17 + $0xdd8] sm:$0xff] }
 0x3a9   : > { %7602 = vmatprep.subr.bf16.mxu1 %v8388_v49  ;;  %v8564_v49 = vcombine.high %v756_v42, %v760_v44  ;;  %v800_v32 = vld [vmem:[%s9618_s17 + $0xdf8] sm:$0xff] }
 0x3aa   : > { %7562 = vmatpush1.bf16.msra.mxu0 %v8259_v11  ;;  %v8444_v11 = vcombine.high %v636_v51, %v640_v53  ;;  %v804_v51 = vld [vmem:[%s9618_s17 + $0xe18] sm:$0xff] }
 0x3ab   : > { %7563 = vmatprep.subr.bf16.mxu0 %v8268_v1  ;;  %v644_v1 = vld [vmem:[%s9618_s17 + $0x918] sm:$0xff] }
 0x3ac   : > { %7603 = vmatpush1.bf16.msra.mxu1 %v8387_v56  ;;  %v808_v53 = vld [vmem:[%s9618_s17 + $0xe38] sm:$0xff] }
 0x3ad   : > { %7604 = vmatprep.subr.bf16.mxu1 %v8396_v2  ;;  %v648_v2 = vld [vmem:[%s9618_s17 + $0x938] sm:$0xff] }
 0x3ae   : > { %7564 = vmatpush1.bf16.msra.mxu0 %v8267_v6  ;;  %v8452_v3 = vcombine.high %v644_v1, %v648_v2  ;;  %v652_v6 = vld [vmem:[%s9618_s17 + $0x958] sm:$0xff]  ;;  %v8451_v10 = vcombine.low %v644_v1, %v648_v2 }
 0x3af   : > { %7565 = vmatprep.subr.bf16.mxu0 %v8276_v7  ;;  %v780_v7 = vld [vmem:[%s9618_s17 + $0xd58] sm:$0xff] }
 0x3b0   : > { %7605 = vmatpush1.bf16.msra.mxu1 %v8395_v62  ;;  %v656_v62 = vld [vmem:[%s9618_s17 + $0x978] sm:$0xff] }
 0x3b1   : > { %7606 = vmatprep.subr.bf16.mxu1 %v8404_v63  ;;  %v784_v63 = vld [vmem:[%s9618_s17 + $0xd78] sm:$0xff]  ;;  %v8460_v13 = vcombine.high %v652_v6, %v656_v62  ;;  %v8459_v43 = vcombine.low %v652_v6, %v656_v62 }
 0x3b2   : > { %7566 = vmatpush1.bf16.msra.mxu0 %v8275_v40  ;;  %v8588_v59 = vcombine.high %v780_v7, %v784_v63  ;;  %v660_v40 = vld [vmem:[%s9618_s17 + $0x998] sm:$0xff]  ;;  %v8587_v18 = vcombine.low %v780_v7, %v784_v63 }
 0x3b3   : > { %7567 = vmatprep.subr.bf16.mxu0 %v8284_v14  ;;  %v788_v14 = vld [vmem:[%s9618_s17 + $0xd98] sm:$0xff] }
 0x3b4   : > { %7607 = vmatpush1.bf16.msra.mxu1 %v8403_v60  ;;  %v664_v60 = vld [vmem:[%s9618_s17 + $0x9b8] sm:$0xff] }
 0x3b5   : > { %7608 = vmatprep.subr.bf16.mxu1 %v8412_v15  ;;  %v792_v15 = vld [vmem:[%s9618_s17 + $0xdb8] sm:$0xff]  ;;  %v8468_v22 = vcombine.high %v660_v40, %v664_v60 }
 0x3b6   : > { %7568 = vmatpush1.bf16.msra.mxu0 %v8283_v25  ;;  %v8596_v25 = vcombine.high %v788_v14, %v792_v15  ;;  %v812_v1 = vld [vmem:[%s9618_s17 + $0xe58] sm:$0xff] }
 0x3b7   : > { %7619 = vmatprep.subr.bf16.mxu0 %v8420_v26  ;;  %v672_v26 = vld [vmem:[%s9618_s17 + $0x9f8] sm:$0xff] }
 0x3b8   : > { %7609 = vmatpush1.bf16.msra.mxu1 %v8411_v54  ;;  %v668_v54 = vld [vmem:[%s9618_s17 + $0x9d8] sm:$0xff] }
 0x3b9   : > { %7660 = vmatprep.subr.bf16.mxu1 %v8548_v27  ;;  %7570 = vmatmul.mubr.bf16.vlgmr.msra.gmra.mrb[48].mxu0 %v9723_v17  ;;  %v764_v17 = vld [vmem:[%s9618_s17 + $0xcd8] sm:$0xff]  ;;  %v8476_v44 = vcombine.high %v668_v54, %v672_v26 }
 0x3ba   : > { %7620 = vmatpush1.bf16.msra.mxu0 %v8419_v33  ;;  %7651 = vmatprep.mubr.bf16.mxu0 %v9741_v28  ;;  %v8572_v56 = vcombine.high %v764_v17, %v768_v61  ;;  %v776_v28 = vld [vmem:[%s9618_s17 + $0xd38] sm:$0xff] }
 0x3bb   : > { %7611 = vmatmul.mubr.bf16.vlgmr.msra.gmra.mrb[48].mxu1 %v9732_v21  ;;  %7621 = vmatprep.subr.bf16.mxu0 %v8428_v35  ;;  %v8435_v21 = vcombine.low %v628_v38, %v632_v39  ;;  %v8580_v4 = vcombine.high %v772_v58, %v776_v28  ;;  %v8579_v12 = vcombine.low %v772_v58, %v776_v28  ;;  %v816_v2 = vld [vmem:[%s9618_s17 + $0xe78] sm:$0xff] }
 0x3bc   : > { %7661 = vmatpush1.bf16.msra.mxu1 %v8547_v34  ;;  %7692 = vmatprep.mubr.bf16.mxu1 %v9748_v30  ;;  %v8571_v30 = vcombine.low %v764_v17, %v768_v61  ;;  %v8475_v17 = vcombine.low %v668_v54, %v672_v26  ;;  %v8603_v61 = vcombine.low %v796_v31, %v800_v32  ;;  %v820_v6 = vld [vmem:[%s9618_s17 + $0xe98] sm:$0xff] }
 0x3bd   : > { %7662 = vmatprep.subr.bf16.mxu1 %v8556_v36  ;;  %v8467_v36 = vcombine.low %v660_v40, %v664_v60  ;;  %v8611_v28 = vcombine.low %v804_v51, %v808_v53  ;;  %v824_v62 = vld [vmem:[%s9618_s17 + $0xeb8] sm:$0xff]  ;;  %v8619_v63 = vcombine.low %v812_v1, %v816_v2 }
 0x3be   : > { %7622 = vmatpush1.bf16.msra.mxu0 %v8427_v45  ;;  %v828_v40 = vld [vmem:[%s9618_s17 + $0xed8] sm:$0xff] }
 0x3bf   : > { %7623 = vmatprep.subr.bf16.mxu0 %v8436_v46  ;;  %v676_v46 = vld [vmem:[%s9618_s17 + $0xa18] sm:$0xff] }
 0x3c0   : > { %7663 = vmatpush1.bf16.msra.mxu1 %v8555_v20  ;;  %v8604_v20 = vcombine.high %v796_v31, %v800_v32  ;;  %v832_v60 = vld [vmem:[%s9618_s17 + $0xef8] sm:$0xff] }
 0x3c1   : > { %7664 = vmatprep.subr.bf16.mxu1 %v8564_v49  ;;  %v680_v49 = vld [vmem:[%s9618_s17 + $0xa38] sm:$0xff] }
 0x3c2   : > { %7624 = vmatpush1.bf16.msra.mxu0 %v8435_v21  ;;  %v8484_v21 = vcombine.high %v676_v46, %v680_v49  ;;  %v8483_v58 = vcombine.low %v676_v46, %v680_v49  ;;  %v840_v54 = vld [vmem:[%s9618_s17 + $0xf38] sm:$0xff] }
 0x3c3   : > { %7625 = vmatprep.subr.bf16.mxu0 %v8444_v11  ;;  %v684_v11 = vld [vmem:[%s9618_s17 + $0xa58] sm:$0xff] }
 0x3c4   : > { %7665 = vmatpush1.bf16.msra.mxu1 %v8563_v8  ;;  %v8612_v8 = vcombine.high %v804_v51, %v808_v53  ;;  %v716_v31 = vld [vmem:[%s9618_s17 + $0xb58] sm:$0xff] }
 0x3c5   : > { %7666 = vmatprep.subr.bf16.mxu1 %v8572_v56  ;;  %v688_v56 = vld [vmem:[%s9618_s17 + $0xa78] sm:$0xff] }
 0x3c6   : > { %7626 = vmatpush1.bf16.msra.mxu0 %v8443_v0  ;;  %v8492_v0 = vcombine.high %v684_v11, %v688_v56  ;;  %v8491_v7 = vcombine.low %v684_v11, %v688_v56  ;;  %v720_v32 = vld [vmem:[%s9618_s17 + $0xb78] sm:$0xff] }
 0x3c7   : > { %7627 = vmatprep.subr.bf16.mxu0 %v8452_v3  ;;  %v692_v3 = vld [vmem:[%s9618_s17 + $0xa98] sm:$0xff]  ;;  %v8523_v46 = vcombine.low %v716_v31, %v720_v32 }
 0x3c8   : > { %7667 = vmatpush1.bf16.msra.mxu1 %v8571_v30  ;;  %v8620_v30 = vcombine.high %v812_v1, %v816_v2 }
 0x3c9   : > { %7668 = vmatprep.subr.bf16.mxu1 %v8580_v4  ;;  %v696_v4 = vld [vmem:[%s9618_s17 + $0xab8] sm:$0xff] }
 0x3ca   : > { %7628 = vmatpush1.bf16.msra.mxu0 %v8451_v10  ;;  %v8500_v10 = vcombine.high %v692_v3, %v696_v4 }
 0x3cb   : > { %7629 = vmatprep.subr.bf16.mxu0 %v8460_v13  ;;  %v700_v13 = vld [vmem:[%s9618_s17 + $0xad8] sm:$0xff] }
 0x3cc   : > { %7669 = vmatpush1.bf16.msra.mxu1 %v8579_v12  ;;  %v7325_v24 = vpop.f32.mrb[36].mxu0  ;;  %v8628_v12 = vcombine.high %v820_v6, %v824_v62 }
 0x3cd   : > { %7670 = vmatprep.subr.bf16.mxu1 %v8588_v59  ;;  %v7326_v27 = vadd.f32 %v7325_v24, %v10609_v47  ;;  %v7327_v29 = vpop.f32.mrb[37].mxu0  ;;  %v8595_v47 = vcombine.low %v788_v14, %v792_v15  ;;  %v704_v59 = vld [vmem:[%s9618_s17 + $0xaf8] sm:$0xff]  ;;  %v8499_v14 = vcombine.low %v692_v3, %v696_v4  ;;  %v8627_v15 = vcombine.low %v820_v6, %v824_v62 }
 0x3ce   : > { %v7366_v55 = vpop.f32.mrb[36].mxu1  ;;  %v7328_v33 = vadd.f32 %v7327_v29, %v10611_v57  ;;  %v7329_v35 = vpop.f32.mrb[38].mxu0  ;;  %7630 = vmatpush1.bf16.msra.mxu0 %v8459_v43  ;;  %v8508_v43 = vcombine.high %v700_v13, %v704_v59  ;;  %v712_v24 = vld [vmem:[%s9618_s17 + $0xb38] sm:$0xff]  ;;  %v8507_v26 = vcombine.low %v700_v13, %v704_v59 }
 0x3cf   : > { %v7368_v34 = vpop.f32.mrb[37].mxu1  ;;  %v10683_v38 = vadd.f32 %v7366_v55, %v7326_v27  ;;  %v7330_v42 = vpop.f32.mrb[39].mxu0  ;;  %7631 = vmatprep.subr.bf16.mxu0 %v8468_v22  ;;  %v708_v22 = vld [vmem:[%s9618_s17 + $0xb18] sm:$0xff]  ;;  %v8635_v27 = vcombine.low %v828_v40, %v832_v60 }
 0x3d0   : > { %v7370_v39 = vpop.f32.mrb[38].mxu1  ;;  %7671 = vmatpush1.bf16.msra.mxu1 %v8587_v18  ;;  %v10685_v45 = vadd.f32 %v7368_v34, %v7328_v33  ;;  %v8636_v18 = vcombine.high %v828_v40, %v832_v60  ;;  %v8516_v55 = vcombine.high %v708_v22, %v712_v24  ;;  %v844_v33 = vld [vmem:[%s9618_s17 + $0xf58] sm:$0xff]  ;;  %v8515_v35 = vcombine.low %v708_v22, %v712_v24 }
 0x3d1   : > { %v7371_v57 = vpop.f32.mrb[39].mxu1  ;;  %7672 = vmatprep.subr.bf16.mxu1 %v8596_v25  ;;  %v836_v25 = vld [vmem:[%s9618_s17 + $0xf18] sm:$0xff]  ;;  %v8524_v39 = vcombine.high %v716_v31, %v720_v32 }
 0x3d2   : > { %7632 = vmatpush1.bf16.msra.mxu0 %v8467_v36  ;;  %v8644_v29 = vcombine.high %v836_v25, %v840_v54  ;;  %v848_v34 = vld [vmem:[%s9618_s17 + $0xf78] sm:$0xff]  ;;  %v8643_v36 = vcombine.low %v836_v25, %v840_v54 }
 0x3d3   : > { %7633 = vmatprep.subr.bf16.mxu0 %v8476_v44  ;;  %v8652_v42 = vcombine.high %v844_v33, %v848_v34  ;;  %v728_v44 = vld [vmem:[%s9618_s17 + $0xbb8] sm:$0xff]  ;;  %v8651_v49 = vcombine.low %v844_v33, %v848_v34 }
 0x3d4   : > { %7673 = vmatpush1.bf16.msra.mxu1 %v8595_v47  ;;  %v724_v47 = vld [vmem:[%s9618_s17 + $0xb98] sm:$0xff] }
 0x3d5   : > { %7674 = vmatprep.subr.bf16.mxu1 %v8604_v20  ;;  %v852_v57 = vld [vmem:[%s9618_s17 + $0xf98] sm:$0xff]  ;;  %v8532_v51 = vcombine.high %v724_v47, %v728_v44  ;;  %v8531_v11 = vcombine.low %v724_v47, %v728_v44 }
 0x3d6   : > { %7634 = vmatpush1.bf16.msra.mxu0 %v8475_v17  ;;  %v856_v20 = vld [vmem:[%s9618_s17 + $0xfb8] sm:$0xff] }
 0x3d7   : > { %7635 = vmatprep.subr.bf16.mxu0 %v8484_v21  ;;  %v8660_v53 = vcombine.high %v852_v57, %v856_v20  ;;  %v732_v17 = vld [vmem:[%s9618_s17 + $0xbd8] sm:$0xff]  ;;  %v8659_v56 = vcombine.low %v852_v57, %v856_v20 }
 0x3d8   : > { %7675 = vmatpush1.bf16.msra.mxu1 %v8603_v61  ;;  %v736_v61 = vld [vmem:[%s9618_s17 + $0xbf8] sm:$0xff] }
 0x3d9   : > { %7676 = vmatprep.subr.bf16.mxu1 %v8612_v8  ;;  %v860_v21 = vld [vmem:[%s9618_s17 + $0xfd8] sm:$0xff]  ;;  %v8540_v1 = vcombine.high %v732_v17, %v736_v61  ;;  %v8539_v3 = vcombine.low %v732_v17, %v736_v61 }
 0x3da   : > { %7636 = vmatpush1.bf16.msra.mxu0 %v8483_v58  ;;  %v864_v8 = vld [vmem:[%s9618_s17 + $0xff8] sm:$0xff] }
 0x3db   : > { %7637 = vmatprep.subr.bf16.mxu0 %v8492_v0  ;;  %v8668_v2 = vcombine.high %v860_v21, %v864_v8  ;;  %v868_v58 = vld [vmem:[%s9618_s17 + $0x1018] sm:$0xff]  ;;  %v8667_v4 = vcombine.low %v860_v21, %v864_v8 }
 0x3dc   : > { %7677 = vmatpush1.bf16.msra.mxu1 %v8611_v28  ;;  %v872_v28 = vld [vmem:[%s9618_s17 + $0x1038] sm:$0xff] }
 0x3dd   : > { %7678 = vmatprep.subr.bf16.mxu1 %v8620_v30  ;;  %v996_v0 = vld [vmem:[%s9618_s17 + $0x1418] sm:$0xff]  ;;  %v8676_v6 = vcombine.high %v868_v58, %v872_v28  ;;  %v8675_v13 = vcombine.low %v868_v58, %v872_v28 }
 0x3de   : > { %7638 = vmatpush1.bf16.msra.mxu0 %v8491_v7  ;;  %v1000_v30 = vld [vmem:[%s9618_s17 + $0x1438] sm:$0xff] }
 0x3df   : > { %7639 = vmatprep.subr.bf16.mxu0 %v8500_v10  ;;  %v8804_v62 = vcombine.high %v996_v0, %v1000_v30  ;;  %v876_v7 = vld [vmem:[%s9618_s17 + $0x1058] sm:$0xff]  ;;  %v8803_v59 = vcombine.low %v996_v0, %v1000_v30 }
 0x3e0   : > { %7679 = vmatpush1.bf16.msra.mxu1 %v8619_v63  ;;  %v880_v63 = vld [vmem:[%s9618_s17 + $0x1078] sm:$0xff] }
 0x3e1   : > { %7680 = vmatprep.subr.bf16.mxu1 %v8628_v12  ;;  %v1004_v10 = vld [vmem:[%s9618_s17 + $0x1458] sm:$0xff]  ;;  %v8684_v40 = vcombine.high %v876_v7, %v880_v63  ;;  %v8683_v22 = vcombine.low %v876_v7, %v880_v63 }
 0x3e2   : > { %7640 = vmatpush1.bf16.msra.mxu0 %v8499_v14  ;;  %v1008_v12 = vld [vmem:[%s9618_s17 + $0x1478] sm:$0xff] }
 0x3e3   : > { %7641 = vmatprep.subr.bf16.mxu0 %v8508_v43  ;;  %v8812_v60 = vcombine.high %v1004_v10, %v1008_v12  ;;  %v884_v14 = vld [vmem:[%s9618_s17 + $0x1098] sm:$0xff]  ;;  %v8811_v24 = vcombine.low %v1004_v10, %v1008_v12 }
 0x3e4   : > { %7681 = vmatpush1.bf16.msra.mxu1 %v8627_v15  ;;  %v888_v15 = vld [vmem:[%s9618_s17 + $0x10b8] sm:$0xff] }
 0x3e5   : > { %7682 = vmatprep.subr.bf16.mxu1 %v8636_v18  ;;  %v1012_v43 = vld [vmem:[%s9618_s17 + $0x1498] sm:$0xff]  ;;  %v8692_v25 = vcombine.high %v884_v14, %v888_v15 }
 0x3e6   : > { %7642 = vmatpush1.bf16.msra.mxu0 %v8507_v26  ;;  %v1016_v18 = vld [vmem:[%s9618_s17 + $0x14b8] sm:$0xff] }
 0x3e7   : > { %7643 = vmatprep.subr.bf16.mxu0 %v8516_v55  ;;  %v8820_v54 = vcombine.high %v1012_v43, %v1016_v18  ;;  %v892_v26 = vld [vmem:[%s9618_s17 + $0x10d8] sm:$0xff] }
 0x3e8   : > { %7683 = vmatpush1.bf16.msra.mxu1 %v8635_v27  ;;  %v896_v27 = vld [vmem:[%s9618_s17 + $0x10f8] sm:$0xff] }
 0x3e9   : > { %7684 = vmatprep.subr.bf16.mxu1 %v8644_v29  ;;  %v1024_v55 = vld [vmem:[%s9618_s17 + $0x14f8] sm:$0xff]  ;;  %v8819_v29 = vcombine.low %v1012_v43, %v1016_v18  ;;  %v8700_v31 = vcombine.high %v892_v26, %v896_v27 }
 0x3ea   : > { %7644 = vmatpush1.bf16.msra.mxu0 %v8515_v35  ;;  %v900_v33 = vld [vmem:[%s9618_s17 + $0x1118] sm:$0xff] }
 0x3eb   : > { %7645 = vmatprep.subr.bf16.mxu0 %v8524_v39  ;;  %v904_v34 = vld [vmem:[%s9618_s17 + $0x1138] sm:$0xff] }
 0x3ec   : > { %7685 = vmatpush1.bf16.msra.mxu1 %v8643_v36  ;;  %v1028_v35 = vld [vmem:[%s9618_s17 + $0x1518] sm:$0xff]  ;;  %v8699_v36 = vcombine.low %v892_v26, %v896_v27  ;;  %v8708_v39 = vcombine.high %v900_v33, %v904_v34 }
 0x3ed   : > { %7686 = vmatprep.subr.bf16.mxu1 %v8652_v42  ;;  %v908_v47 = vld [vmem:[%s9618_s17 + $0x1158] sm:$0xff] }
 0x3ee   : > { %7646 = vmatpush1.bf16.msra.mxu0 %v8523_v46  ;;  %v912_v44 = vld [vmem:[%s9618_s17 + $0x1178] sm:$0xff]  ;;  %v8707_v46 = vcombine.low %v900_v33, %v904_v34 }
 0x3ef   : > { %7647 = vmatprep.subr.bf16.mxu0 %v8532_v51  ;;  %v1036_v57 = vld [vmem:[%s9618_s17 + $0x1558] sm:$0xff]  ;;  %v8716_v51 = vcombine.high %v908_v47, %v912_v44 }
 0x3f0   : > { %7687 = vmatpush1.bf16.msra.mxu1 %v8651_v49  ;;  %v1040_v20 = vld [vmem:[%s9618_s17 + $0x1578] sm:$0xff] }
 0x3f1   : > { %7688 = vmatprep.subr.bf16.mxu1 %v8660_v53  ;;  %v8844_v53 = vcombine.high %v1036_v57, %v1040_v20  ;;  %v916_v17 = vld [vmem:[%s9618_s17 + $0x1198] sm:$0xff] }
 0x3f2   : > { %7648 = vmatpush1.bf16.msra.mxu0 %v8531_v11  ;;  %v920_v61 = vld [vmem:[%s9618_s17 + $0x11b8] sm:$0xff]  ;;  %v8715_v11 = vcombine.low %v908_v47, %v912_v44 }
 0x3f3   : > { %7649 = vmatprep.subr.bf16.mxu0 %v8540_v1  ;;  %v1044_v21 = vld [vmem:[%s9618_s17 + $0x1598] sm:$0xff]  ;;  %v8724_v1 = vcombine.high %v916_v17, %v920_v61  ;;  %v8723_v12 = vcombine.low %v916_v17, %v920_v61 }
 0x3f4   : > { %7689 = vmatpush1.bf16.msra.mxu1 %v8659_v56  ;;  %v1048_v8 = vld [vmem:[%s9618_s17 + $0x15b8] sm:$0xff]  ;;  %v8843_v56 = vcombine.low %v1036_v57, %v1040_v20 }
 0x3f5   : > { %7690 = vmatprep.subr.bf16.mxu1 %v8668_v2  ;;  %v8852_v58 = vcombine.high %v1044_v21, %v1048_v8  ;;  %v924_v28 = vld [vmem:[%s9618_s17 + $0x11d8] sm:$0xff] }
 0x3f6   : > { %7650 = vmatpush1.bf16.msra.mxu0 %v8539_v3  ;;  %v928_v0 = vld [vmem:[%s9618_s17 + $0x11f8] sm:$0xff] }
 0x3f7   : > { %7701 = vmatprep.subr.bf16.mxu0 %v8676_v6  ;;  %v1052_v6 = vld [vmem:[%s9618_s17 + $0x15d8] sm:$0xff] }
 0x3f8   : > { %7691 = vmatpush1.bf16.msra.mxu1 %v8667_v4  ;;  %v932_v43 = vld [vmem:[%s9618_s17 + $0x1218] sm:$0xff] }
 0x3f9   : > { %7742 = vmatprep.subr.bf16.mxu1 %v8804_v62  ;;  %7652 = vmatmul.mubr.bf16.vlgmr.msra.gmra.mrb[52].mxu0 %v9813_v37  ;;  %v1020_v37 = vld [vmem:[%s9618_s17 + $0x14d8] sm:$0xff] }
 0x3fa   : > { %7702 = vmatpush1.bf16.msra.mxu0 %v8675_v13  ;;  %7733 = vmatprep.mubr.bf16.mxu0 %v9831_v48  ;;  %v8828_v32 = vcombine.high %v1020_v37, %v1024_v55  ;;  %v1032_v48 = vld [vmem:[%s9618_s17 + $0x1538] sm:$0xff] }
 0x3fb   : > { %7693 = vmatmul.mubr.bf16.vlgmr.msra.gmra.mrb[52].mxu1 %v9822_v41  ;;  %7703 = vmatprep.subr.bf16.mxu0 %v8684_v40  ;;  %v8691_v41 = vcombine.low %v884_v14, %v888_v15  ;;  %v8836_v42 = vcombine.high %v1028_v35, %v1032_v48  ;;  %v8835_v49 = vcombine.low %v1028_v35, %v1032_v48  ;;  %v1056_v62 = vld [vmem:[%s9618_s17 + $0x15f8] sm:$0xff] }
 0x3fc   : > { %7743 = vmatpush1.bf16.msra.mxu1 %v8803_v59  ;;  %7774 = vmatprep.mubr.bf16.mxu1 %v9838_v50  ;;  %v8827_v50 = vcombine.low %v1020_v37, %v1024_v55  ;;  %v8860_v15 = vcombine.high %v1052_v6, %v1056_v62  ;;  %v936_v18 = vld [vmem:[%s9618_s17 + $0x1238] sm:$0xff] }
 0x3fd   : > { %7744 = vmatprep.subr.bf16.mxu1 %v8812_v60  ;;  %v8732_v60 = vcombine.high %v924_v28, %v928_v0  ;;  %v8740_v26 = vcombine.high %v932_v43, %v936_v18  ;;  %v940_v37 = vld [vmem:[%s9618_s17 + $0x1258] sm:$0xff] }
 0x3fe   : > { %7704 = vmatpush1.bf16.msra.mxu0 %v8683_v22  ;;  %v1060_v22 = vld [vmem:[%s9618_s17 + $0x1618] sm:$0xff] }
 0x3ff   : > { %7705 = vmatprep.subr.bf16.mxu0 %v8692_v25  ;;  %v8731_v25 = vcombine.low %v924_v28, %v928_v0  ;;  %v944_v55 = vld [vmem:[%s9618_s17 + $0x1278] sm:$0xff] }
 0x400   : > { %7745 = vmatpush1.bf16.msra.mxu1 %v8811_v24  ;;  %v1064_v24 = vld [vmem:[%s9618_s17 + $0x1638] sm:$0xff]  ;;  %v8748_v33 = vcombine.high %v940_v37, %v944_v55 }
 0x401   : > { %7746 = vmatprep.subr.bf16.mxu1 %v8820_v54  ;;  %v8859_v54 = vcombine.low %v1052_v6, %v1056_v62  ;;  %v8868_v27 = vcombine.high %v1060_v22, %v1064_v24  ;;  %v948_v35 = vld [vmem:[%s9618_s17 + $0x1298] sm:$0xff] }
 0x402   : > { %7706 = vmatpush1.bf16.msra.mxu0 %v8691_v41  ;;  %v1068_v41 = vld [vmem:[%s9618_s17 + $0x1658] sm:$0xff] }
 0x403   : > { %7707 = vmatprep.subr.bf16.mxu0 %v8700_v31  ;;  %v8739_v31 = vcombine.low %v932_v43, %v936_v18  ;;  %v952_v48 = vld [vmem:[%s9618_s17 + $0x12b8] sm:$0xff] }
 0x404   : > { %7747 = vmatpush1.bf16.msra.mxu1 %v8819_v29  ;;  %v1072_v29 = vld [vmem:[%s9618_s17 + $0x1678] sm:$0xff]  ;;  %v8756_v47 = vcombine.high %v948_v35, %v952_v48 }
 0x405   : > { %7748 = vmatprep.subr.bf16.mxu1 %v8828_v32  ;;  %v8867_v32 = vcombine.low %v1060_v22, %v1064_v24  ;;  %v8876_v34 = vcombine.high %v1068_v41, %v1072_v29  ;;  %v956_v57 = vld [vmem:[%s9618_s17 + $0x12d8] sm:$0xff] }
 0x406   : > { %7708 = vmatpush1.bf16.msra.mxu0 %v8699_v36  ;;  %v1076_v36 = vld [vmem:[%s9618_s17 + $0x1698] sm:$0xff] }
 0x407   : > { %7709 = vmatprep.subr.bf16.mxu0 %v8708_v39  ;;  %v8747_v39 = vcombine.low %v940_v37, %v944_v55  ;;  %v960_v20 = vld [vmem:[%s9618_s17 + $0x12f8] sm:$0xff] }
 0x408   : > { %7749 = vmatpush1.bf16.msra.mxu1 %v8827_v50  ;;  %v1080_v50 = vld [vmem:[%s9618_s17 + $0x16b8] sm:$0xff]  ;;  %v8764_v17 = vcombine.high %v956_v57, %v960_v20 }
 0x409   : > { %7750 = vmatprep.subr.bf16.mxu1 %v8836_v42  ;;  %v8875_v42 = vcombine.low %v1068_v41, %v1072_v29  ;;  %v8884_v44 = vcombine.high %v1076_v36, %v1080_v50  ;;  %v972_v0 = vld [vmem:[%s9618_s17 + $0x1358] sm:$0xff] }
 0x40a   : > { %7710 = vmatpush1.bf16.msra.mxu0 %v8707_v46  ;;  %v1084_v46 = vld [vmem:[%s9618_s17 + $0x16d8] sm:$0xff] }
 0x40b   : > { %7711 = vmatprep.subr.bf16.mxu0 %v8716_v51  ;;  %v8755_v51 = vcombine.low %v948_v35, %v952_v48  ;;  %v988_v43 = vld [vmem:[%s9618_s17 + $0x13d8] sm:$0xff] }
 0x40c   : > { %7751 = vmatpush1.bf16.msra.mxu1 %v8835_v49  ;;  %v7407_v2 = vpop.f32.mrb[40].mxu0  ;;  %v1088_v49 = vld [vmem:[%s9618_s17 + $0x16f8] sm:$0xff] }
 0x40d   : > { %7752 = vmatprep.subr.bf16.mxu1 %v8844_v53  ;;  %v7408_v30 = vadd.f32 %v7407_v2, %v10683_v38  ;;  %v7409_v4 = vpop.f32.mrb[41].mxu0  ;;  %v8851_v38 = vcombine.low %v1044_v21, %v1048_v8  ;;  %v8883_v53 = vcombine.low %v1076_v36, %v1080_v50  ;;  %v8892_v61 = vcombine.high %v1084_v46, %v1088_v49  ;;  %v964_v21 = vld [vmem:[%s9618_s17 + $0x1318] sm:$0xff] }
 0x40e   : > { %v7448_v3 = vpop.f32.mrb[40].mxu1  ;;  %v7410_v7 = vadd.f32 %v7409_v4, %v10685_v45  ;;  %v7411_v10 = vpop.f32.mrb[42].mxu0  ;;  %7712 = vmatpush1.bf16.msra.mxu0 %v8715_v11  ;;  %v968_v8 = vld [vmem:[%s9618_s17 + $0x1338] sm:$0xff]  ;;  %v8891_v2 = vcombine.low %v1084_v46, %v1088_v49 }
 0x40f   : > { %v7450_v63 = vpop.f32.mrb[41].mxu1  ;;  %v10757_v13 = vadd.f32 %v7448_v3, %v7408_v30  ;;  %v7412_v40 = vpop.f32.mrb[43].mxu0  ;;  %7713 = vmatprep.subr.bf16.mxu0 %v8724_v1  ;;  %v1092_v11 = vld [vmem:[%s9618_s17 + $0x1718] sm:$0xff]  ;;  %v8763_v1 = vcombine.low %v956_v57, %v960_v20  ;;  %v8771_v6 = vcombine.low %v964_v21, %v968_v8 }
 0x410   : > { %v7452_v59 = vpop.f32.mrb[42].mxu1  ;;  %7753 = vmatpush1.bf16.msra.mxu1 %v8843_v56  ;;  %v10759_v14 = vadd.f32 %v7450_v63, %v7410_v7  ;;  %v1096_v56 = vld [vmem:[%s9618_s17 + $0x1738] sm:$0xff] }
 0x411   : > { %v7453_v45 = vpop.f32.mrb[43].mxu1  ;;  %7754 = vmatprep.subr.bf16.mxu1 %v8852_v58  ;;  %v8772_v58 = vcombine.high %v964_v21, %v968_v8  ;;  %v8900_v28 = vcombine.high %v1092_v11, %v1096_v56  ;;  %v976_v30 = vld [vmem:[%s9618_s17 + $0x1378] sm:$0xff]  ;;  %v8899_v62 = vcombine.low %v1092_v11, %v1096_v56 }
 0x412   : > { %7714 = vmatpush1.bf16.msra.mxu0 %v8723_v12  ;;  %v1100_v3 = vld [vmem:[%s9618_s17 + $0x1758] sm:$0xff]  ;;  %v8780_v7 = vcombine.high %v972_v0, %v976_v30 }
 0x413   : > { %7715 = vmatprep.subr.bf16.mxu0 %v8732_v60  ;;  %v1104_v4 = vld [vmem:[%s9618_s17 + $0x1778] sm:$0xff] }
 0x414   : > { %7755 = vmatpush1.bf16.msra.mxu1 %v8851_v38  ;;  %v8908_v63 = vcombine.high %v1100_v3, %v1104_v4  ;;  %v980_v10 = vld [vmem:[%s9618_s17 + $0x1398] sm:$0xff]  ;;  %v8779_v38 = vcombine.low %v972_v0, %v976_v30  ;;  %v8907_v60 = vcombine.low %v1100_v3, %v1104_v4 }
 0x415   : > { %7756 = vmatprep.subr.bf16.mxu1 %v8860_v15  ;;  %v984_v12 = vld [vmem:[%s9618_s17 + $0x13b8] sm:$0xff] }
 0x416   : > { %7716 = vmatpush1.bf16.msra.mxu0 %v8731_v25  ;;  %v1108_v59 = vld [vmem:[%s9618_s17 + $0x1798] sm:$0xff]  ;;  %v8788_v45 = vcombine.high %v980_v10, %v984_v12  ;;  %v8787_v25 = vcombine.low %v980_v10, %v984_v12 }
 0x417   : > { %7717 = vmatprep.subr.bf16.mxu0 %v8740_v26  ;;  %v1112_v40 = vld [vmem:[%s9618_s17 + $0x17b8] sm:$0xff] }
 0x418   : > { %7757 = vmatpush1.bf16.msra.mxu1 %v8859_v54  ;;  %v8916_v15 = vcombine.high %v1108_v59, %v1112_v40  ;;  %v992_v18 = vld [vmem:[%s9618_s17 + $0x13f8] sm:$0xff]  ;;  %v8915_v54 = vcombine.low %v1108_v59, %v1112_v40 }
 0x419   : > { %7758 = vmatprep.subr.bf16.mxu1 %v8868_v27  ;;  %v1116_v22 = vld [vmem:[%s9618_s17 + $0x17d8] sm:$0xff]  ;;  %v8796_v26 = vcombine.high %v988_v43, %v992_v18 }
 0x41a   : > { %7718 = vmatpush1.bf16.msra.mxu0 %v8739_v31  ;;  %v1120_v24 = vld [vmem:[%s9618_s17 + $0x17f8] sm:$0xff]  ;;  %v8795_v31 = vcombine.low %v988_v43, %v992_v18 }
 0x41b   : > { %7719 = vmatprep.subr.bf16.mxu0 %v8748_v33  ;;  %v8924_v27 = vcombine.high %v1116_v22, %v1120_v24  ;;  %v1124_v37 = vld [vmem:[%s9618_s17 + $0x1818] sm:$0xff] }
 0x41c   : > { %7759 = vmatpush1.bf16.msra.mxu1 %v8867_v32  ;;  %v1128_v55 = vld [vmem:[%s9618_s17 + $0x1838] sm:$0xff]  ;;  %v8923_v32 = vcombine.low %v1116_v22, %v1120_v24 }
 0x41d   : > { %7760 = vmatprep.subr.bf16.mxu1 %v8876_v34  ;;  %v1252_v41 = vld [vmem:[%s9618_s17 + $0x1c18] sm:$0xff]  ;;  %v8932_v33 = vcombine.high %v1124_v37, %v1128_v55 }
 0x41e   : > { %7720 = vmatpush1.bf16.msra.mxu0 %v8747_v39  ;;  %v1256_v29 = vld [vmem:[%s9618_s17 + $0x1c38] sm:$0xff]  ;;  %v8931_v39 = vcombine.low %v1124_v37, %v1128_v55 }
 0x41f   : > { %7721 = vmatprep.subr.bf16.mxu0 %v8756_v47  ;;  %v9060_v34 = vcombine.high %v1252_v41, %v1256_v29  ;;  %v1132_v35 = vld [vmem:[%s9618_s17 + $0x1858] sm:$0xff] }
 0x420   : > { %7761 = vmatpush1.bf16.msra.mxu1 %v8875_v42  ;;  %v1136_v48 = vld [vmem:[%s9618_s17 + $0x1878] sm:$0xff]  ;;  %v9059_v42 = vcombine.low %v1252_v41, %v1256_v29 }
 0x421   : > { %7762 = vmatprep.subr.bf16.mxu1 %v8884_v44  ;;  %v1260_v36 = vld [vmem:[%s9618_s17 + $0x1c58] sm:$0xff]  ;;  %v8940_v47 = vcombine.high %v1132_v35, %v1136_v48 }
 0x422   : > { %7722 = vmatpush1.bf16.msra.mxu0 %v8755_v51  ;;  %v1264_v50 = vld [vmem:[%s9618_s17 + $0x1c78] sm:$0xff]  ;;  %v8939_v51 = vcombine.low %v1132_v35, %v1136_v48 }
 0x423   : > { %7723 = vmatprep.subr.bf16.mxu0 %v8764_v17  ;;  %v9068_v44 = vcombine.high %v1260_v36, %v1264_v50  ;;  %v1140_v57 = vld [vmem:[%s9618_s17 + $0x1898] sm:$0xff] }
 0x424   : > { %7763 = vmatpush1.bf16.msra.mxu1 %v8883_v53  ;;  %v1144_v20 = vld [vmem:[%s9618_s17 + $0x18b8] sm:$0xff]  ;;  %v9067_v53 = vcombine.low %v1260_v36, %v1264_v50  ;;  %v342_v36 = vld [vmem:[#allocation2 + $0x28] sm:$0xff] }
 0x425   : > { %7764 = vmatprep.subr.bf16.mxu1 %v8892_v61  ;;  %v1268_v46 = vld [vmem:[%s9618_s17 + $0x1c98] sm:$0xff]  ;;  %v8948_v17 = vcombine.high %v1140_v57, %v1144_v20 }
 0x426   : > { %7724 = vmatpush1.bf16.msra.mxu0 %v8763_v1  ;;  %v1272_v49 = vld [vmem:[%s9618_s17 + $0x1cb8] sm:$0xff] }
 0x427   : > { %7725 = vmatprep.subr.bf16.mxu0 %v8772_v58  ;;  %v9076_v61 = vcombine.high %v1268_v46, %v1272_v49  ;;  %v1148_v21 = vld [vmem:[%s9618_s17 + $0x18d8] sm:$0xff]  ;;  %v9075_v56 = vcombine.low %v1268_v46, %v1272_v49 }
 0x428   : > { %7765 = vmatpush1.bf16.msra.mxu1 %v8891_v2  ;;  %v1152_v8 = vld [vmem:[%s9618_s17 + $0x18f8] sm:$0xff] }
 0x429   : > { %7766 = vmatprep.subr.bf16.mxu1 %v8900_v28  ;;  %v1280_v11 = vld [vmem:[%s9618_s17 + $0x1cf8] sm:$0xff]  ;;  %v8956_v1 = vcombine.high %v1148_v21, %v1152_v8  ;;  %v8955_v30 = vcombine.low %v1148_v21, %v1152_v8 }
 0x42a   : > { %7726 = vmatpush1.bf16.msra.mxu0 %v8771_v6  ;;  %v1156_v58 = vld [vmem:[%s9618_s17 + $0x1918] sm:$0xff] }
 0x42b   : > { %7727 = vmatprep.subr.bf16.mxu0 %v8780_v7  ;;  %v1160_v28 = vld [vmem:[%s9618_s17 + $0x1938] sm:$0xff] }
 0x42c   : > { %7767 = vmatpush1.bf16.msra.mxu1 %v8899_v62  ;;  %v1284_v0 = vld [vmem:[%s9618_s17 + $0x1d18] sm:$0xff]  ;;  %v8964_v3 = vcombine.high %v1156_v58, %v1160_v28  ;;  %v8963_v10 = vcombine.low %v1156_v58, %v1160_v28 }
 0x42d   : > { %7768 = vmatprep.subr.bf16.mxu1 %v8908_v63  ;;  %v1164_v6 = vld [vmem:[%s9618_s17 + $0x1958] sm:$0xff] }
 0x42e   : > { %7728 = vmatpush1.bf16.msra.mxu0 %v8779_v38  ;;  %v1168_v62 = vld [vmem:[%s9618_s17 + $0x1978] sm:$0xff] }
 0x42f   : > { %7729 = vmatprep.subr.bf16.mxu0 %v8788_v45  ;;  %v1292_v7 = vld [vmem:[%s9618_s17 + $0x1d58] sm:$0xff]  ;;  %v8972_v59 = vcombine.high %v1164_v6, %v1168_v62  ;;  %v8971_v43 = vcombine.low %v1164_v6, %v1168_v62 }
 0x430   : > { %7769 = vmatpush1.bf16.msra.mxu1 %v8907_v60  ;;  %v1296_v63 = vld [vmem:[%s9618_s17 + $0x1d78] sm:$0xff] }
 0x431   : > { %7770 = vmatprep.subr.bf16.mxu1 %v8916_v15  ;;  %v9100_v40 = vcombine.high %v1292_v7, %v1296_v63  ;;  %v1172_v38 = vld [vmem:[%s9618_s17 + $0x1998] sm:$0xff]  ;;  %v9099_v18 = vcombine.low %v1292_v7, %v1296_v63 }
 0x432   : > { %7730 = vmatpush1.bf16.msra.mxu0 %v8787_v25  ;;  %v1176_v60 = vld [vmem:[%s9618_s17 + $0x19b8] sm:$0xff] }
 0x433   : > { %7731 = vmatprep.subr.bf16.mxu0 %v8796_v26  ;;  %v1300_v45 = vld [vmem:[%s9618_s17 + $0x1d98] sm:$0xff]  ;;  %v8980_v22 = vcombine.high %v1172_v38, %v1176_v60  ;;  %v8979_v35 = vcombine.low %v1172_v38, %v1176_v60 }
 0x434   : > { %7771 = vmatpush1.bf16.msra.mxu1 %v8915_v54  ;;  %v1304_v15 = vld [vmem:[%s9618_s17 + $0x1db8] sm:$0xff] }
 0x435   : > { %7772 = vmatprep.subr.bf16.mxu1 %v8924_v27  ;;  %v9108_v25 = vcombine.high %v1300_v45, %v1304_v15  ;;  %v1180_v54 = vld [vmem:[%s9618_s17 + $0x19d8] sm:$0xff] }
 0x436   : > { %7732 = vmatpush1.bf16.msra.mxu0 %v8795_v31  ;;  %v1184_v26 = vld [vmem:[%s9618_s17 + $0x19f8] sm:$0xff]  ;;  %v341_v31 = vld [vmem:[#allocation2 + $0x20] sm:$0xff] }
 0x437   : > { %7783 = vmatprep.subr.bf16.mxu0 %v8932_v33  ;;  %v1308_v41 = vld [vmem:[%s9618_s17 + $0x1dd8] sm:$0xff] }
 0x438   : > { %7773 = vmatpush1.bf16.msra.mxu1 %v8923_v32  ;;  %v1312_v29 = vld [vmem:[%s9618_s17 + $0x1df8] sm:$0xff] }
 0x439   : > { %7824 = vmatprep.subr.bf16.mxu1 %v9060_v34  ;;  %7734 = vmatmul.mubr.bf16.vlgmr.msra.gmra.mrb[56].mxu0 %v9903_v5  ;;  %v1276_v5 = vld [vmem:[%s9618_s17 + $0x1cd8] sm:$0xff] }
 0x43a   : > { %7784 = vmatpush1.bf16.msra.mxu0 %v8931_v39  ;;  %7815 = vmatprep.mubr.bf16.mxu0 %v9921_v16  ;;  %v9084_v2 = vcombine.high %v1276_v5, %v1280_v11  ;;  %v1288_v16 = vld [vmem:[%s9618_s17 + $0x1d38] sm:$0xff]  ;;  %v9107_v39 = vcombine.low %v1300_v45, %v1304_v15 }
 0x43b   : > { %7775 = vmatmul.mubr.bf16.vlgmr.msra.gmra.mrb[56].mxu1 %v9912_v9  ;;  %7785 = vmatprep.subr.bf16.mxu0 %v8940_v47  ;;  %v8947_v9 = vcombine.low %v1140_v57, %v1144_v20  ;;  %v9092_v4 = vcombine.high %v1284_v0, %v1288_v16  ;;  %v9091_v12 = vcombine.low %v1284_v0, %v1288_v16  ;;  %v1188_v57 = vld [vmem:[%s9618_s17 + $0x1a18] sm:$0xff] }
 0x43c   : > { %7825 = vmatpush1.bf16.msra.mxu1 %v9059_v42  ;;  %7856 = vmatprep.mubr.bf16.mxu1 %v9928_v19  ;;  %v9083_v19 = vcombine.low %v1276_v5, %v1280_v11  ;;  %v8988_v42 = vcombine.high %v1180_v54, %v1184_v26  ;;  %v1192_v20 = vld [vmem:[%s9618_s17 + $0x1a38] sm:$0xff] }
 0x43d   : > { %7826 = vmatprep.subr.bf16.mxu1 %v9068_v44  ;;  %v1316_v49 = vld [vmem:[%s9618_s17 + $0x1e18] sm:$0xff]  ;;  %v8996_v21 = vcombine.high %v1188_v57, %v1192_v20 }
 0x43e   : > { %7786 = vmatpush1.bf16.msra.mxu0 %v8939_v51  ;;  %v1320_v51 = vld [vmem:[%s9618_s17 + $0x1e38] sm:$0xff] }
 0x43f   : > { %7787 = vmatprep.subr.bf16.mxu0 %v8948_v17  ;;  %v8987_v17 = vcombine.low %v1180_v54, %v1184_v26  ;;  %v9124_v8 = vcombine.high %v1316_v49, %v1320_v51  ;;  %v1196_v5 = vld [vmem:[%s9618_s17 + $0x1a58] sm:$0xff] }
 0x440   : > { %7827 = vmatpush1.bf16.msra.mxu1 %v9067_v53  ;;  %v1200_v11 = vld [vmem:[%s9618_s17 + $0x1a78] sm:$0xff] }
 0x441   : > { %7828 = vmatprep.subr.bf16.mxu1 %v9076_v61  ;;  %v9115_v61 = vcombine.low %v1308_v41, %v1312_v29  ;;  %v9004_v58 = vcombine.high %v1196_v5, %v1200_v11  ;;  %v1204_v0 = vld [vmem:[%s9618_s17 + $0x1a98] sm:$0xff] }
 0x442   : > { %7788 = vmatpush1.bf16.msra.mxu0 %v8947_v9  ;;  %v1324_v9 = vld [vmem:[%s9618_s17 + $0x1e58] sm:$0xff] }
 0x443   : > { %7789 = vmatprep.subr.bf16.mxu0 %v8956_v1  ;;  %v8995_v1 = vcombine.low %v1188_v57, %v1192_v20  ;;  %v1208_v16 = vld [vmem:[%s9618_s17 + $0x1ab8] sm:$0xff] }
 0x444   : > { %7829 = vmatpush1.bf16.msra.mxu1 %v9075_v56  ;;  %v1328_v56 = vld [vmem:[%s9618_s17 + $0x1e78] sm:$0xff]  ;;  %v9012_v6 = vcombine.high %v1204_v0, %v1208_v16 }
 0x445   : > { %7830 = vmatprep.subr.bf16.mxu1 %v9084_v2  ;;  %v9123_v2 = vcombine.low %v1316_v49, %v1320_v51  ;;  %v9132_v28 = vcombine.high %v1324_v9, %v1328_v56  ;;  %v1212_v7 = vld [vmem:[%s9618_s17 + $0x1ad8] sm:$0xff] }
 0x446   : > { %7790 = vmatpush1.bf16.msra.mxu0 %v8955_v30  ;;  %v1332_v30 = vld [vmem:[%s9618_s17 + $0x1e98] sm:$0xff] }
 0x447   : > { %7791 = vmatprep.subr.bf16.mxu0 %v8964_v3  ;;  %v9003_v3 = vcombine.low %v1196_v5, %v1200_v11  ;;  %v1216_v63 = vld [vmem:[%s9618_s17 + $0x1af8] sm:$0xff] }
 0x448   : > { %7831 = vmatpush1.bf16.msra.mxu1 %v9083_v19  ;;  %v1336_v19 = vld [vmem:[%s9618_s17 + $0x1eb8] sm:$0xff]  ;;  %v9020_v38 = vcombine.high %v1212_v7, %v1216_v63 }
 0x449   : > { %7832 = vmatprep.subr.bf16.mxu1 %v9092_v4  ;;  %v9131_v4 = vcombine.low %v1324_v9, %v1328_v56  ;;  %v9140_v62 = vcombine.high %v1332_v30, %v1336_v19  ;;  %v1220_v45 = vld [vmem:[%s9618_s17 + $0x1b18] sm:$0xff] }
 0x44a   : > { %7792 = vmatpush1.bf16.msra.mxu0 %v8963_v10  ;;  %v1340_v10 = vld [vmem:[%s9618_s17 + $0x1ed8] sm:$0xff] }
 0x44b   : > { %7793 = vmatprep.subr.bf16.mxu0 %v8972_v59  ;;  %v9011_v59 = vcombine.low %v1204_v0, %v1208_v16  ;;  %v1224_v15 = vld [vmem:[%s9618_s17 + $0x1b38] sm:$0xff] }
 0x44c   : > { %7833 = vmatpush1.bf16.msra.mxu1 %v9091_v12  ;;  %v7489_v24 = vpop.f32.mrb[44].mxu0  ;;  %v1344_v12 = vld [vmem:[%s9618_s17 + $0x1ef8] sm:$0xff] }
 0x44d   : > { %7834 = vmatprep.subr.bf16.mxu1 %v9100_v40  ;;  %v7490_v27 = vadd.f32 %v7489_v24, %v10757_v13  ;;  %v7491_v55 = vpop.f32.mrb[45].mxu0  ;;  %v9139_v40 = vcombine.low %v1332_v30, %v1336_v19  ;;  %v9148_v60 = vcombine.high %v1340_v10, %v1344_v12  ;;  %v9147_v24 = vcombine.low %v1340_v10, %v1344_v12  ;;  %v1228_v26 = vld [vmem:[%s9618_s17 + $0x1b58] sm:$0xff] }
 0x44e   : > { %v7530_v37 = vpop.f32.mrb[44].mxu1  ;;  %v7492_v32 = vadd.f32 %v7491_v55, %v10759_v14  ;;  %v7493_v34 = vpop.f32.mrb[46].mxu0  ;;  %7794 = vmatpush1.bf16.msra.mxu0 %v8971_v43  ;;  %v9116_v14 = vcombine.high %v1308_v41, %v1312_v29  ;;  %v1348_v43 = vld [vmem:[%s9618_s17 + $0x1f18] sm:$0xff]  ;;  %v9027_v41 = vcombine.low %v1220_v45, %v1224_v15 }
 0x44f   : > { %v7532_v33 = vpop.f32.mrb[45].mxu1  ;;  %v7531_v48 = vadd.f32 %v7530_v37, %v7490_v27  ;;  %v7494_v13 = vpop.f32.mrb[47].mxu0  ;;  %7795 = vmatprep.subr.bf16.mxu0 %v8980_v22  ;;  %v9019_v22 = vcombine.low %v1212_v7, %v1216_v63  ;;  %v1232_v27 = vld [vmem:[%s9618_s17 + $0x1b78] sm:$0xff] }
 0x450   : > { %v7534_v50 = vpop.f32.mrb[46].mxu1  ;;  %7835 = vmatpush1.bf16.msra.mxu1 %v9099_v18  ;;  %v7533_v47 = vadd.f32 %v7532_v33, %v7492_v32  ;;  %v1352_v18 = vld [vmem:[%s9618_s17 + $0x1f38] sm:$0xff] }
 0x451   : > { %v7535_v44 = vpop.f32.mrb[47].mxu1  ;;  %7836 = vmatprep.subr.bf16.mxu1 %v9108_v25  ;;  %v7869_v46 = vadd.f32 %v7531_v48, %v341_v31  ;;  %v9028_v25 = vcombine.high %v1220_v45, %v1224_v15  ;;  %v9156_v54 = vcombine.high %v1348_v43, %v1352_v18  ;;  %v1356_v37 = vld [vmem:[%s9618_s17 + $0x1f58] sm:$0xff]  ;;  %v9155_v29 = vcombine.low %v1348_v43, %v1352_v18 }
 0x452   : > { %v7870_v53 = vadd.f32 %v7533_v47, %v342_v36  ;;  %7796 = vmatpush1.bf16.msra.mxu0 %v8979_v35  ;;  %v1360_v55 = vld [vmem:[%s9618_s17 + $0x1f78] sm:$0xff]  ;;  %v9036_v31 = vcombine.high %v1228_v26, %v1232_v27  ;;  %v9035_v36 = vcombine.low %v1228_v26, %v1232_v27  ;;  %v343_v26 = vld [vmem:[#allocation2 + $0x30] sm:$0xff] }
 0x453   : > { %7877 = vst [vmem:[#allocation2 + $0x20] sm:$0xff] %v7869_v46  ;;  %7797 = vmatprep.subr.bf16.mxu0 %v8988_v42  ;;  %v9164_v32 = vcombine.high %v1356_v37, %v1360_v55  ;;  %v1236_v33 = vld [vmem:[%s9618_s17 + $0x1b98] sm:$0xff]  ;;  %v9163_v50 = vcombine.low %v1356_v37, %v1360_v55 }
 0x454   : > { %7837 = vmatpush1.bf16.msra.mxu1 %v9107_v39  ;;  %7878 = vst [vmem:[#allocation2 + $0x28] sm:$0xff] %v7870_v53  ;;  %v1240_v34 = vld [vmem:[%s9618_s17 + $0x1bb8] sm:$0xff] }
 0x455   : > { %7838 = vmatprep.subr.bf16.mxu1 %v9116_v14  ;;  %v1364_v35 = vld [vmem:[%s9618_s17 + $0x1f98] sm:$0xff]  ;;  %v9044_v13 = vcombine.high %v1236_v33, %v1240_v34  ;;  %v9043_v57 = vcombine.low %v1236_v33, %v1240_v34 }
 0x456   : > { %7798 = vmatpush1.bf16.msra.mxu0 %v8987_v17  ;;  %v1368_v48 = vld [vmem:[%s9618_s17 + $0x1fb8] sm:$0xff] }
 0x457   : > { %7799 = vmatprep.subr.bf16.mxu0 %v8996_v21  ;;  %v9172_v39 = vcombine.high %v1364_v35, %v1368_v48  ;;  %v1244_v42 = vld [vmem:[%s9618_s17 + $0x1bd8] sm:$0xff]  ;;  %v9171_v20 = vcombine.low %v1364_v35, %v1368_v48 }
 0x458   : > { %7839 = vmatpush1.bf16.msra.mxu1 %v9115_v61  ;;  %v1248_v47 = vld [vmem:[%s9618_s17 + $0x1bf8] sm:$0xff] }
 0x459   : > { %7840 = vmatprep.subr.bf16.mxu1 %v9124_v8  ;;  %v1372_v44 = vld [vmem:[%s9618_s17 + $0x1fd8] sm:$0xff]  ;;  %v9052_v46 = vcombine.high %v1244_v42, %v1248_v47  ;;  %v9051_v51 = vcombine.low %v1244_v42, %v1248_v47 }
 0x45a   : > { %7800 = vmatpush1.bf16.msra.mxu0 %v8995_v1  ;;  %v1376_v14 = vld [vmem:[%s9618_s17 + $0x1ff8] sm:$0xff] }
 0x45b   : > { %7801 = vmatprep.subr.bf16.mxu0 %v9004_v58  ;;  %v9180_v49 = vcombine.high %v1372_v44, %v1376_v14  ;;  %v9179_v53 = vcombine.low %v1372_v44, %v1376_v14 }
 0x45c   : > { %7841 = vmatpush1.bf16.msra.mxu1 %v9123_v2 }
 0x45d   : > { %7842 = vmatprep.subr.bf16.mxu1 %v9132_v28 }
 0x45e   : > { %7802 = vmatpush1.bf16.msra.mxu0 %v9003_v3 }
 0x45f   : > { %7803 = vmatprep.subr.bf16.mxu0 %v9012_v6 }
 0x460   : > { %7843 = vmatpush1.bf16.msra.mxu1 %v9131_v4 }
 0x461   : > { %7844 = vmatprep.subr.bf16.mxu1 %v9140_v62 }
 0x462   : > { %7804 = vmatpush1.bf16.msra.mxu0 %v9011_v59 }
 0x463   : > { %7805 = vmatprep.subr.bf16.mxu0 %v9020_v38 }
 0x464   : > { %7845 = vmatpush1.bf16.msra.mxu1 %v9139_v40 }
 0x465   : > { %7846 = vmatprep.subr.bf16.mxu1 %v9148_v60 }
 0x466   : > { %7806 = vmatpush1.bf16.msra.mxu0 %v9019_v22 }
 0x467   : > { %7807 = vmatprep.subr.bf16.mxu0 %v9028_v25 }
 0x468   : > { %7847 = vmatpush1.bf16.msra.mxu1 %v9147_v24 }
 0x469   : > { %7848 = vmatprep.subr.bf16.mxu1 %v9156_v54 }
 0x46a   : > { %7808 = vmatpush1.bf16.msra.mxu0 %v9027_v41 }
 0x46b   : > { %7809 = vmatprep.subr.bf16.mxu0 %v9036_v31 }
 0x46c   : > { %7849 = vmatpush1.bf16.msra.mxu1 %v9155_v29  ;;  %v344_v29 = vld [vmem:[#allocation2 + $0x38] sm:$0xff] }
 0x46d   : > { %7850 = vmatprep.subr.bf16.mxu1 %v9164_v32 }
 0x46e   : > { %7810 = vmatpush1.bf16.msra.mxu0 %v9035_v36  ;;  %v7895_v36 = vlaneseq (!%p9181_p7) }
 0x46f   : > { %7811 = vmatprep.subr.bf16.mxu0 %v9044_v13  ;;  %v7893_v13 = vld [vmem:[#allocation6] sm:$0xff] (!%p9181_p7) }
 0x470   : > { %7851 = vmatpush1.bf16.msra.mxu1 %v9163_v50  ;;  %v7896_v50 = vshrl.u32 (!%p9181_p7), %v7895_v36, 7 }
 0x471   : > { %7852 = vmatprep.subr.bf16.mxu1 %v9172_v39  ;;  %v7885_v39 = vld [vmem:[#allocation2] sm:$0xff] (!%p9181_p7) }
 0x472   : > { %7812 = vmatpush1.bf16.msra.mxu0 %v9043_v57  ;;  %v7897_v42 = vsub.s32 (!%p9181_p7), 0, %v7896_v50  ;;  %v7901_v47 = vsub.s32 (!%p9181_p7), 1, %v7896_v50  ;;  %v7905_v44 = vsub.s32 (!%p9181_p7), 2, %v7896_v50  ;;  %v7909_v14 = vsub.s32 (!%p9181_p7), 3, %v7896_v50  ;;  %v7886_v57 = vld [vmem:[#allocation2 + $0x8] sm:$0xff] (!%p9181_p7) }
 0x473   : > { %7813 = vmatprep.subr.bf16.mxu0 %v9052_v46  ;;  %v7888_v46 = vld [vmem:[#allocation2 + $0x18] sm:$0xff] (!%p9181_p7) }
 0x474   : > { %7853 = vmatpush1.bf16.msra.mxu1 %v9171_v20  ;;  %v7887_v20 = vld [vmem:[#allocation2 + $0x10] sm:$0xff] (!%p9181_p7) }
 0x475   : > { %7854 = vmatprep.subr.bf16.mxu1 %v9180_v49  ;;  %v7913_v49 = vsub.s32 (!%p9181_p7), 4, %v7896_v50 }
 0x476   : > { %7814 = vmatpush1.bf16.msra.mxu0 %v9051_v51  ;;  %v7917_v51 = vsub.s32 (!%p9181_p7), 5, %v7896_v50 }
 0x478   : > { %7855 = vmatpush1.bf16.msra.mxu1 %v9179_v53  ;;  %v7921_v53 = vsub.s32 (!%p9181_p7), 6, %v7896_v50 }
 0x479   : > { %7816 = vmatmul.mubr.bf16.vlgmr.msra.gmra.mrb[60].mxu0 %v9993_v23 }
 0x47b   : > { %7857 = vmatmul.mubr.bf16.vlgmr.msra.gmra.mrb[60].mxu1 %v9999_v52 }
 0x48c   : > { %v7571_v17 = vpop.f32.mrb[48].mxu0 }
 0x48d   : > { %v7573_v21 = vpop.f32.mrb[49].mxu0 }
 0x48e   : > { %v7612_v61 = vpop.f32.mrb[48].mxu1  ;;  %v7575_v11 = vpop.f32.mrb[50].mxu0 }
 0x48f   : > { %v7613_v8 = vadd.f32 %v7612_v61, %v7571_v17  ;;  %v7614_v5 = vpop.f32.mrb[49].mxu1  ;;  %v7576_v1 = vpop.f32.mrb[51].mxu0  ;;  %v7889_v17 = vld [vmem:[#allocation2 + $0x20] sm:$0xff] (!%p9181_p7)  ;;  %v7898_v61 = vrot.slane (!%p9181_p7), %v7893_v13, %v7897_v42  ;;  %v7914_v11 = vrot.slane (!%p9181_p7), %v7893_v13, %v7913_v49 }
 0x490   : > { %v7615_v9 = vadd.f32 %v7614_v5, %v7573_v21  ;;  %v7616_v56 = vpop.f32.mrb[50].mxu1  ;;  %v7902_v21 = vrot.slane (!%p9181_p7), %v7893_v13, %v7901_v47  ;;  %v7910_v5 = vrot.slane (!%p9181_p7), %v7893_v13, %v7909_v14  ;;  %v7890_v1 = vld [vmem:[#allocation2 + $0x28] sm:$0xff] (!%p9181_p7) }
 0x491   : > { %v7617_v2 = vpop.f32.mrb[51].mxu1  ;;  %v7925_v56 = vsub.s32 (!%p9181_p7), 7, %v7896_v50 }
 0x492   : > { %v7935_v2 = vadd.f32 (!%p9181_p7), %v7898_v61, %v7885_v39  ;;  %v8013_v39 = vstv (!%p9181_p7), %s8011_s23 }
 0x4cc   : > { %v7653_v58 = vpop.f32.mrb[52].mxu0 }
 0x4cd   : > { %v7654_v28 = vadd.f32 %v7653_v58, %v7613_v8  ;;  %v7655_v16 = vpop.f32.mrb[53].mxu0  ;;  %v7906_v8 = vrot.slane (!%p9181_p7), %v7893_v13, %v7905_v44  ;;  %v7936_v58 = vadd.f32 (!%p9181_p7), %v7902_v21, %v7886_v57 }
 0x4ce   : > { %v7694_v0 = vpop.f32.mrb[52].mxu1  ;;  %v7656_v30 = vadd.f32 %v7655_v16, %v7615_v9  ;;  %v7657_v3 = vpop.f32.mrb[54].mxu0  ;;  %v7918_v9 = vrot.slane (!%p9181_p7), %v7893_v13, %v7917_v51  ;;  %v7922_v16 = vrot.slane (!%p9181_p7), %v7893_v13, %v7921_v53 }
 0x4cf   : > { %v7696_v19 = vpop.f32.mrb[53].mxu1  ;;  %v7695_v23 = vadd.f32 %v7694_v0, %v7654_v28  ;;  %v7658_v52 = vpop.f32.mrb[55].mxu0  ;;  %v7937_v28 = vadd.f32 (!%p9181_p7), %v7906_v8, %v7887_v20  ;;  %v7938_v0 = vadd.f32 (!%p9181_p7), %v7910_v5, %v7888_v46 }
 0x4d0   : > { %v7698_v4 = vpop.f32.mrb[54].mxu1  ;;  %v7697_v6 = vadd.f32 %v7696_v19, %v7656_v30  ;;  %v7939_v30 = vadd.f32 (!%p9181_p7), %v7914_v11, %v7889_v17  ;;  %v7951_v19 = vld [vmem:[#allocation8] sm:$0xff] (!%p9181_p7) }
 0x4d1   : > { %v7699_v62 = vpop.f32.mrb[55].mxu1  ;;  %v7944_v4 = vmax.f32 (!%p9181_p7), %v7936_v58, 0.0  ;;  %v7945_v52 = vmax.f32 (!%p9181_p7), %v7937_v28, 0.0 }
 0x4d2   : > { %v7940_v62 = vadd.f32 (!%p9181_p7), %v7918_v9, %v7890_v1 }
 0x50c   : > { %v7735_v7 = vpop.f32.mrb[56].mxu0 }
 0x50d   : > { %v7736_v63 = vadd.f32 %v7735_v7, %v7695_v23  ;;  %v7737_v12 = vpop.f32.mrb[57].mxu0  ;;  %v7943_v23 = vmax.f32 (!%p9181_p7), %v7935_v2, 0.0  ;;  %v7946_v7 = vmax.f32 (!%p9181_p7), %v7938_v0, 0.0 }
 0x50e   : > { %v7776_v10 = vpop.f32.mrb[56].mxu1  ;;  %v7738_v59 = vadd.f32 %v7737_v12, %v7697_v6  ;;  %v7739_v38 = vpop.f32.mrb[58].mxu0  ;;  %v7926_v6 = vrot.slane (!%p9181_p7), %v7893_v13, %v7925_v56  ;;  %v7960_v12 = vrot.slane (!%p9181_p7), %v7951_v19, %v7901_v47 }
 0x50f   : > { %v7778_v40 = vpop.f32.mrb[57].mxu1  ;;  %v7777_v60 = vadd.f32 %v7776_v10, %v7736_v63  ;;  %v7740_v15 = vpop.f32.mrb[59].mxu0  ;;  %v7956_v10 = vrot.slane (!%p9181_p7), %v7951_v19, %v7897_v42 }
 0x510   : > { %v7780_v45 = vpop.f32.mrb[58].mxu1  ;;  %v7779_v43 = vadd.f32 %v7778_v40, %v7738_v59  ;;  %v7964_v59 = vrot.slane (!%p9181_p7), %v7951_v19, %v7905_v44  ;;  %v7968_v40 = vrot.slane (!%p9181_p7), %v7951_v19, %v7909_v14 }
 0x511   : > { %v7781_v18 = vpop.f32.mrb[59].mxu1  ;;  %v7972_v45 = vrot.slane (!%p9181_p7), %v7951_v19, %v7913_v49  ;;  %v7993_v15 = vmul.f32 (!%p9181_p7), %v7956_v10, %v7943_v23 }
 0x512   : > { %v7995_v18 = vmul.f32 (!%p9181_p7), %v7964_v59, %v7945_v52 }
 0x54c   : > { %v7817_v22 = vpop.f32.mrb[60].mxu0 }
 0x54d   : > { %v7818_v24 = vadd.f32 %v7817_v22, %v7777_v60  ;;  %v7819_v54 = vpop.f32.mrb[61].mxu0  ;;  %v7947_v60 = vmax.f32 (!%p9181_p7), %v7939_v30, 0.0 }
 0x54e   : > { %v7858_v25 = vpop.f32.mrb[60].mxu1  ;;  %v7820_v27 = vadd.f32 %v7819_v54, %v7779_v43  ;;  %v7821_v55 = vpop.f32.mrb[62].mxu0  ;;  %7884 = sbr.rel (%p9181_p7) target bundleno = 1526 (0x5f6), region = 60  ;;  %v7994_v43 = vmul.f32 (!%p9181_p7), %v7960_v12, %v7944_v4  ;;  %v7996_v54 = vmul.f32 (!%p9181_p7), %v7968_v40, %v7946_v7 }
 0x54f   : > { %v7860_v37 = vpop.f32.mrb[61].mxu1  ;;  %v7859_v41 = vadd.f32 %v7858_v25, %v7818_v24  ;;  %v7822_v32 = vpop.f32.mrb[63].mxu0  ;;  %v7948_v24 = vmax.f32 (!%p9181_p7), %v7940_v62, 0.0  ;;  %v7976_v25 = vrot.slane (!%p9181_p7), %v7951_v19, %v7917_v51  ;;  %v7997_v55 = vmul.f32 (!%p9181_p7), %v7972_v45, %v7947_v60 }
 0x550   : > { %v7862_v31 = vpop.f32.mrb[62].mxu1  ;;  %v7861_v33 = vadd.f32 %v7860_v37, %v7820_v27  ;;  %v7980_v37 = vrot.slane (!%p9181_p7), %v7951_v19, %v7921_v53 }
 0x551   : > { %v7863_v34 = vpop.f32.mrb[63].mxu1  ;;  %v7871_v35 = vadd.f32 %v7859_v41, %v343_v26  ;;  %v8001_v26 = vadd.f32 (!%p9181_p7), %v7994_v43, %v7993_v15  ;;  %v7984_v31 = vrot.slane (!%p9181_p7), %v7951_v19, %v7925_v56  ;;  %v7998_v32 = vmul.f32 (!%p9181_p7), %v7976_v25, %v7948_v24 }
 0x552   : > { %v7872_v48 = vadd.f32 %v7861_v33, %v344_v29 }
 0x553   : > { %7879 = vst [vmem:[#allocation2 + $0x30] sm:$0xff] %v7871_v35  ;;  %v8002_v41 = vadd.f32 (!%p9181_p7), %v8001_v26, %v7995_v18 }
 0x554   : > { %7880 = vst [vmem:[#allocation2 + $0x38] sm:$0xff] %v7872_v48 }
 0x555   : > { %v8003_v33 = vadd.f32 %v8002_v41, %v7996_v54 }
 0x557   : > { %v8004_v35 = vadd.f32 %v8003_v33, %v7997_v55 }
 0x559   : > { %v8005_v36 = vadd.f32 %v8004_v35, %v7998_v32 }
 0x55a   : > { %v7891_v3 = vld [vmem:[#allocation2 + $0x30] sm:$0xff] }
 0x55b   : > { %v7892_v63 = vld [vmem:[#allocation2 + $0x38] sm:$0xff]  ;;  %v7941_v38 = vadd.f32 %v7922_v16, %v7891_v3 }
 0x55c   : > { %v7942_v22 = vadd.f32 %v7926_v6, %v7892_v63 }
 0x55d   : > { %v7949_v27 = vmax.f32 %v7941_v38, 0.0 }
 0x55e   : > { %v7950_v29 = vmax.f32 %v7942_v22, 0.0 }
 0x55f   : > { %v7999_v34 = vmul.f32 %v7980_v37, %v7949_v27 }
 0x560   : > { %v8000_v48 = vmul.f32 %v7984_v31, %v7950_v29 }
 0x561   : > { %v8006_v50 = vadd.f32 %v8005_v36, %v7999_v34 }
 0x563   : > { %v8007_v13 = vadd.f32 %v8006_v50, %v8000_v48 }
 0x565   : > { %8008 = vadd.xlane.f32.xlu0 %v8007_v13 }
 0x5f2   : > { %v8009_v42 = vpop.xlane.xlu0 %8008 }
 0x5f3   : > { %v8014_v47 = vadd.f32 %v8013_v39, %v8009_v42 }
 0x5f5   : > { %8016 = vst.msk [vmem:[%s10892_s5] sm:$0xff] %vm8015_vm0, %v8014_v47 }
 0x5f6 PF: > { %s20_s25 = sadd.s32 1, %s9422_s25   ;;  %s10907_s20 = smov %s9406_s21 }
 0x5f7   : > { %p17_p9 = scmp.ge.s32.totalorder %s20_s25, 4   ;;  %s10908_s21 = smov %s9410_s22 }
 0x5f8   : > { %s10909_s22 = smov %s9585_s13  ;;  %s10910_s23 = smov %s9418_s24 }
 0x5f9   : > { %s10911_s24 = smov %s10913_s4  ;;  %19 = sbr.rel (!%p17_p9) target bundleno = 7 (0x7), region = 101 }
 0x600   :  { %8036 = vsyncpa [#allocation5], 1 }
 0x601   :  { %8038 = vsyncpa [#allocation5 + $0x1], 1 }
 0x602   :  { %8039 = vsyncpa [#allocation7], 1 }

</bundles_post_ra>
